<compile_context>
chip_gen: v7x
topology: tpu7x:2x2x1
jax: 0.10.0
libtpu: 0.0.40
codegen_flags: <defaults>
</compile_context>

<pallas_src>
import functools

import jax
import jax.numpy as jnp
from jax.experimental import pallas as pl
from jax.experimental.pallas import tpu as pltpu


def _round_up(x, m):
    return (x + m - 1) // m * m


def _pick_m_tile(m8, cap_rows):
    """Largest multiple-of-8 divisor of m8 (itself a multiple of 8) <= cap_rows."""
    cap_rows = max(8, min(cap_rows, m8))
    q = m8 // 8
    best = 1
    d = 1
    while d * d <= q:
        if q % d == 0:
            for cand in (d, q // d):
                if cand * 8 <= cap_rows and cand > best:
                    best = cand
        d += 1
    return best * 8


def _vmem_limit_bytes(required):
    """Clamp a VMEM request to a budget that is also safe on 64 MiB (v7x) parts."""
    try:
        cap = int(getattr(pltpu.get_tpu_info(), "vmem_capacity_bytes", 128 << 20))
    except Exception:  # pragma: no cover - conservative fallback
        cap = 64 << 20
    budget = max(16 << 20, min(40 << 20, (cap * 3) // 5))
    return int(min(max(required, 16 << 20), budget))


# ---------------------------------------------------------------------------
# Pallas kernels
# ---------------------------------------------------------------------------
def _conv_mm_kernel(p_ref, w_ref, b_ref, o_ref, *, apply_lrelu):
    """(TM, K) x (K, TN) GEMM tile: bf16 operands, f32 accumulate, fused bias
    (+ LeakyReLU 0.2) in f32; cast to the output dtype is the last op."""
    acc = jnp.dot(p_ref[...], w_ref[...], preferred_element_type=jnp.float32)
    acc = acc + b_ref[...]                        # (1, TN) broadcast over TM rows
    if apply_lrelu:
        acc = jnp.where(acc > 0, acc, 0.2 * acc)
    o_ref[...] = acc.astype(o_ref.dtype)


def _instnorm_lrelu_kernel(x_ref, o_ref):
    """InstanceNorm2d(affine=False, eps=1e-5) + LeakyReLU(0.2), single pass.

    x_ref: (1, S, TC) — one batch element, one channel tile.  Stats accumulate
    in f32 regardless of the (bf16) input dtype; biased variance like PyTorch,
    clamped >= 0 against E[x^2]-mean^2 cancellation.
    """
    x = x_ref[...].astype(jnp.float32)
    inv_s = 1.0 / x.shape[1]
    mean = jnp.sum(x, axis=1, keepdims=True) * inv_s
    ex2 = jnp.sum(x * x, axis=1, keepdims=True) * inv_s
    var = jnp.maximum(ex2 - mean * mean, 0.0)
    y = (x - mean) * jax.lax.rsqrt(var + 1e-5)
    o_ref[...] = jnp.where(y > 0, y, 0.2 * y).astype(o_ref.dtype)


def _in_stats_kernel(x_ref, sum_ref, sq_ref):
    """Partial per-(n, channel) sum and sum-of-squares over spatial tiles."""
    @pl.when(pl.program_id(2) == 0)
    def _():
        sum_ref[...] = jnp.zeros_like(sum_ref)
        sq_ref[...] = jnp.zeros_like(sq_ref)
    x = x_ref[...].astype(jnp.float32)
    sum_ref[...] += jnp.sum(x, axis=1, keepdims=True)
    sq_ref[...] += jnp.sum(x * x, axis=1, keepdims=True)


def _in_apply_kernel(x_ref, mean_ref, rstd_ref, o_ref):
    """Apply precomputed per-(n, channel) mean/rstd + LeakyReLU(0.2)."""
    x = x_ref[...].astype(jnp.float32)
    y = (x - mean_ref[...]) * rstd_ref[...]
    o_ref[...] = jnp.where(y > 0, y, 0.2 * y).astype(o_ref.dtype)


# ---------------------------------------------------------------------------
# Glue: channel-last im2col + pallas_call wrappers
# ---------------------------------------------------------------------------
def _im2col_nhwc(x, k, stride, pad):
    """x: (N, H, W, C) -> patches (N*OH*OW, KH*KW*C), tap-major / channel-minor."""
    n, h, w, c = x.shape
    xp = jnp.pad(x, ((0, 0), (pad, pad), (pad, pad), (0, 0)))
    oh = (h + 2 * pad - k) // stride + 1
    ow = (w + 2 * pad - k) // stride + 1
    cols = []
    for i in range(k):
        for j in range(k):
            cols.append(xp[:, i:i + stride * oh:stride, j:j + stride * ow:stride, :])
    patches = jnp.stack(cols, axis=3)             # (N, OH, OW, KH*KW, C)
    return patches.reshape(n * oh * ow, k * k * c), oh, ow


def _pallas_conv(x_nhwc, w_oihw, b, *, stride, pad, lrelu, out_dtype):
    """Conv2d(OC<-C, k, stride, pad) [+ LeakyReLU] as a tiled Pallas GEMM.

    NHWC in / NHWC out.  bf16 MXU operands, f32 accumulation & epilogue, output
    cast to `out_dtype` (bf16 for hidden layers, f32 for the final conv).
    """
    n = x_nhwc.shape[0]
    oc, _, k, _ = w_oihw.shape

    patches, oh, ow = _im2col_nhwc(x_nhwc.astype(jnp.bfloat16), k, stride, pad)
    m, kk = patches.shape

    # --- tiling -------------------------------------------------------------
    # Lane-dense OC (pad to 128) so stores are unmasked vst even for OC=64 / 1.
    ocp = _round_up(oc, 128)
    tn = 256 if ocp % 256 == 0 else 128
    assert ocp % tn == 0, (ocp, tn)

    # TM scaled with K to a ~6 MiB bf16 patch tile, chosen as a divisor of
    # round_up(M, 8) (no multi-MB patch pads) and capped so that the M axis
    # has >= 2 tiles whenever possible (megacore balance; OC axis is 1 tile).
    m8 = _round_up(m, 8)
    budget_rows = max(8, ((6 << 20) // (kk * 2)) // 8 * 8)
    cap_rows = min(budget_rows, 4096)
    if m8 >= 16:
        cap_rows = min(cap_rows, max(8, (m8 // 2) // 8 * 8))
    tm = _pick_m_tile(m8, cap_rows)

    if m8 != m:                                   # at most 7 pad rows
        patches = jnp.pad(patches, ((0, m8 - m), (0, 0)))

    # weight (OC, IC, KH, KW) -> (KH, KW, IC, OC) -> (KH*KW*IC, OC): matches the
    # tap-major / channel-minor patch ordering above.
    w2d = w_oihw.transpose(2, 3, 1, 0).reshape(kk, oc)
    b1d = b
    if ocp != oc:
        w2d = jnp.pad(w2d, ((0, 0), (0, ocp - oc)))
        b1d = jnp.pad(b1d, (0, ocp - oc))
    w2d = w2d.astype(jnp.bfloat16)
    b2d = b1d.reshape(1, ocp).astype(jnp.float32)

    # --- VMEM budget & cost estimate ----------------------------------------
    out_bytes = jnp.dtype(out_dtype).itemsize
    dbuf = 2 * (tm * kk * 2 + kk * tn * 2 + tn * 4 + tm * tn * out_bytes)
    dbuf += tm * tn * 4                            # f32 epilogue intermediate
    vmem_limit = _vmem_limit_bytes(dbuf + (8 << 20))
    cost = pl.CostEstimate(
        flops=2 * m8 * kk * ocp,
        transcendentals=0,
        bytes_accessed=m8 * kk * 2 + kk * ocp * 2 + ocp * 4 + m8 * ocp * out_bytes)

    out = pl.pallas_call(
        functools.partial(_conv_mm_kernel, apply_lrelu=lrelu),
        out_shape=jax.ShapeDtypeStruct((m8, ocp), out_dtype),
        grid=(m8 // tm, ocp // tn),
        in_specs=[pl.BlockSpec((tm, kk), lambda i, j: (i, 0)),   # patch tile
                  pl.BlockSpec((kk, tn), lambda i, j: (0, j)),   # weight resident per j
                  pl.BlockSpec((1, tn), lambda i, j: (0, j))],   # bias
        out_specs=pl.BlockSpec((tm, tn), lambda i, j: (i, j)),
        compiler_params=pltpu.CompilerParams(
            dimension_semantics=("parallel", "parallel"),
            vmem_limit_bytes=vmem_limit),
        cost_estimate=cost,
    )(patches, w2d, b2d)

    out = out[:m, :oc]                             # drop M / OC padding
    return out.reshape(n, oh, ow, oc)              # stay NHWC (no transpose)


def _pallas_instnorm_lrelu(x_nhwc, force_ts=None):
    """InstanceNorm2d(affine=False) + LeakyReLU(0.2) over NHWC, channel-last.

    Single-pass (1, S, TC) blocks when they fit the VMEM budget; otherwise a
    spatially-tiled two-pass path (partial-stats kernel + normalize kernel).
    `force_ts` forces the tiled path with the given spatial tile (testing).
    """
    n, h, w, c = x_nhwc.shape
    s = h * w
    dt = x_nhwc.dtype
    in_b = jnp.dtype(dt).itemsize
    x3d = x_nhwc.reshape(n, s, c)                  # channel-last: free reshape
    tc = min(c, 128)
    assert c % tc == 0, (c, tc)

    # double-buffered in+out blocks + f32 working copies for one (1, S, TC) block
    single_bytes = s * tc * (4 * in_b + 8)
    if force_ts is None and single_bytes <= (24 << 20):
        y = pl.pallas_call(
            _instnorm_lrelu_kernel,
            out_shape=jax.ShapeDtypeStruct((n, s, c), dt),
            grid=(n, c // tc),
            in_specs=[pl.BlockSpec((1, s, tc), lambda b, cb: (b, 0, cb))],
            out_specs=pl.BlockSpec((1, s, tc), lambda b, cb: (b, 0, cb)),
            compiler_params=pltpu.CompilerParams(
                dimension_semantics=("parallel", "parallel"),
                vmem_limit_bytes=_vmem_limit_bytes(single_bytes + (4 << 20))),
        )(x3d)
        return y.reshape(n, h, w, c)

    # ---- spatially-tiled two-pass fallback ----------------------------------
    if force_ts is not None:
        ts = force_ts
    elif s % 8 == 0:
        cap_rows = max(8, ((8 << 20) // (tc * (2 * in_b + 4))) // 8 * 8)
        ts = _pick_m_tile(s, cap_rows)
    else:
        ts = s                                     # degenerate: one spatial tile
    assert s % ts == 0, (s, ts)
    st = s // ts
    tiled_bytes = ts * tc * (4 * in_b + 8) + 4 * c * 4
    vmem_limit = _vmem_limit_bytes(tiled_bytes + (4 << 20))

    sums, sqs = pl.pallas_call(
        _in_stats_kernel,
        out_shape=(jax.ShapeDtypeStruct((n, 1, c), jnp.float32),
                   jax.ShapeDtypeStruct((n, 1, c), jnp.float32)),
        grid=(n, c // tc, st),
        in_specs=[pl.BlockSpec((1, ts, tc), lambda b, cb, k: (b, k, cb))],
        out_specs=(pl.BlockSpec((1, 1, tc), lambda b, cb, k: (b, 0, cb)),
                   pl.BlockSpec((1, 1, tc), lambda b, cb, k: (b, 0, cb))),
        compiler_params=pltpu.CompilerParams(
            dimension_semantics=("parallel", "parallel", "arbitrary"),
            vmem_limit_bytes=vmem_limit),
    )(x3d)

    inv_s = jnp.float32(1.0 / s)
    mean = sums * inv_s
    var = jnp.maximum(sqs * inv_s - mean * mean, 0.0)
    rstd = jax.lax.rsqrt(var + 1e-5)

    y = pl.pallas_call(
        _in_apply_kernel,
        out_shape=jax.ShapeDtypeStruct((n, s, c), dt),
        grid=(n, c // tc, st),
        in_specs=[pl.BlockSpec((1, ts, tc), lambda b, cb, k: (b, k, cb)),
                  pl.BlockSpec((1, 1, tc), lambda b, cb, k: (b, 0, cb)),
                  pl.BlockSpec((1, 1, tc), lambda b, cb, k: (b, 0, cb))],
        out_specs=pl.BlockSpec((1, ts, tc), lambda b, cb, k: (b, k, cb)),
        compiler_params=pltpu.CompilerParams(
            dimension_semantics=("parallel", "parallel", "arbitrary"),
            vmem_limit_bytes=vmem_limit),
    )(x3d, mean, rstd)
    return y.reshape(n, h, w, c)


# ---------------------------------------------------------------------------
# Discriminator forward (PatchGAN, DiscoGAN facade)
# ---------------------------------------------------------------------------
def init_params(key, channels):
    keys = jax.random.split(key, 8)

    def conv_init(kw, kb, oc, ic, k):
        return (0.05 * jax.random.normal(kw, (oc, ic, k, k), jnp.float32),
                0.05 * jax.random.normal(kb, (oc,), jnp.float32))

    w1, b1 = conv_init(keys[0], keys[1], 64, channels, 4)
    w2, b2 = conv_init(keys[2], keys[3], 128, 64, 4)
    w3, b3 = conv_init(keys[4], keys[5], 256, 128, 4)
    w4, b4 = conv_init(keys[6], keys[7], 1, 256, 4)
    return {"w1": w1, "b1": b1, "w2": w2, "b2": b2,
            "w3": w3, "b3": b3, "w4": w4, "b4": b4}


def discriminator_forward(img, p):
    # NCHW -> NHWC once at the boundary; everything internal is channel-last
    # bf16 (the final conv output stays f32).
    x = img.transpose(0, 2, 3, 1)
    # block 1: Conv(ch->64, 4, s2, p1) + LeakyReLU   (no normalization)
    x = _pallas_conv(x, p["w1"], p["b1"], stride=2, pad=1, lrelu=True,
                     out_dtype=jnp.bfloat16)
    # block 2: Conv(64->128) + InstanceNorm + LeakyReLU
    x = _pallas_conv(x, p["w2"], p["b2"], stride=2, pad=1, lrelu=False,
                     out_dtype=jnp.bfloat16)
    x = _pallas_instnorm_lrelu(x)
    # block 3: Conv(128->256) + InstanceNorm + LeakyReLU
    x = _pallas_conv(x, p["w3"], p["b3"], stride=2, pad=1, lrelu=False,
                     out_dtype=jnp.bfloat16)
    x = _pallas_instnorm_lrelu(x)
    # nn.ZeroPad2d((left=1, right=0, top=1, bottom=0)) in NHWC
    x = jnp.pad(x, ((0, 0), (1, 0), (1, 0), (0, 0)))
    # final Conv(256->1, 4, s1, p1), no activation, f32 output
    x = _pallas_conv(x, p["w4"], p["b4"], stride=1, pad=1, lrelu=False,
                     out_dtype=jnp.float32)
    return x.transpose(0, 3, 1, 2)                 # NHWC -> NCHW at the boundary


# ---------------------------------------------------------------------------
# Pure-JAX references (for correctness verification)
# ---------------------------------------------------------------------------
def _ref_forward(img, p, mimic_kernel=True):
    """mimic_kernel=True mirrors the kernel's bf16 activations / f32 accumulate
    and single-pass IN statistics; False is the exact PyTorch-f32 semantics."""
    io_dt = jnp.bfloat16 if mimic_kernel else jnp.float32

    def conv(x, w, b, stride, pad):
        y = jax.lax.conv_general_dilated(
            x.astype(io_dt), w.astype(io_dt),
            (stride, stride), [(pad, pad), (pad, pad)],
            dimension_numbers=("NCHW", "OIHW", "NCHW"),
            preferred_element_type=jnp.float32)
        return y + b.reshape(1, -1, 1, 1)

    def lrelu(x):
        return jnp.where(x > 0, x, 0.2 * x)

    def inorm(x):
        xf = x.astype(jnp.float32)
        m = jnp.mean(xf, axis=(2, 3), keepdims=True)
        if mimic_kernel:
            ex2 = jnp.mean(xf * xf, axis=(2, 3), keepdims=True)
            v = jnp.maximum(ex2 - m * m, 0.0)
            return (xf - m) * jax.lax.rsqrt(v + 1e-5)
        v = jnp.mean((xf - m) ** 2, axis=(2, 3), keepdims=True)
        return (xf - m) / jnp.sqrt(v + 1e-5)

    x = lrelu(conv(img, p["w1"], p["b1"], 2, 1)).astype(io_dt)
    x = lrelu(inorm(conv(x, p["w2"], p["b2"], 2, 1).astype(io_dt))).astype(io_dt)
    x = lrelu(inorm(conv(x, p["w3"], p["b3"], 2, 1).astype(io_dt))).astype(io_dt)
    x = jnp.pad(x, ((0, 0), (0, 0), (1, 0), (1, 0)))
    return conv(x, p["w4"], p["b4"], 1, 1)


if __name__ == "__main__":
    key = jax.random.PRNGKey(0)
    k_img, k_par, k_in = jax.random.split(key, 3)

    N, C, H, W = 2, 3, 16, 16                      # small shapes; H, W div by 8
    img = jax.random.normal(k_img, (N, C, H, W), jnp.float32)
    params = init_params(k_par, C)

    fwd = jax.jit(discriminator_forward)
    out = jax.block_until_ready(fwd(img, params))

    # output_shape from the module: (1, H // 8, W // 8)
    assert out.shape == (N, 1, H // 8, W // 8), out.shape
    assert bool(jnp.all(jnp.isfinite(out)))

    # Tight check vs a reference using the same bf16 activations / f32 accum.
    ref_bf16 = jax.block_until_ready(_ref_forward(img, params, mimic_kernel=True))
    assert jnp.allclose(out, ref_bf16, atol=1e-2, rtol=1e-2), \
        float(jnp.max(jnp.abs(out - ref_bf16)))

    # Loose sanity check vs the full-f32 reference (bf16 pipeline tradeoff).
    ref_f32 = jax.block_until_ready(_ref_forward(img, params, mimic_kernel=False))
    assert jnp.allclose(out, ref_f32, atol=3.5e-1, rtol=2e-1), \
        float(jnp.max(jnp.abs(out - ref_f32)))

    # Exercise the spatially-tiled InstanceNorm fallback (v7x large-S path) and
    # check it against the single-pass kernel.
    xin = jax.random.normal(k_in, (2, 8, 8, 128), jnp.float32).astype(jnp.bfloat16)
    y_single = jax.block_until_ready(jax.jit(_pallas_instnorm_lrelu)(xin))
    y_tiled = jax.block_until_ready(
        jax.jit(lambda a: _pallas_instnorm_lrelu(a, force_ts=8))(xin))
    assert jnp.allclose(y_tiled.astype(jnp.float32), y_single.astype(jnp.float32),
                        atol=2e-2, rtol=2e-2)

    print("KERNEL_OK")
</pallas_src>

<mosaic_0001>
module attributes {stable_mosaic.version = 11 : i64} {
  func.func @_conv_mm_kernel(%arg0: i32, %arg1: i32, %arg2: memref<64x48xbf16, #tpu.memory_space<vmem>>, %arg3: memref<48x128xbf16, #tpu.memory_space<vmem>>, %arg4: memref<1x128xf32, #tpu.memory_space<vmem>>, %arg5: memref<64x128xbf16, #tpu.memory_space<vmem>>) attributes {dimension_semantics = [#tpu.dimension_semantics<parallel>, #tpu.dimension_semantics<parallel>], iteration_bounds = array<i64: 2, 1>, scalar_prefetch = 0 : i64, scratch_operands = 0 : i64, tpu.core_type = #tpu.core_type<tc>, window_params = [{transform_indices = @transform_0, window_bounds = array<i64: 64, 48>}, {transform_indices = @transform_1, window_bounds = array<i64: 48, 128>}, {transform_indices = @transform_2, window_bounds = array<i64: 1, 128>}, {transform_indices = @transform_3, window_bounds = array<i64: 64, 128>}]} {
    %c0 = arith.constant 0 : index
    %c0_0 = arith.constant 0 : index
    %0 = vector.load %arg2[%c0, %c0_0] : memref<64x48xbf16, #tpu.memory_space<vmem>>, vector<64x48xbf16>
    %c0_1 = arith.constant 0 : index
    %c0_2 = arith.constant 0 : index
    %1 = vector.load %arg3[%c0_1, %c0_2] : memref<48x128xbf16, #tpu.memory_space<vmem>>, vector<48x128xbf16>
    %cst = arith.constant dense<0.000000e+00> : vector<64x128xf32>
    %2 = tpu.matmul %0, %1, %cst {dimension_numbers = #tpu.dot_dimension_numbers<[1], [0], [0], [1], [0, 0, 1, 1], [], []>} : vector<64x48xbf16>, vector<48x128xbf16>, vector<64x128xf32> -> vector<64x128xf32>
    %c0_3 = arith.constant 0 : index
    %c0_4 = arith.constant 0 : index
    %3 = vector.load %arg4[%c0_3, %c0_4] : memref<1x128xf32, #tpu.memory_space<vmem>>, vector<1x128xf32>
    %4 = vector.broadcast %3 : vector<1x128xf32> to vector<64x128xf32>
    %5 = arith.addf %2, %4 : vector<64x128xf32>
    %cst_5 = arith.constant 0.000000e+00 : f32
    %6 = vector.broadcast %cst_5 : f32 to vector<64x128xf32>
    %7 = arith.cmpf ogt, %5, %6 : vector<64x128xf32>
    %cst_6 = arith.constant 2.000000e-01 : f32
    %8 = vector.broadcast %cst_6 : f32 to vector<64x128xf32>
    %9 = arith.mulf %8, %5 : vector<64x128xf32>
    %10 = arith.select %7, %5, %9 : vector<64x128xi1>, vector<64x128xf32>
    %11 = arith.truncf %10 : vector<64x128xf32> to vector<64x128xbf16>
    %c0_7 = arith.constant 0 : index
    %c0_8 = arith.constant 0 : index
    %12 = vector.load %arg5[%c0_7, %c0_8] : memref<64x128xbf16, #tpu.memory_space<vmem>>, vector<64x128xbf16>
    tpu.vector_store %arg5[%c0_7, %c0_8], %11 {strides = array<i32>} : memref<64x128xbf16, #tpu.memory_space<vmem>>, vector<64x128xbf16>,
    return
  }
  func.func @transform_0(%arg0: i32, %arg1: i32) -> (i32, i32) {
    %c0_i32 = arith.constant 0 : i32
    %c0_i32_0 = arith.constant 0 : i32
    return %arg0, %c0_i32 : i32, i32
  }
  func.func @transform_1(%arg0: i32, %arg1: i32) -> (i32, i32) {
    %c0_i32 = arith.constant 0 : i32
    %c0_i32_0 = arith.constant 0 : i32
    return %c0_i32, %arg1 : i32, i32
  }
  func.func @transform_2(%arg0: i32, %arg1: i32) -> (i32, i32) {
    %c0_i32 = arith.constant 0 : i32
    %c0_i32_0 = arith.constant 0 : i32
    return %c0_i32, %arg1 : i32, i32
  }
  func.func @transform_3(%arg0: i32, %arg1: i32) -> (i32, i32) {
    %c0_i32 = arith.constant 0 : i32
    return %arg0, %arg1 : i32, i32
  }
}

module attributes {stable_mosaic.version = 11 : i64} {
  func.func @_conv_mm_kernel(%arg0: i32, %arg1: i32, %arg2: memref<16x1024xbf16, #tpu.memory_space<vmem>>, %arg3: memref<1024x128xbf16, #tpu.memory_space<vmem>>, %arg4: memref<1x128xf32, #tpu.memory_space<vmem>>, %arg5: memref<16x128xbf16, #tpu.memory_space<vmem>>) attributes {dimension_semantics = [#tpu.dimension_semantics<parallel>, #tpu.dimension_semantics<parallel>], iteration_bounds = array<i64: 2, 1>, scalar_prefetch = 0 : i64, scratch_operands = 0 : i64, tpu.core_type = #tpu.core_type<tc>, window_params = [{transform_indices = @transform_0, window_bounds = array<i64: 16, 1024>}, {transform_indices = @transform_1, window_bounds = array<i64: 1024, 128>}, {transform_indices = @transform_2, window_bounds = array<i64: 1, 128>}, {transform_indices = @transform_3, window_bounds = array<i64: 16, 128>}]} {
    %c0 = arith.constant 0 : index
    %c0_0 = arith.constant 0 : index
    %0 = vector.load %arg2[%c0, %c0_0] : memref<16x1024xbf16, #tpu.memory_space<vmem>>, vector<16x1024xbf16>
    %c0_1 = arith.constant 0 : index
    %c0_2 = arith.constant 0 : index
    %1 = vector.load %arg3[%c0_1, %c0_2] : memref<1024x128xbf16, #tpu.memory_space<vmem>>, vector<1024x128xbf16>
    %cst = arith.constant dense<0.000000e+00> : vector<16x128xf32>
    %2 = tpu.matmul %0, %1, %cst {dimension_numbers = #tpu.dot_dimension_numbers<[1], [0], [0], [1], [0, 0, 1, 1], [], []>} : vector<16x1024xbf16>, vector<1024x128xbf16>, vector<16x128xf32> -> vector<16x128xf32>
    %c0_3 = arith.constant 0 : index
    %c0_4 = arith.constant 0 : index
    %3 = vector.load %arg4[%c0_3, %c0_4] : memref<1x128xf32, #tpu.memory_space<vmem>>, vector<1x128xf32>
    %4 = vector.broadcast %3 : vector<1x128xf32> to vector<16x128xf32>
    %5 = arith.addf %2, %4 : vector<16x128xf32>
    %6 = arith.truncf %5 : vector<16x128xf32> to vector<16x128xbf16>
    %c0_5 = arith.constant 0 : index
    %c0_6 = arith.constant 0 : index
    %7 = vector.load %arg5[%c0_5, %c0_6] : memref<16x128xbf16, #tpu.memory_space<vmem>>, vector<16x128xbf16>
    tpu.vector_store %arg5[%c0_5, %c0_6], %6 {strides = array<i32>} : memref<16x128xbf16, #tpu.memory_space<vmem>>, vector<16x128xbf16>,
    return
  }
  func.func @transform_0(%arg0: i32, %arg1: i32) -> (i32, i32) {
    %c0_i32 = arith.constant 0 : i32
    %c0_i32_0 = arith.constant 0 : i32
    return %arg0, %c0_i32 : i32, i32
  }
  func.func @transform_1(%arg0: i32, %arg1: i32) -> (i32, i32) {
    %c0_i32 = arith.constant 0 : i32
    %c0_i32_0 = arith.constant 0 : i32
    return %c0_i32, %arg1 : i32, i32
  }
  func.func @transform_2(%arg0: i32, %arg1: i32) -> (i32, i32) {
    %c0_i32 = arith.constant 0 : i32
    %c0_i32_0 = arith.constant 0 : i32
    return %c0_i32, %arg1 : i32, i32
  }
  func.func @transform_3(%arg0: i32, %arg1: i32) -> (i32, i32) {
    %c0_i32 = arith.constant 0 : i32
    return %arg0, %arg1 : i32, i32
  }
}

module attributes {stable_mosaic.version = 11 : i64} {
  func.func @_instnorm_lrelu_kernel(%arg0: i32, %arg1: i32, %arg2: memref<1x16x128xbf16, #tpu.memory_space<vmem>>, %arg3: memref<1x16x128xbf16, #tpu.memory_space<vmem>>) attributes {dimension_semantics = [#tpu.dimension_semantics<parallel>, #tpu.dimension_semantics<parallel>], iteration_bounds = array<i64: 2, 1>, scalar_prefetch = 0 : i64, scratch_operands = 0 : i64, tpu.core_type = #tpu.core_type<tc>, window_params = [{transform_indices = @transform_0, window_bounds = array<i64: 1, 16, 128>}, {transform_indices = @transform_1, window_bounds = array<i64: 1, 16, 128>}]} {
    %c0 = arith.constant 0 : index
    %c0_0 = arith.constant 0 : index
    %c0_1 = arith.constant 0 : index
    %0 = vector.load %arg2[%c0, %c0_0, %c0_1] : memref<1x16x128xbf16, #tpu.memory_space<vmem>>, vector<1x16x128xbf16>
    %1 = arith.extf %0 : vector<1x16x128xbf16> to vector<1x16x128xf32>
    %cst = arith.constant dense<0.000000e+00> : vector<1x128xf32>
    %2 = vector.multi_reduction <add>, %1, %cst [1] : vector<1x16x128xf32> to vector<1x128xf32>
    %3 = vector.shape_cast %2 : vector<1x128xf32> to vector<1x1x128xf32>
    %cst_2 = arith.constant 6.250000e-02 : f32
    %4 = vector.broadcast %cst_2 : f32 to vector<1x1x128xf32>
    %5 = arith.mulf %3, %4 : vector<1x1x128xf32>
    %6 = arith.mulf %1, %1 : vector<1x16x128xf32>
    %cst_3 = arith.constant dense<0.000000e+00> : vector<1x128xf32>
    %7 = vector.multi_reduction <add>, %6, %cst_3 [1] : vector<1x16x128xf32> to vector<1x128xf32>
    %8 = vector.shape_cast %7 : vector<1x128xf32> to vector<1x1x128xf32>
    %cst_4 = arith.constant 6.250000e-02 : f32
    %9 = vector.broadcast %cst_4 : f32 to vector<1x1x128xf32>
    %10 = arith.mulf %8, %9 : vector<1x1x128xf32>
    %11 = arith.mulf %5, %5 : vector<1x1x128xf32>
    %12 = arith.subf %10, %11 : vector<1x1x128xf32>
    %cst_5 = arith.constant 0.000000e+00 : f32
    %13 = vector.broadcast %cst_5 : f32 to vector<1x1x128xf32>
    %14 = arith.maximumf %12, %13 : vector<1x1x128xf32>
    %15 = vector.broadcast %5 : vector<1x1x128xf32> to vector<1x16x128xf32>
    %16 = arith.subf %1, %15 : vector<1x16x128xf32>
    %cst_6 = arith.constant 9.99999974E-6 : f32
    %17 = vector.broadcast %cst_6 : f32 to vector<1x1x128xf32>
    %18 = arith.addf %14, %17 : vector<1x1x128xf32>
    %19 = math.rsqrt %18 : vector<1x1x128xf32>
    %20 = vector.broadcast %19 : vector<1x1x128xf32> to vector<1x16x128xf32>
    %21 = arith.mulf %16, %20 : vector<1x16x128xf32>
    %cst_7 = arith.constant 0.000000e+00 : f32
    %22 = vector.broadcast %cst_7 : f32 to vector<1x16x128xf32>
    %23 = arith.cmpf ogt, %21, %22 : vector<1x16x128xf32>
    %cst_8 = arith.constant 2.000000e-01 : f32
    %24 = vector.broadcast %cst_8 : f32 to vector<1x16x128xf32>
    %25 = arith.mulf %24, %21 : vector<1x16x128xf32>
    %26 = arith.select %23, %21, %25 : vector<1x16x128xi1>, vector<1x16x128xf32>
    %27 = arith.truncf %26 : vector<1x16x128xf32> to vector<1x16x128xbf16>
    %c0_9 = arith.constant 0 : index
    %c0_10 = arith.constant 0 : index
    %c0_11 = arith.constant 0 : index
    %28 = vector.load %arg3[%c0_9, %c0_10, %c0_11] : memref<1x16x128xbf16, #tpu.memory_space<vmem>>, vector<1x16x128xbf16>
    tpu.vector_store %arg3[%c0_9, %c0_10, %c0_11], %27 {strides = array<i32>} : memref<1x16x128xbf16, #tpu.memory_space<vmem>>, vector<1x16x128xbf16>,
    return
  }
  func.func @transform_0(%arg0: i32, %arg1: i32) -> (i32, i32, i32) {
    %c0_i32 = arith.constant 0 : i32
    %c0_i32_0 = arith.constant 0 : i32
    return %arg0, %c0_i32, %arg1 : i32, i32, i32
  }
  func.func @transform_1(%arg0: i32, %arg1: i32) -> (i32, i32, i32) {
    %c0_i32 = arith.constant 0 : i32
    %c0_i32_0 = arith.constant 0 : i32
    return %arg0, %c0_i32, %arg1 : i32, i32, i32
  }
}

module attributes {stable_mosaic.version = 11 : i64} {
  func.func @_instnorm_lrelu_kernel(%arg0: i32, %arg1: i32, %arg2: memref<1x4x128xbf16, #tpu.memory_space<vmem>>, %arg3: memref<1x4x128xbf16, #tpu.memory_space<vmem>>) attributes {dimension_semantics = [#tpu.dimension_semantics<parallel>, #tpu.dimension_semantics<parallel>], iteration_bounds = array<i64: 2, 2>, scalar_prefetch = 0 : i64, scratch_operands = 0 : i64, tpu.core_type = #tpu.core_type<tc>, window_params = [{transform_indices = @transform_0, window_bounds = array<i64: 1, 4, 128>}, {transform_indices = @transform_1, window_bounds = array<i64: 1, 4, 128>}]} {
    %c0 = arith.constant 0 : index
    %c0_0 = arith.constant 0 : index
    %c0_1 = arith.constant 0 : index
    %0 = vector.load %arg2[%c0, %c0_0, %c0_1] : memref<1x4x128xbf16, #tpu.memory_space<vmem>>, vector<1x4x128xbf16>
    %1 = arith.extf %0 : vector<1x4x128xbf16> to vector<1x4x128xf32>
    %cst = arith.constant dense<0.000000e+00> : vector<1x128xf32>
    %2 = vector.multi_reduction <add>, %1, %cst [1] : vector<1x4x128xf32> to vector<1x128xf32>
    %3 = vector.shape_cast %2 : vector<1x128xf32> to vector<1x1x128xf32>
    %cst_2 = arith.constant 2.500000e-01 : f32
    %4 = vector.broadcast %cst_2 : f32 to vector<1x1x128xf32>
    %5 = arith.mulf %3, %4 : vector<1x1x128xf32>
    %6 = arith.mulf %1, %1 : vector<1x4x128xf32>
    %cst_3 = arith.constant dense<0.000000e+00> : vector<1x128xf32>
    %7 = vector.multi_reduction <add>, %6, %cst_3 [1] : vector<1x4x128xf32> to vector<1x128xf32>
    %8 = vector.shape_cast %7 : vector<1x128xf32> to vector<1x1x128xf32>
    %cst_4 = arith.constant 2.500000e-01 : f32
    %9 = vector.broadcast %cst_4 : f32 to vector<1x1x128xf32>
    %10 = arith.mulf %8, %9 : vector<1x1x128xf32>
    %11 = arith.mulf %5, %5 : vector<1x1x128xf32>
    %12 = arith.subf %10, %11 : vector<1x1x128xf32>
    %cst_5 = arith.constant 0.000000e+00 : f32
    %13 = vector.broadcast %cst_5 : f32 to vector<1x1x128xf32>
    %14 = arith.maximumf %12, %13 : vector<1x1x128xf32>
    %15 = vector.broadcast %5 : vector<1x1x128xf32> to vector<1x4x128xf32>
    %16 = arith.subf %1, %15 : vector<1x4x128xf32>
    %cst_6 = arith.constant 9.99999974E-6 : f32
    %17 = vector.broadcast %cst_6 : f32 to vector<1x1x128xf32>
    %18 = arith.addf %14, %17 : vector<1x1x128xf32>
    %19 = math.rsqrt %18 : vector<1x1x128xf32>
    %20 = vector.broadcast %19 : vector<1x1x128xf32> to vector<1x4x128xf32>
    %21 = arith.mulf %16, %20 : vector<1x4x128xf32>
    %cst_7 = arith.constant 0.000000e+00 : f32
    %22 = vector.broadcast %cst_7 : f32 to vector<1x4x128xf32>
    %23 = arith.cmpf ogt, %21, %22 : vector<1x4x128xf32>
    %cst_8 = arith.constant 2.000000e-01 : f32
    %24 = vector.broadcast %cst_8 : f32 to vector<1x4x128xf32>
    %25 = arith.mulf %24, %21 : vector<1x4x128xf32>
    %26 = arith.select %23, %21, %25 : vector<1x4x128xi1>, vector<1x4x128xf32>
    %27 = arith.truncf %26 : vector<1x4x128xf32> to vector<1x4x128xbf16>
    %c0_9 = arith.constant 0 : index
    %c0_10 = arith.constant 0 : index
    %c0_11 = arith.constant 0 : index
    %28 = vector.load %arg3[%c0_9, %c0_10, %c0_11] : memref<1x4x128xbf16, #tpu.memory_space<vmem>>, vector<1x4x128xbf16>
    tpu.vector_store %arg3[%c0_9, %c0_10, %c0_11], %27 {strides = array<i32>} : memref<1x4x128xbf16, #tpu.memory_space<vmem>>, vector<1x4x128xbf16>,
    return
  }
  func.func @transform_0(%arg0: i32, %arg1: i32) -> (i32, i32, i32) {
    %c0_i32 = arith.constant 0 : i32
    %c0_i32_0 = arith.constant 0 : i32
    return %arg0, %c0_i32, %arg1 : i32, i32, i32
  }
  func.func @transform_1(%arg0: i32, %arg1: i32) -> (i32, i32, i32) {
    %c0_i32 = arith.constant 0 : i32
    %c0_i32_0 = arith.constant 0 : i32
    return %arg0, %c0_i32, %arg1 : i32, i32, i32
  }
}

module attributes {stable_mosaic.version = 11 : i64} {
  func.func @_conv_mm_kernel(%arg0: i32, %arg1: i32, %arg2: memref<8x2048xbf16, #tpu.memory_space<vmem>>, %arg3: memref<2048x256xbf16, #tpu.memory_space<vmem>>, %arg4: memref<1x256xf32, #tpu.memory_space<vmem>>, %arg5: memref<8x256xbf16, #tpu.memory_space<vmem>>) attributes {dimension_semantics = [#tpu.dimension_semantics<parallel>, #tpu.dimension_semantics<parallel>], iteration_bounds = array<i64: 1, 1>, scalar_prefetch = 0 : i64, scratch_operands = 0 : i64, tpu.core_type = #tpu.core_type<tc>, window_params = [{transform_indices = @transform_0, window_bounds = array<i64: 8, 2048>}, {transform_indices = @transform_1, window_bounds = array<i64: 2048, 256>}, {transform_indices = @transform_2, window_bounds = array<i64: 1, 256>}, {transform_indices = @transform_3, window_bounds = array<i64: 8, 256>}]} {
    %c0 = arith.constant 0 : index
    %c0_0 = arith.constant 0 : index
    %0 = vector.load %arg2[%c0, %c0_0] : memref<8x2048xbf16, #tpu.memory_space<vmem>>, vector<8x2048xbf16>
    %c0_1 = arith.constant 0 : index
    %c0_2 = arith.constant 0 : index
    %1 = vector.load %arg3[%c0_1, %c0_2] : memref<2048x256xbf16, #tpu.memory_space<vmem>>, vector<2048x256xbf16>
    %cst = arith.constant dense<0.000000e+00> : vector<8x256xf32>
    %2 = tpu.matmul %0, %1, %cst {dimension_numbers = #tpu.dot_dimension_numbers<[1], [0], [0], [1], [0, 0, 1, 1], [], []>} : vector<8x2048xbf16>, vector<2048x256xbf16>, vector<8x256xf32> -> vector<8x256xf32>
    %c0_3 = arith.constant 0 : index
    %c0_4 = arith.constant 0 : index
    %3 = vector.load %arg4[%c0_3, %c0_4] : memref<1x256xf32, #tpu.memory_space<vmem>>, vector<1x256xf32>
    %4 = vector.broadcast %3 : vector<1x256xf32> to vector<8x256xf32>
    %5 = arith.addf %2, %4 : vector<8x256xf32>
    %6 = arith.truncf %5 : vector<8x256xf32> to vector<8x256xbf16>
    %c0_5 = arith.constant 0 : index
    %c0_6 = arith.constant 0 : index
    %7 = vector.load %arg5[%c0_5, %c0_6] : memref<8x256xbf16, #tpu.memory_space<vmem>>, vector<8x256xbf16>
    tpu.vector_store %arg5[%c0_5, %c0_6], %6 {strides = array<i32>} : memref<8x256xbf16, #tpu.memory_space<vmem>>, vector<8x256xbf16>,
    return
  }
  func.func @transform_0(%arg0: i32, %arg1: i32) -> (i32, i32) {
    %c0_i32 = arith.constant 0 : i32
    %c0_i32_0 = arith.constant 0 : i32
    return %arg0, %c0_i32 : i32, i32
  }
  func.func @transform_1(%arg0: i32, %arg1: i32) -> (i32, i32) {
    %c0_i32 = arith.constant 0 : i32
    %c0_i32_0 = arith.constant 0 : i32
    return %c0_i32, %arg1 : i32, i32
  }
  func.func @transform_2(%arg0: i32, %arg1: i32) -> (i32, i32) {
    %c0_i32 = arith.constant 0 : i32
    %c0_i32_0 = arith.constant 0 : i32
    return %c0_i32, %arg1 : i32, i32
  }
  func.func @transform_3(%arg0: i32, %arg1: i32) -> (i32, i32) {
    %c0_i32 = arith.constant 0 : i32
    return %arg0, %arg1 : i32, i32
  }
}

module attributes {stable_mosaic.version = 11 : i64} {
  func.func @_conv_mm_kernel(%arg0: i32, %arg1: i32, %arg2: memref<8x4096xbf16, #tpu.memory_space<vmem>>, %arg3: memref<4096x128xbf16, #tpu.memory_space<vmem>>, %arg4: memref<1x128xf32, #tpu.memory_space<vmem>>, %arg5: memref<8x128xf32, #tpu.memory_space<vmem>>) attributes {dimension_semantics = [#tpu.dimension_semantics<parallel>, #tpu.dimension_semantics<parallel>], iteration_bounds = array<i64: 1, 1>, scalar_prefetch = 0 : i64, scratch_operands = 0 : i64, tpu.core_type = #tpu.core_type<tc>, window_params = [{transform_indices = @transform_0, window_bounds = array<i64: 8, 4096>}, {transform_indices = @transform_1, window_bounds = array<i64: 4096, 128>}, {transform_indices = @transform_2, window_bounds = array<i64: 1, 128>}, {transform_indices = @transform_3, window_bounds = array<i64: 8, 128>}]} {
    %c0 = arith.constant 0 : index
    %c0_0 = arith.constant 0 : index
    %0 = vector.load %arg2[%c0, %c0_0] : memref<8x4096xbf16, #tpu.memory_space<vmem>>, vector<8x4096xbf16>
    %c0_1 = arith.constant 0 : index
    %c0_2 = arith.constant 0 : index
    %1 = vector.load %arg3[%c0_1, %c0_2] : memref<4096x128xbf16, #tpu.memory_space<vmem>>, vector<4096x128xbf16>
    %cst = arith.constant dense<0.000000e+00> : vector<8x128xf32>
    %2 = tpu.matmul %0, %1, %cst {dimension_numbers = #tpu.dot_dimension_numbers<[1], [0], [0], [1], [0, 0, 1, 1], [], []>} : vector<8x4096xbf16>, vector<4096x128xbf16>, vector<8x128xf32> -> vector<8x128xf32>
    %c0_3 = arith.constant 0 : index
    %c0_4 = arith.constant 0 : index
    %3 = vector.load %arg4[%c0_3, %c0_4] : memref<1x128xf32, #tpu.memory_space<vmem>>, vector<1x128xf32>
    %4 = vector.broadcast %3 : vector<1x128xf32> to vector<8x128xf32>
    %5 = arith.addf %2, %4 : vector<8x128xf32>
    %c0_5 = arith.constant 0 : index
    %c0_6 = arith.constant 0 : index
    %6 = vector.load %arg5[%c0_5, %c0_6] : memref<8x128xf32, #tpu.memory_space<vmem>>, vector<8x128xf32>
    tpu.vector_store %arg5[%c0_5, %c0_6], %5 {strides = array<i32>} : memref<8x128xf32, #tpu.memory_space<vmem>>, vector<8x128xf32>,
    return
  }
  func.func @transform_0(%arg0: i32, %arg1: i32) -> (i32, i32) {
    %c0_i32 = arith.constant 0 : i32
    %c0_i32_0 = arith.constant 0 : i32
    return %arg0, %c0_i32 : i32, i32
  }
  func.func @transform_1(%arg0: i32, %arg1: i32) -> (i32, i32) {
    %c0_i32 = arith.constant 0 : i32
    %c0_i32_0 = arith.constant 0 : i32
    return %c0_i32, %arg1 : i32, i32
  }
  func.func @transform_2(%arg0: i32, %arg1: i32) -> (i32, i32) {
    %c0_i32 = arith.constant 0 : i32
    %c0_i32_0 = arith.constant 0 : i32
    return %c0_i32, %arg1 : i32, i32
  }
  func.func @transform_3(%arg0: i32, %arg1: i32) -> (i32, i32) {
    %c0_i32 = arith.constant 0 : i32
    return %arg0, %arg1 : i32, i32
  }
}

</mosaic_0001>

<bundles_post_ra>
// kernel: discriminator_forward.6
= control target key start
LH: loop header
LB: loop body
LE: loop exit
PB: predicated region body
PF: predicated region fallthrough
CT: control target
= control target key end

     0   :  { %s695_s12 = smov 0   ;;  %s697_s13 = smov 0   ;;  %s749_s0 = inlined_call_operand.vmem [shape: bf16[128,48], index: 0, kind: input, shape index: {}]   ;;  %s750_s1 = inlined_call_operand.vmem [shape: bf16[48,128], index: 1, kind: input, shape index: {}]   ;;  %s751_s2 = inlined_call_operand.vmem [shape: f32[1,128], index: 2, kind: input, shape index: {}]   ;;  %s752_s3 = inlined_call_operand.vmem [shape: bf16[128,128], index: 3, kind: output, shape index: {}]  }
   0x1   :  { %s699_s14 = smov 0  }
   0x2 LB: > { %s25_s15 = sadd.s32 1, %s669_s13  ;;  %p535_p0 = scmp.ge.s32.totalorder %s673_s14, 1  ;;  %s673_s14 = sphi %s699_s14, %s13_s14   ;;  %s669_s13 = sphi %s697_s13, %s754_s13   ;;  %s665_s12 = sphi %s695_s12, %s753_s12  }
   0x3   : > { %p27_p1 = scmp.ge.s32.totalorder %s25_s15, 2  ;;  %p169_p2 = scmp.lt.s32.totalorder %s673_s14, 3 }
   0x5   : > { %s756_s15 = smov (%p27_p1, %s25_s15), 0  ;;  %p170_p3 = pnand %p535_p0, %p169_p2 }
   0x6   : > { %v644_v0 = vld [vmem:[%s750_s1] sm:$0xff] (!%p170_p3)   ;;  %s536_s18 = sshll.u32 (!%p170_p3), %s665_s12, 3  ;;  %v645_v1 = vld [vmem:[%s750_s1 + $0x8] sm:$0xff] (!%p170_p3)   ;;  %v646_v2 = vld [vmem:[%s750_s1 + $0x10] sm:$0xff] (!%p170_p3)   ;;  %vm285_vm0 = vcmask (!%p170_p3), 392192  }
   0x7   : > { %173 = sbr.rel (%p170_p3) target bundleno = 244 (0xf4), region = 32  ;;  %p204_p4 = scmp.lt.s32.totalorder (!%p170_p3), %s536_s18, 15  ;;  %600 = vmatprep.subr.bf16.mxu0 (!%p170_p3), %v644_v0  ;;  %614 = vmatprep.subr.bf16.mxu1 (!%p170_p3), %v644_v0  ;;  %v540_v7 = vld [vmem:[%s751_s2] ss:$0 sm:$0xff] (!%p170_p3) }
   0x8   : > { %601 = vmatpush3.bf16.msra.mxu0 (!%p170_p3), %v644_v0  ;;  %617 = vmatpush3.bf16.msra.mxu1 (!%p170_p3), %v644_v0 }
   0x9   : > { %602 = vmatprep.subr.bf16.mxu0 (!%p170_p3), %v645_v1  ;;  %615 = vmatprep.subr.bf16.mxu1 (!%p170_p3), %v645_v1 }
   0xc   : > { %603 = vmatpush3.bf16.msra.mxu0 (!%p170_p3), %v645_v1  ;;  %618 = vmatpush3.bf16.msra.mxu1 (!%p170_p3), %v645_v1 }
   0xd   : > { %604 = vmatprep.subr.bf16.mxu0 (!%p170_p3), %v646_v2  ;;  %616 = vmatprep.subr.bf16.mxu1 (!%p170_p3), %v646_v2 }
   0xe   : > { %s758_s18 = smov (!%p204_p4, %s536_s18), 15 }
   0xf   : > { %s537_s23 = sshll.u32 %s758_s18, 2 }
  0x10   : > { %s207_s26 = scalar_lea.vmem %s749_s0, %s537_s23  ;;  %605 = vmatpush3.bf16.msra.mxu0 %v646_v2  ;;  %619 = vmatpush3.bf16.msra.mxu1 %v646_v2  ;;  %s223_s4 = scalar_lea.vmem %s752_s3, %s537_s23 }
  0x11   : > { %v647_v3 = vld [vmem:[%s207_s26] sm:$0xff]   ;;  %v648_v4 = vld [vmem:[%s207_s26 + $0x10] sm:$0xff]   ;;  %v649_v5 = vld [vmem:[%s207_s26 + $0x8] sm:$0xff]  }
  0x12   : > { %606 = vmatprep.mubr.msk.bf16.mxu0 %vm285_vm0, %v647_v3  ;;  %610 = vmatprep.mubr.msk.bf16.mxu1 %vm285_vm0, %v648_v4  ;;  %v650_v6 = vld [vmem:[%s207_s26 + $0x18] sm:$0xff]  }
  0x13   : > { %607 = vmatmul.mubr.msk.bf16.vlgmr.msra.gmra.mrb[0].mxu0 %vm285_vm0, %v649_v5  ;;  %611 = vmatmul.mubr.msk.bf16.vlgmr.msra.gmra.mrb[0].mxu1 %vm285_vm0, %v650_v6 }
  0xe6   : > { %v608_v8 = vpop.f32.mrb[0].mxu0  ;;  %v612_v9 = vpop.f32.mrb[0].mxu1 }
  0xe7   : > { %v341_v10 = vadd.f32 %v608_v8, %v540_v7  ;;  %v357_v11 = vadd.f32 %v612_v9, %v540_v7  ;;  %v332_v12 = vpop.f32.mrb[1].mxu0  ;;  %v348_v13 = vpop.f32.mrb[1].mxu1 }
  0xe8   : > { %v333_v14 = vadd.f32 %v540_v7, %v332_v12  ;;  %v349_v15 = vadd.f32 %v540_v7, %v348_v13  ;;  %v609_v16 = vpop.f32.mrb[2].mxu0  ;;  %v613_v17 = vpop.f32.mrb[2].mxu1 }
  0xe9   : > { %vm365_vm1 = vcmp.gt.f32.partialorder %v341_v10, 0.0  ;;  %v373_v18 = vmul.f32 0.2, %v341_v10  ;;  %vm369_vm2 = vcmp.gt.f32.partialorder %v357_v11, 0.0  ;;  %v377_v19 = vmul.f32 0.2, %v357_v11 }
  0xea   : > { %vm363_vm3 = vcmp.gt.f32.partialorder %v333_v14, 0.0  ;;  %v371_v20 = vmul.f32 0.2, %v333_v14  ;;  %vm367_vm4 = vcmp.gt.f32.partialorder %v349_v15, 0.0  ;;  %v375_v21 = vmul.f32 0.2, %v349_v15 }
  0xeb   : > { %v344_v22 = vadd.f32 %v609_v16, %v540_v7  ;;  %v360_v23 = vadd.f32 %v613_v17, %v540_v7  ;;  %v335_v24 = vpop.f32.mrb[3].mxu0  ;;  %v351_v25 = vpop.f32.mrb[3].mxu1  ;;  %v381_v26 = vsel %vm365_vm1, %v341_v10, %v373_v18  ;;  %v385_v27 = vsel %vm369_vm2, %v357_v11, %v377_v19 }
  0xec   : > { %v336_v28 = vadd.f32 %v540_v7, %v335_v24  ;;  %v352_v29 = vadd.f32 %v540_v7, %v351_v25  ;;  %v379_v34 = vsel %vm363_vm3, %v333_v14, %v371_v20  ;;  %v383_v35 = vsel %vm367_vm4, %v349_v15, %v375_v21 }
  0xed   : > { %vm366_vm5 = vcmp.gt.f32.partialorder %v344_v22, 0.0  ;;  %v374_v30 = vmul.f32 0.2, %v344_v22  ;;  %vm370_vm6 = vcmp.gt.f32.partialorder %v360_v23, 0.0  ;;  %v378_v31 = vmul.f32 0.2, %v360_v23 }
  0xee   : > { %vm364_vm7 = vcmp.gt.f32.partialorder %v336_v28, 0.0  ;;  %v372_v32 = vmul.f32 0.2, %v336_v28  ;;  %vm368_vm8 = vcmp.gt.f32.partialorder %v352_v29, 0.0  ;;  %v376_v33 = vmul.f32 0.2, %v352_v29 }
  0xef   : > { %v382_v36 = vsel %vm366_vm5, %v344_v22, %v374_v30  ;;  %v386_v37 = vsel %vm370_vm6, %v360_v23, %v378_v31 }
  0xf0   : > { %v578_v38 = vpack.c.bf16 %v382_v36, %v381_v26  ;;  %v588_v39 = vpack.c.bf16 %v386_v37, %v385_v27  ;;  %v380_v40 = vsel %vm364_vm7, %v336_v28, %v372_v32  ;;  %v384_v41 = vsel %vm368_vm8, %v352_v29, %v376_v33 }
  0xf1   : > { %v573_v42 = vpack.c.bf16 %v380_v40, %v379_v34  ;;  %v583_v43 = vpack.c.bf16 %v384_v41, %v383_v35 }
  0xf2   : > { %590 = vst [vmem:[%s223_s4 + $0x8] sm:$0xff] %v578_v38   ;;  %592 = vst [vmem:[%s223_s4 + $0x18] sm:$0xff] %v588_v39  }
  0xf3   : > { %574 = vst [vmem:[%s223_s4] sm:$0xff] %v573_v42   ;;  %591 = vst [vmem:[%s223_s4 + $0x10] sm:$0xff] %v583_v43  }
  0xf4 PF: > { %s13_s14 = sadd.s32 1, %s673_s14   ;;  %s753_s12 = smov %s669_s13 }
  0xf5   : > { %p10_p5 = scmp.ge.s32.totalorder %s13_s14, 4   ;;  %s754_s13 = smov %s756_s15 }
  0xf7   :  { %12 = sbr.rel (!%p10_p5) target bundleno = 2 (0x2), region = 68 }

// kernel: discriminator_forward.8
= control target key start
LH: loop header
LB: loop body
LE: loop exit
PB: predicated region body
PF: predicated region fallthrough
CT: control target
= control target key end

     0   :  { %s364_s6 = smov 0   ;;  %s366_s7 = smov 0   ;;  %s404_s0 = inlined_call_operand.vmem [shape: bf16[2,16,128], index: 0, kind: input, shape index: {}]   ;;  %s405_s1 = inlined_call_operand.vmem [shape: bf16[2,16,128], index: 1, kind: output, shape index: {}]  }
   0x1   :  { %s368_s8 = smov 0  }
   0x2 LB: > { %s23_s9 = sadd.s32 1, %s348_s7  ;;  %p282_p0 = scmp.ge.s32.totalorder %s352_s8, 1  ;;  %s352_s8 = sphi %s368_s8, %s11_s8   ;;  %s348_s7 = sphi %s366_s7, %s407_s7   ;;  %s344_s6 = sphi %s364_s6, %s406_s6  }
   0x3   : > { %p25_p1 = scmp.ge.s32.totalorder %s23_s9, 2  ;;  %p106_p2 = scmp.lt.s32.totalorder %s352_s8, 3 }
   0x5   : > { %s409_s9 = smov (%p25_p1, %s23_s9), 0  ;;  %p107_p3 = pnand %p282_p0, %p106_p2 }
   0x6   : > { %p132_p4 = scmp.lt.s32.totalorder (!%p107_p3), %s344_s6, 1 }
   0x7   : > { %110 = sbr.rel (%p107_p3) target bundleno = 63 (0x3f), region = 24 }
   0xe   : > { %s411_s6 = smov (!%p132_p4, %s344_s6), 1 }
   0xf   : > { %s291_s10 = sshll.u32 %s411_s6, 3 }
  0x10   : > { %s139_s13 = scalar_lea.vmem %s404_s0, %s291_s10  ;;  %s147_s16 = scalar_lea.vmem %s405_s1, %s291_s10 }
  0x11   : > { %v296_v0 = vld [vmem:[%s139_s13] sm:$0xff]  }
  0x12   : > { %v297_v1 = vunpack.c.l.bf16 %v296_v0  ;;  %v298_v2 = vunpack.c.h.bf16 %v296_v0 }
  0x14   : > { %v152_v3 = vadd.f32 %v298_v2, %v297_v1  ;;  %v160_v4 = vmul.f32 %v297_v1, %v297_v1  ;;  %v161_v5 = vmul.f32 %v298_v2, %v298_v2 }
  0x16   : > { %v153_v6 = vrot.slane %v152_v3, 4  ;;  %v162_v7 = vadd.f32 %v161_v5, %v160_v4 }
  0x18   : > { %v154_v8 = vadd.f32 %v153_v6, %v152_v3  ;;  %v163_v9 = vrot.slane %v162_v7, 4 }
  0x1a   : > { %v155_v10 = vrot.slane %v154_v8, 2  ;;  %v164_v11 = vadd.f32 %v163_v9, %v162_v7 }
  0x1c   : > { %v156_v12 = vadd.f32 %v155_v10, %v154_v8  ;;  %v165_v13 = vrot.slane %v164_v11, 2 }
  0x1e   : > { %v157_v14 = vrot.slane %v156_v12, 1  ;;  %v166_v15 = vadd.f32 %v165_v13, %v164_v11 }
  0x20   : > { %v158_v16 = vadd.f32 %v157_v14, %v156_v12  ;;  %v167_v17 = vrot.slane %v166_v15, 1 }
  0x22   : > { %v159_v18 = vmul.f32 0.0625, %v158_v16  ;;  %v168_v19 = vadd.f32 %v167_v17, %v166_v15 }
  0x24   : > { %v169_v20 = vmul.f32 0.0625, %v168_v19  ;;  %v170_v21 = vmul.f32 %v159_v18, %v159_v18  ;;  %v173_v25 = vsub.f32 %v297_v1, %v159_v18  ;;  %v174_v26 = vsub.f32 %v298_v2, %v159_v18 }
  0x26   : > { %v171_v22 = vsub.f32 %v169_v20, %v170_v21 }
  0x28   : > { %v172_v23 = vmax.f32 %v171_v22, 0.0 }
  0x2a   : > { %v175_v24 = vadd.f32 1e-05, %v172_v23 }
  0x2c   : > { %328 = vrsqrt.f32 %v175_v24 }
  0x36   : > { %v329_v27 = vpop.eup %328 }
  0x37   : > { %v177_v28 = vmul.f32 %v329_v27, %v173_v25  ;;  %v178_v29 = vmul.f32 %v329_v27, %v174_v26 }
  0x39   : > { %vm179_vm0 = vcmp.gt.f32.partialorder %v177_v28, 0.0  ;;  %vm180_vm1 = vcmp.gt.f32.partialorder %v178_v29, 0.0  ;;  %v181_v30 = vmul.f32 0.2, %v177_v28  ;;  %v182_v31 = vmul.f32 0.2, %v178_v29 }
  0x3b   : > { %v183_v32 = vsel %vm179_vm0, %v177_v28, %v181_v30  ;;  %v184_v33 = vsel %vm180_vm1, %v178_v29, %v182_v31 }
  0x3c   : > { %v302_v34 = vpack.c.bf16 %v184_v33, %v183_v32 }
  0x3e   : > { %303 = vst [vmem:[%s147_s16] sm:$0xff] %v302_v34  }
  0x3f PF: > { %s11_s8 = sadd.s32 1, %s352_s8   ;;  %s406_s6 = smov %s348_s7 }
  0x40   : > { %p8_p5 = scmp.ge.s32.totalorder %s11_s8, 4   ;;  %s407_s7 = smov %s409_s9 }
  0x42   :  { %10 = sbr.rel (!%p8_p5) target bundleno = 2 (0x2), region = 54 }

// kernel: discriminator_forward.7
= control target key start
LH: loop header
LB: loop body
LE: loop exit
PB: predicated region body
PF: predicated region fallthrough
CT: control target
= control target key end

     0   :  { %s1389_s12 = smov 0   ;;  %s1391_s13 = smov 0   ;;  %s1634_s0 = inlined_call_operand.vmem [shape: bf16[32,1024], index: 0, kind: input, shape index: {}]   ;;  %s1635_s1 = inlined_call_operand.vmem [shape: bf16[1024,128], index: 1, kind: input, shape index: {}]   ;;  %s1636_s2 = inlined_call_operand.vmem [shape: f32[1,128], index: 2, kind: input, shape index: {}]   ;;  %s1637_s3 = inlined_call_operand.vmem [shape: bf16[32,128], index: 3, kind: output, shape index: {}]  }
   0x1   :  { %s1393_s14 = smov 0  }
   0x2 LB: > { %s25_s15 = sadd.s32 1, %s1363_s13  ;;  %p1078_p0 = scmp.ge.s32.totalorder %s1367_s14, 1  ;;  %s1367_s14 = sphi %s1393_s14, %s13_s14   ;;  %s1363_s13 = sphi %s1391_s13, %s1639_s13   ;;  %s1359_s12 = sphi %s1389_s12, %s1638_s12  }
   0x3   : > { %p27_p1 = scmp.ge.s32.totalorder %s25_s15, 2  ;;  %p170_p2 = scmp.lt.s32.totalorder %s1367_s14, 3 }
   0x5   : > { %s1641_s15 = smov (%p27_p1, %s25_s15), 0  ;;  %p171_p3 = pnand %p1078_p0, %p170_p2 }
   0x6   : > { %v1281_v0 = vld [vmem:[%s1635_s1 + $0x40] sm:$0xff] (!%p171_p3)   ;;  %v1285_v4 = vld [vmem:[%s1635_s1 + $0x48] sm:$0xff] (!%p171_p3)   ;;  %v1289_v8 = vld [vmem:[%s1635_s1 + $0x50] sm:$0xff] (!%p171_p3)   ;;  %s1079_s25 = sshll.u32 (!%p171_p3), %s1359_s12, 1 }
   0x7   : > { %174 = sbr.rel (%p171_p3) target bundleno = 296 (0x128), region = 32  ;;  %v1282_v1 = vld [vmem:[%s1635_s1 + $0xc0] sm:$0xff] (!%p171_p3)   ;;  %1169 = vmatprep.subr.bf16.mxu0 (!%p171_p3), %v1281_v0  ;;  %v1286_v5 = vld [vmem:[%s1635_s1 + $0xc8] sm:$0xff] (!%p171_p3)   ;;  %v1290_v9 = vld [vmem:[%s1635_s1 + $0xd0] sm:$0xff] (!%p171_p3)   ;;  %p206_p4 = scmp.lt.s32.totalorder (!%p171_p3), %s1079_s25, 3 }
   0x8   : > { %v1283_v2 = vld [vmem:[%s1635_s1] sm:$0xff] (!%p171_p3)   ;;  %1191 = vmatprep.subr.bf16.mxu1 (!%p171_p3), %v1282_v1  ;;  %v1287_v6 = vld [vmem:[%s1635_s1 + $0x8] sm:$0xff] (!%p171_p3)   ;;  %v1291_v10 = vld [vmem:[%s1635_s1 + $0x10] sm:$0xff] (!%p171_p3)  }
   0x9   : > { %v1284_v3 = vld [vmem:[%s1635_s1 + $0x80] sm:$0xff] (!%p171_p3)   ;;  %1170 = vmatpush3.bf16.msra.mxu0 (!%p171_p3), %v1283_v2  ;;  %v1288_v7 = vld [vmem:[%s1635_s1 + $0x88] sm:$0xff] (!%p171_p3)   ;;  %v1292_v11 = vld [vmem:[%s1635_s1 + $0x90] sm:$0xff] (!%p171_p3)  }
   0xa   : > { %1192 = vmatpush3.bf16.msra.mxu1 (!%p171_p3), %v1284_v3  ;;  %1171 = vmatprep.subr.bf16.mxu0 (!%p171_p3), %v1285_v4  ;;  %v1293_v12 = vld [vmem:[%s1635_s1 + $0x58] sm:$0xff] (!%p171_p3)   ;;  %v1297_v16 = vld [vmem:[%s1635_s1 + $0x60] sm:$0xff] (!%p171_p3)   ;;  %v1301_v20 = vld [vmem:[%s1635_s1 + $0x68] sm:$0xff] (!%p171_p3)  }
   0xb   : > { %1193 = vmatprep.subr.bf16.mxu1 (!%p171_p3), %v1286_v5  ;;  %v1294_v13 = vld [vmem:[%s1635_s1 + $0xd8] sm:$0xff] (!%p171_p3)   ;;  %v1298_v17 = vld [vmem:[%s1635_s1 + $0xe0] sm:$0xff] (!%p171_p3)   ;;  %v1302_v21 = vld [vmem:[%s1635_s1 + $0xe8] sm:$0xff] (!%p171_p3)  }
   0xc   : > { %v1295_v14 = vld [vmem:[%s1635_s1 + $0x18] sm:$0xff] (!%p171_p3)   ;;  %v1299_v18 = vld [vmem:[%s1635_s1 + $0x20] sm:$0xff] (!%p171_p3)   ;;  %v1303_v22 = vld [vmem:[%s1635_s1 + $0x28] sm:$0xff] (!%p171_p3)  }
   0xd   : > { %1172 = vmatpush3.bf16.msra.mxu0 (!%p171_p3), %v1287_v6  ;;  %v1296_v15 = vld [vmem:[%s1635_s1 + $0x98] sm:$0xff] (!%p171_p3)   ;;  %v1300_v19 = vld [vmem:[%s1635_s1 + $0xa0] sm:$0xff] (!%p171_p3)   ;;  %v1304_v23 = vld [vmem:[%s1635_s1 + $0xa8] sm:$0xff] (!%p171_p3)  }
   0xe   : > { %1194 = vmatpush3.bf16.msra.mxu1 %v1288_v7  ;;  %1173 = vmatprep.subr.bf16.mxu0 %v1289_v8  ;;  %s1643_s25 = smov (!%p206_p4, %s1079_s25), 3  ;;  %v1305_v24 = vld [vmem:[%s1635_s1 + $0x70] sm:$0xff]   ;;  %v1309_v28 = vld [vmem:[%s1635_s1 + $0x78] sm:$0xff]   ;;  %v1313_v40 = vld [vmem:[%s1635_s1 + $0x140] sm:$0xff]  }
   0xf   : > { %1195 = vmatprep.subr.bf16.mxu1 %v1290_v9  ;;  %v1306_v25 = vld [vmem:[%s1635_s1 + $0xf0] sm:$0xff]   ;;  %s1161_s24 = sshll.u32 %s1643_s25, 5  ;;  %v1310_v29 = vld [vmem:[%s1635_s1 + $0xf8] sm:$0xff]   ;;  %v1314_v41 = vld [vmem:[%s1635_s1 + $0x1c0] sm:$0xff]  }
  0x10   : > { %v1307_v26 = vld [vmem:[%s1635_s1 + $0x30] sm:$0xff]   ;;  %s1506_s12 = scalar_lea.vmem %s1634_s0, %s1161_s24  ;;  %v1311_v30 = vld [vmem:[%s1635_s1 + $0x38] sm:$0xff]   ;;  %v1315_v42 = vld [vmem:[%s1635_s1 + $0x100] sm:$0xff]  }
  0x11   : > { %1174 = vmatpush3.bf16.msra.mxu0 %v1291_v10  ;;  %v1308_v27 = vld [vmem:[%s1635_s1 + $0xb0] sm:$0xff]   ;;  %v1312_v31 = vld [vmem:[%s1635_s1 + $0xb8] sm:$0xff]   ;;  %v229_v32 = vld [vmem:[%s1506_s12] sm:$0xff] }
  0x12   : > { %1196 = vmatpush3.bf16.msra.mxu1 %v1292_v11  ;;  %1175 = vmatprep.subr.bf16.mxu0 %v1293_v12  ;;  %v233_v33 = vld [vmem:[%s1506_s12 + $0x20] sm:$0xff]  ;;  %v230_v34 = vld [vmem:[%s1506_s12 + $0x8] sm:$0xff]  ;;  %v1321_v48 = vld [vmem:[%s1635_s1 + $0x150] sm:$0xff]  }
  0x13   : > { %1197 = vmatprep.subr.bf16.mxu1 %v1294_v13  ;;  %v1085_v35 = vcombine.low %v229_v32, %v233_v33  ;;  %v1086_v36 = vcombine.high %v229_v32, %v233_v33  ;;  %v234_v37 = vld [vmem:[%s1506_s12 + $0x28] sm:$0xff]  ;;  %v1316_v43 = vld [vmem:[%s1635_s1 + $0x180] sm:$0xff]   ;;  %v1322_v49 = vld [vmem:[%s1635_s1 + $0x1d0] sm:$0xff]  }
  0x14   : > { %v1087_v38 = vcombine.low %v230_v34, %v234_v37  ;;  %v1088_v39 = vcombine.high %v230_v34, %v234_v37  ;;  %v1317_v44 = vld [vmem:[%s1635_s1 + $0x148] sm:$0xff]   ;;  %v1323_v50 = vld [vmem:[%s1635_s1 + $0x110] sm:$0xff]   ;;  %v1325_v52 = vld [vmem:[%s1635_s1 + $0x158] sm:$0xff]  }
  0x15   : > { %1176 = vmatpush3.bf16.msra.mxu0 %v1295_v14  ;;  %828 = vmatprep.mubr.bf16.mxu0 %v1086_v36  ;;  %v1318_v45 = vld [vmem:[%s1635_s1 + $0x1c8] sm:$0xff]   ;;  %v1324_v51 = vld [vmem:[%s1635_s1 + $0x190] sm:$0xff]   ;;  %v1326_v53 = vld [vmem:[%s1635_s1 + $0x1d8] sm:$0xff]  }
  0x16   : > { %1198 = vmatpush3.bf16.msra.mxu1 %v1296_v15  ;;  %1177 = vmatprep.subr.bf16.mxu0 %v1297_v16  ;;  %v1319_v46 = vld [vmem:[%s1635_s1 + $0x108] sm:$0xff]   ;;  %v1327_v54 = vld [vmem:[%s1635_s1 + $0x118] sm:$0xff]   ;;  %v1329_v56 = vld [vmem:[%s1635_s1 + $0x160] sm:$0xff]  }
  0x17   : > { %1199 = vmatprep.subr.bf16.mxu1 %v1298_v17  ;;  %869 = vmatprep.mubr.bf16.mxu1 %v1088_v39  ;;  %v1320_v47 = vld [vmem:[%s1635_s1 + $0x188] sm:$0xff]   ;;  %v1328_v55 = vld [vmem:[%s1635_s1 + $0x198] sm:$0xff]   ;;  %v1330_v57 = vld [vmem:[%s1635_s1 + $0x1e0] sm:$0xff]  }
  0x18   : > { %v1331_v58 = vld [vmem:[%s1635_s1 + $0x120] sm:$0xff]   ;;  %v1333_v60 = vld [vmem:[%s1635_s1 + $0x168] sm:$0xff]   ;;  %v1337_v0 = vld [vmem:[%s1635_s1 + $0x170] sm:$0xff]  }
  0x19   : > { %1178 = vmatpush3.bf16.msra.mxu0 %v1299_v18  ;;  %v1332_v59 = vld [vmem:[%s1635_s1 + $0x1a0] sm:$0xff]   ;;  %v1334_v61 = vld [vmem:[%s1635_s1 + $0x1e8] sm:$0xff]   ;;  %v1338_v1 = vld [vmem:[%s1635_s1 + $0x1f0] sm:$0xff]  }
  0x1a   : > { %1200 = vmatpush3.bf16.msra.mxu1 %v1300_v19  ;;  %1179 = vmatprep.subr.bf16.mxu0 %v1301_v20  ;;  %v1335_v62 = vld [vmem:[%s1635_s1 + $0x128] sm:$0xff]   ;;  %v1339_v2 = vld [vmem:[%s1635_s1 + $0x130] sm:$0xff]   ;;  %v1341_v4 = vld [vmem:[%s1635_s1 + $0x178] sm:$0xff]  }
  0x1b   : > { %1201 = vmatprep.subr.bf16.mxu1 %v1302_v21  ;;  %v1336_v63 = vld [vmem:[%s1635_s1 + $0x1a8] sm:$0xff]   ;;  %v1340_v3 = vld [vmem:[%s1635_s1 + $0x1b0] sm:$0xff]   ;;  %v1342_v5 = vld [vmem:[%s1635_s1 + $0x1f8] sm:$0xff]  }
  0x1c   : > { %v1343_v6 = vld [vmem:[%s1635_s1 + $0x138] sm:$0xff]   ;;  %v231_v8 = vld [vmem:[%s1506_s12 + $0x10] sm:$0xff]  ;;  %v1084_v18 = vld [vmem:[%s1636_s2] ss:$0 sm:$0xff] }
  0x1d   : > { %1180 = vmatpush3.bf16.msra.mxu0 %v1303_v22  ;;  %v1344_v7 = vld [vmem:[%s1635_s1 + $0x1b8] sm:$0xff]   ;;  %v235_v9 = vld [vmem:[%s1506_s12 + $0x30] sm:$0xff] }
  0x1e   : > { %1202 = vmatpush3.bf16.msra.mxu1 %v1304_v23  ;;  %1181 = vmatprep.subr.bf16.mxu0 %v1305_v24  ;;  %v1089_v10 = vcombine.low %v231_v8, %v235_v9  ;;  %v1090_v11 = vcombine.high %v231_v8, %v235_v9  ;;  %v232_v12 = vld [vmem:[%s1506_s12 + $0x18] sm:$0xff] }
  0x1f   : > { %1203 = vmatprep.subr.bf16.mxu1 %v1306_v25  ;;  %v236_v13 = vld [vmem:[%s1506_s12 + $0x38] sm:$0xff]  ;;  %s1083_s12 = sshll.u32 %s1643_s25, 2 }
  0x20   : > { %v1091_v14 = vcombine.low %v232_v12, %v236_v13  ;;  %v1092_v15 = vcombine.high %v232_v12, %v236_v13  ;;  %s226_s17 = scalar_lea.vmem %s1637_s3, %s1083_s12 }
  0x21   : > { %1182 = vmatpush3.bf16.msra.mxu0 %v1307_v26 }
  0x22   : > { %1204 = vmatpush3.bf16.msra.mxu1 %v1308_v27  ;;  %1183 = vmatprep.subr.bf16.mxu0 %v1309_v28 }
  0x23   : > { %1205 = vmatprep.subr.bf16.mxu1 %v1310_v29 }
  0x25   : > { %1184 = vmatpush3.bf16.msra.mxu0 %v1311_v30 }
  0x26   : > { %1206 = vmatpush3.bf16.msra.mxu1 %v1312_v31  ;;  %1213 = vmatprep.subr.bf16.mxu0 %v1313_v40 }
  0x27   : > { %1235 = vmatprep.subr.bf16.mxu1 %v1314_v41 }
  0x28   : > { %829 = vmatmul.mubr.bf16.vlgmr.msra.gmra.mrb[0].mxu0 %v1085_v35 }
  0x29   : > { %870 = vmatmul.mubr.bf16.vlgmr.msra.gmra.mrb[0].mxu1 %v1087_v38  ;;  %1214 = vmatpush3.bf16.msra.mxu0 %v1315_v42 }
  0x2a   : > { %1236 = vmatpush3.bf16.msra.mxu1 %v1316_v43  ;;  %1215 = vmatprep.subr.bf16.mxu0 %v1317_v44 }
  0x2b   : > { %1237 = vmatprep.subr.bf16.mxu1 %v1318_v45  ;;  %910 = vmatprep.mubr.bf16.mxu0 %v1090_v11 }
  0x2c   : > { %951 = vmatprep.mubr.bf16.mxu1 %v1092_v15 }
  0x2d   : > { %1216 = vmatpush3.bf16.msra.mxu0 %v1319_v46 }
  0x2e   : > { %1238 = vmatpush3.bf16.msra.mxu1 %v1320_v47  ;;  %1217 = vmatprep.subr.bf16.mxu0 %v1321_v48 }
  0x2f   : > { %1239 = vmatprep.subr.bf16.mxu1 %v1322_v49 }
  0x31   : > { %1218 = vmatpush3.bf16.msra.mxu0 %v1323_v50 }
  0x32   : > { %1240 = vmatpush3.bf16.msra.mxu1 %v1324_v51  ;;  %1219 = vmatprep.subr.bf16.mxu0 %v1325_v52 }
  0x33   : > { %1241 = vmatprep.subr.bf16.mxu1 %v1326_v53 }
  0x35   : > { %1220 = vmatpush3.bf16.msra.mxu0 %v1327_v54 }
  0x36   : > { %1242 = vmatpush3.bf16.msra.mxu1 %v1328_v55  ;;  %1221 = vmatprep.subr.bf16.mxu0 %v1329_v56 }
  0x37   : > { %1243 = vmatprep.subr.bf16.mxu1 %v1330_v57 }
  0x39   : > { %1222 = vmatpush3.bf16.msra.mxu0 %v1331_v58 }
  0x3a   : > { %1244 = vmatpush3.bf16.msra.mxu1 %v1332_v59  ;;  %1223 = vmatprep.subr.bf16.mxu0 %v1333_v60 }
  0x3b   : > { %1245 = vmatprep.subr.bf16.mxu1 %v1334_v61 }
  0x3d   : > { %1224 = vmatpush3.bf16.msra.mxu0 %v1335_v62 }
  0x3e   : > { %1246 = vmatpush3.bf16.msra.mxu1 %v1336_v63  ;;  %1225 = vmatprep.subr.bf16.mxu0 %v1337_v0 }
  0x3f   : > { %1247 = vmatprep.subr.bf16.mxu1 %v1338_v1 }
  0x41   : > { %1226 = vmatpush3.bf16.msra.mxu0 %v1339_v2 }
  0x42   : > { %1248 = vmatpush3.bf16.msra.mxu1 %v1340_v3  ;;  %1227 = vmatprep.subr.bf16.mxu0 %v1341_v4 }
  0x43   : > { %1249 = vmatprep.subr.bf16.mxu1 %v1342_v5 }
  0x45   : > { %1228 = vmatpush3.bf16.msra.mxu0 %v1343_v6 }
  0x46   : > { %1250 = vmatpush3.bf16.msra.mxu1 %v1344_v7 }
  0x48   : > { %911 = vmatmul.mubr.bf16.vlgmr.msra.gmra.mrb[4].mxu0 %v1089_v10 }
  0x49   : > { %952 = vmatmul.mubr.bf16.vlgmr.msra.gmra.mrb[4].mxu1 %v1091_v14 }
  0xfb   : > { %v1185_v16 = vpop.f32.mrb[0].mxu0 }
  0xfc   : > { %v1207_v17 = vpop.f32.mrb[0].mxu1  ;;  %v1186_v19 = vpop.f32.mrb[1].mxu0 }
  0xfd   : > { %v1187_v20 = vadd.f32 %v1186_v19, %v1185_v16  ;;  %v1208_v21 = vpop.f32.mrb[1].mxu1  ;;  %v1188_v22 = vpop.f32.mrb[2].mxu0 }
  0xfe   : > { %v1209_v23 = vadd.f32 %v1208_v21, %v1207_v17  ;;  %v1210_v24 = vpop.f32.mrb[2].mxu1  ;;  %v1189_v25 = vpop.f32.mrb[3].mxu0 }
  0xff   : > { %v831_v26 = vadd.f32 %v1187_v20, %v1084_v18  ;;  %v1190_v27 = vadd.f32 %v1189_v25, %v1188_v22  ;;  %v1211_v28 = vpop.f32.mrb[3].mxu1 }
 0x100   : > { %v1212_v29 = vadd.f32 %v1211_v28, %v1210_v24 }
 0x101   : > { %v872_v30 = vadd.f32 %v1209_v23, %v831_v26  ;;  %v834_v31 = vadd.f32 %v1190_v27, %v1084_v18 }
 0x103   : > { %v875_v32 = vadd.f32 %v1212_v29, %v834_v31 }
 0x11b   : > { %v1229_v33 = vpop.f32.mrb[4].mxu0 }
 0x11c   : > { %v1251_v34 = vpop.f32.mrb[4].mxu1  ;;  %v1230_v35 = vpop.f32.mrb[5].mxu0 }
 0x11d   : > { %v1231_v36 = vadd.f32 %v1230_v35, %v1229_v33  ;;  %v1252_v37 = vpop.f32.mrb[5].mxu1  ;;  %v1232_v38 = vpop.f32.mrb[6].mxu0 }
 0x11e   : > { %v1253_v39 = vadd.f32 %v1252_v37, %v1251_v34  ;;  %v1254_v40 = vpop.f32.mrb[6].mxu1  ;;  %v1233_v41 = vpop.f32.mrb[7].mxu0 }
 0x11f   : > { %v913_v42 = vadd.f32 %v1231_v36, %v872_v30  ;;  %v1234_v43 = vadd.f32 %v1233_v41, %v1232_v38  ;;  %v1255_v44 = vpop.f32.mrb[7].mxu1 }
 0x120   : > { %v1256_v45 = vadd.f32 %v1255_v44, %v1254_v40 }
 0x121   : > { %v954_v46 = vadd.f32 %v1253_v39, %v913_v42  ;;  %v916_v47 = vadd.f32 %v1234_v43, %v875_v32 }
 0x123   : > { %v957_v48 = vadd.f32 %v1256_v45, %v916_v47 }
 0x125   : > { %v1167_v49 = vpack.c.bf16 %v957_v48, %v954_v46 }
 0x127   : > { %1168 = vst [vmem:[%s226_s17] sm:$0xff] %v1167_v49  }
 0x128 PF: > { %s13_s14 = sadd.s32 1, %s1367_s14   ;;  %s1638_s12 = smov %s1363_s13 }
 0x129   : > { %p10_p5 = scmp.ge.s32.totalorder %s13_s14, 4   ;;  %s1639_s13 = smov %s1641_s15 }
 0x12b   :  { %12 = sbr.rel (!%p10_p5) target bundleno = 2 (0x2), region = 68 }

// kernel: discriminator_forward.10
= control target key start
LH: loop header
LB: loop body
LE: loop exit
PB: predicated region body
PF: predicated region fallthrough
CT: control target
= control target key end

     0   :  { %s369_s6 = smov 0   ;;  %s371_s7 = smov 0   ;;  %s427_s0 = inlined_call_operand.vmem [shape: bf16[2,4,256], index: 0, kind: input, shape index: {}]   ;;  %s428_s1 = inlined_call_operand.vmem [shape: bf16[2,4,256], index: 1, kind: output, shape index: {}]  }
   0x1   :  { %s373_s8 = smov 0   ;;  %s375_s9 = smov 0  }
   0x2   :  { %s377_s10 = smov 0  }
   0x3 LB: > { %s20_s11 = sadd.s32 1, %s349_s8  ;;  %s23_s12 = sadd.s32 1, %s353_s9  ;;  %s357_s10 = sphi %s377_s10, %s11_s10   ;;  %s353_s9 = sphi %s375_s9, %s432_s9   ;;  %s349_s8 = sphi %s373_s8, %s431_s8   ;;  %s345_s7 = sphi %s371_s7, %s430_s7   ;;  %s341_s6 = sphi %s369_s6, %s429_s6  }
   0x4   : > { %p21_p0 = scmp.ge.s32.totalorder %s20_s11, 2  ;;  %p270_p1 = scmp.ge.s32.totalorder %s357_s10, 1 }
   0x5   : > { %p106_p2 = scmp.lt.s32.totalorder %s357_s10, 5 }
   0x6   : > { %s434_s11 = smov (%p21_p0, %s20_s11), 0  ;;  %s436_s12 = smov (!%p21_p0, %s23_s12), %s353_s9 }
   0x7   : > { %p107_p3 = pnand %p270_p1, %p106_p2  ;;  %p25_p4 = scmp.ge.s32.totalorder %s436_s12, 2 }
   0x8   : > { %p132_p5 = scmp.lt.s32.totalorder (!%p107_p3), %s345_s7, 1  ;;  %p134_p6 = scmp.lt.s32.totalorder (!%p107_p3), %s341_s6, 1  ;;  %vm150_vm0 = vcmask (!%p107_p3), 1043456  }
   0x9   : > { %s438_s12 = smov (%p25_p4, %s436_s12), 0  ;;  %110 = sbr.rel (%p107_p3) target bundleno = 66 (0x42), region = 24 }
  0x10   : > { %s440_s7 = smov (!%p132_p5, %s345_s7), 1  ;;  %s442_s6 = smov (!%p134_p6, %s341_s6), 1 }
  0x11   : > { %s271_s13 = sshll.u32 %s440_s7, 1 }
  0x12   : > { %s399_s14 = sadd.s32 %s271_s13, %s442_s6 }
  0x13   : > { %s272_s15 = sshll.u32 %s399_s14, 1 }
  0x14   : > { %s139_s18 = scalar_lea.vmem %s427_s0, %s272_s15  ;;  %s147_s21 = scalar_lea.vmem %s428_s1, %s272_s15 }
  0x15   : > { %v148_v0 = vld [vmem:[%s139_s18] sm:$0x3] }
  0x16   : > { %v149_v1 = vunpack.c.l.bf16 %v148_v0 }
  0x18   : > { %v151_v2 = vsel %vm150_vm0, %v149_v1, 0.0  ;;  %v159_v3 = vmul.f32 %v149_v1, %v149_v1 }
  0x19   : > { %v152_v4 = vrot.slane %v151_v2, 4 }
  0x1a   : > { %v160_v5 = vsel %vm150_vm0, %v159_v3, 0.0 }
  0x1b   : > { %v153_v6 = vadd.f32 %v152_v4, %v151_v2  ;;  %v161_v7 = vrot.slane %v160_v5, 4 }
  0x1d   : > { %v154_v8 = vrot.slane %v153_v6, 2  ;;  %v162_v9 = vadd.f32 %v161_v7, %v160_v5 }
  0x1f   : > { %v155_v10 = vadd.f32 %v154_v8, %v153_v6  ;;  %v163_v11 = vrot.slane %v162_v9, 2 }
  0x21   : > { %v156_v12 = vrot.slane %v155_v10, 1  ;;  %v164_v13 = vadd.f32 %v163_v11, %v162_v9 }
  0x23   : > { %v157_v14 = vadd.f32 %v156_v12, %v155_v10  ;;  %v165_v15 = vrot.slane %v164_v13, 1 }
  0x25   : > { %v158_v16 = vmul.f32 0.25, %v157_v14  ;;  %v166_v17 = vadd.f32 %v165_v15, %v164_v13 }
  0x27   : > { %v167_v18 = vmul.f32 0.25, %v166_v17  ;;  %v168_v19 = vmul.f32 %v158_v16, %v158_v16  ;;  %v171_v23 = vsub.f32 %v149_v1, %v158_v16 }
  0x29   : > { %v169_v20 = vsub.f32 %v167_v18, %v168_v19 }
  0x2b   : > { %v170_v21 = vmax.f32 %v169_v20, 0.0 }
  0x2d   : > { %v172_v22 = vadd.f32 1e-05, %v170_v21 }
  0x2f   : > { %317 = vrsqrt.f32 %v172_v22 }
  0x39   : > { %v318_v24 = vpop.eup %317 }
  0x3a   : > { %v174_v25 = vmul.f32 %v318_v24, %v171_v23 }
  0x3c   : > { %vm175_vm1 = vcmp.gt.f32.partialorder %v174_v25, 0.0  ;;  %v176_v26 = vmul.f32 0.2, %v174_v25 }
  0x3e   : > { %v177_v27 = vsel %vm175_vm1, %v174_v25, %v176_v26 }
  0x3f   : > { %v178_v28 = vpack.c.bf16 %v177_v27, %v177_v27 }
  0x41   : > { %179 = vst [vmem:[%s147_s21] sm:$0x3] %v178_v28 }
  0x42 PF: > { %s11_s10 = sadd.s32 1, %s357_s10   ;;  %s429_s6 = smov %s349_s8 }
  0x43   : > { %p8_p7 = scmp.ge.s32.totalorder %s11_s10, 6   ;;  %s430_s7 = smov %s353_s9 }
  0x44   : > { %s431_s8 = smov %s434_s11  ;;  %s432_s9 = smov %s438_s12 }
  0x45   :  { %10 = sbr.rel (!%p8_p7) target bundleno = 3 (0x3), region = 54 }

// kernel: discriminator_forward.9
= control target key start
LH: loop header
LB: loop body
LE: loop exit
PB: predicated region body
PF: predicated region fallthrough
CT: control target
= control target key end

     0   :  { %s3523_s1 = inlined_call_operand.vmem [shape: bf16[2048,256], index: 1, kind: input, shape index: {}]   ;;  %s3524_s0 = inlined_call_operand.vmem [shape: bf16[8,2048], index: 0, kind: input, shape index: {}]   ;;  %s3525_s2 = inlined_call_operand.vmem [shape: f32[1,256], index: 2, kind: input, shape index: {}]   ;;  %s3526_s3 = inlined_call_operand.vmem [shape: bf16[8,256], index: 3, kind: output, shape index: {}]  }
   0x1   :  { %v2269_v0 = vld [vmem:[%s3523_s1 + $0x4] ss:$8 sps:$4 sm:$0xff]   ;;  %v2273_v2 = vld [vmem:[%s3523_s1] ss:$8 sps:$4 sm:$0xff]   ;;  %v2275_v4 = vld [vmem:[%s3523_s1 + $0x14] ss:$8 sps:$4 sm:$0xff]  }
   0x2   :  { %v2271_v1 = vld [vmem:[%s3523_s1 + $0x404] ss:$8 sps:$4 sm:$0xff]   ;;  %1626 = vmatprep.subr.bf16.mxu1 %v2269_v0  ;;  %v2274_v3 = vld [vmem:[%s3523_s1 + $0x400] ss:$8 sps:$4 sm:$0xff]   ;;  %v2277_v5 = vld [vmem:[%s3523_s1 + $0x414] ss:$8 sps:$4 sm:$0xff]  }
   0x3   :  { %1790 = vmatprep.subr.bf16.mxu0 %v2271_v1  ;;  %1627 = vmatpush1.bf16.msra.mxu1 %v2273_v2  ;;  %v2279_v6 = vld [vmem:[%s3523_s1 + $0x10] ss:$8 sps:$4 sm:$0xff]   ;;  %v2281_v8 = vld [vmem:[%s3523_s1 + $0x24] ss:$8 sps:$4 sm:$0xff]   ;;  %v2285_v10 = vld [vmem:[%s3523_s1 + $0x20] ss:$8 sps:$4 sm:$0xff]  }
   0x4   :  { %1791 = vmatpush1.bf16.msra.mxu0 %v2274_v3  ;;  %1628 = vmatprep.subr.bf16.mxu1 %v2275_v4  ;;  %v2280_v7 = vld [vmem:[%s3523_s1 + $0x410] ss:$8 sps:$4 sm:$0xff]   ;;  %v2283_v9 = vld [vmem:[%s3523_s1 + $0x424] ss:$8 sps:$4 sm:$0xff]   ;;  %v2286_v11 = vld [vmem:[%s3523_s1 + $0x420] ss:$8 sps:$4 sm:$0xff]  }
   0x5   :  { %1792 = vmatprep.subr.bf16.mxu0 %v2277_v5  ;;  %v2287_v12 = vld [vmem:[%s3523_s1 + $0x34] ss:$8 sps:$4 sm:$0xff]   ;;  %v2291_v14 = vld [vmem:[%s3523_s1 + $0x30] ss:$8 sps:$4 sm:$0xff]   ;;  %v2293_v16 = vld [vmem:[%s3523_s1 + $0x44] ss:$8 sps:$4 sm:$0xff]  }
   0x6   :  { %v2289_v13 = vld [vmem:[%s3523_s1 + $0x434] ss:$8 sps:$4 sm:$0xff]   ;;  %v2292_v15 = vld [vmem:[%s3523_s1 + $0x430] ss:$8 sps:$4 sm:$0xff]   ;;  %v2295_v17 = vld [vmem:[%s3523_s1 + $0x444] ss:$8 sps:$4 sm:$0xff]  }
   0x7   :  { %1629 = vmatpush1.bf16.msra.mxu1 %v2279_v6  ;;  %v2297_v18 = vld [vmem:[%s3523_s1 + $0x40] ss:$8 sps:$4 sm:$0xff]   ;;  %v2299_v20 = vld [vmem:[%s3523_s1 + $0x54] ss:$8 sps:$4 sm:$0xff]   ;;  %v2303_v22 = vld [vmem:[%s3523_s1 + $0x50] ss:$8 sps:$4 sm:$0xff]  }
   0x8   :  { %1793 = vmatpush1.bf16.msra.mxu0 %v2280_v7  ;;  %1630 = vmatprep.subr.bf16.mxu1 %v2281_v8  ;;  %v2298_v19 = vld [vmem:[%s3523_s1 + $0x440] ss:$8 sps:$4 sm:$0xff]   ;;  %v2301_v21 = vld [vmem:[%s3523_s1 + $0x454] ss:$8 sps:$4 sm:$0xff]   ;;  %v2304_v23 = vld [vmem:[%s3523_s1 + $0x450] ss:$8 sps:$4 sm:$0xff]  }
   0x9   :  { %1794 = vmatprep.subr.bf16.mxu0 %v2283_v9  ;;  %v2305_v24 = vld [vmem:[%s3523_s1 + $0x64] ss:$8 sps:$4 sm:$0xff]   ;;  %v2309_v26 = vld [vmem:[%s3523_s1 + $0x60] ss:$8 sps:$4 sm:$0xff]   ;;  %v2311_v28 = vld [vmem:[%s3523_s1 + $0x74] ss:$8 sps:$4 sm:$0xff]  }
   0xa   :  { %v2307_v25 = vld [vmem:[%s3523_s1 + $0x464] ss:$8 sps:$4 sm:$0xff]   ;;  %v2310_v27 = vld [vmem:[%s3523_s1 + $0x460] ss:$8 sps:$4 sm:$0xff]   ;;  %v2313_v29 = vld [vmem:[%s3523_s1 + $0x474] ss:$8 sps:$4 sm:$0xff]  }
   0xb   :  { %1631 = vmatpush1.bf16.msra.mxu1 %v2285_v10  ;;  %v2315_v30 = vld [vmem:[%s3523_s1 + $0x70] ss:$8 sps:$4 sm:$0xff]   ;;  %v2317_v32 = vld [vmem:[%s3523_s1 + $0x84] ss:$8 sps:$4 sm:$0xff]   ;;  %v2321_v34 = vld [vmem:[%s3523_s1 + $0x80] ss:$8 sps:$4 sm:$0xff]  }
   0xc   :  { %1795 = vmatpush1.bf16.msra.mxu0 %v2286_v11  ;;  %1632 = vmatprep.subr.bf16.mxu1 %v2287_v12  ;;  %v2316_v31 = vld [vmem:[%s3523_s1 + $0x470] ss:$8 sps:$4 sm:$0xff]   ;;  %v2319_v33 = vld [vmem:[%s3523_s1 + $0x484] ss:$8 sps:$4 sm:$0xff]   ;;  %v2322_v35 = vld [vmem:[%s3523_s1 + $0x480] ss:$8 sps:$4 sm:$0xff]  }
   0xd   :  { %1796 = vmatprep.subr.bf16.mxu0 %v2289_v13  ;;  %v2323_v36 = vld [vmem:[%s3523_s1 + $0x94] ss:$8 sps:$4 sm:$0xff]   ;;  %v2327_v38 = vld [vmem:[%s3523_s1 + $0x90] ss:$8 sps:$4 sm:$0xff]   ;;  %v2329_v40 = vld [vmem:[%s3523_s1 + $0xa4] ss:$8 sps:$4 sm:$0xff]  }
   0xe   :  { %v2325_v37 = vld [vmem:[%s3523_s1 + $0x494] ss:$8 sps:$4 sm:$0xff]   ;;  %v2328_v39 = vld [vmem:[%s3523_s1 + $0x490] ss:$8 sps:$4 sm:$0xff]   ;;  %v2331_v41 = vld [vmem:[%s3523_s1 + $0x4a4] ss:$8 sps:$4 sm:$0xff]  }
   0xf   :  { %1633 = vmatpush1.bf16.msra.mxu1 %v2291_v14  ;;  %v2333_v42 = vld [vmem:[%s3523_s1 + $0xa0] ss:$8 sps:$4 sm:$0xff]   ;;  %v2335_v44 = vld [vmem:[%s3523_s1 + $0xb4] ss:$8 sps:$4 sm:$0xff]   ;;  %v2339_v47 = vld [vmem:[%s3523_s1 + $0xb0] ss:$8 sps:$4 sm:$0xff]  }
  0x10   :  { %1797 = vmatpush1.bf16.msra.mxu0 %v2292_v15  ;;  %1634 = vmatprep.subr.bf16.mxu1 %v2293_v16  ;;  %v2334_v43 = vld [vmem:[%s3523_s1 + $0x4a0] ss:$8 sps:$4 sm:$0xff]   ;;  %v2337_v45 = vld [vmem:[%s3523_s1 + $0x4b4] ss:$8 sps:$4 sm:$0xff]   ;;  %v2340_v49 = vld [vmem:[%s3523_s1 + $0x4b0] ss:$8 sps:$4 sm:$0xff]  }
  0x11   :  { %1798 = vmatprep.subr.bf16.mxu0 %v2295_v17  ;;  %v14_v46 = vld [vmem:[%s3524_s0] sm:$0xff]  ;;  %v2347_v56 = vld [vmem:[%s3523_s1 + $0xd4] ss:$8 sps:$4 sm:$0xff]   ;;  %v2351_v58 = vld [vmem:[%s3523_s1 + $0xd0] ss:$8 sps:$4 sm:$0xff]  }
  0x12   :  { %v1968_v48 = vcombine.high %v14_v46, %v14_v46  ;;  %v18_v50 = vld [vmem:[%s3524_s0 + $0x20] sm:$0xff]  ;;  %v2349_v57 = vld [vmem:[%s3523_s1 + $0x4d4] ss:$8 sps:$4 sm:$0xff]   ;;  %v2352_v59 = vld [vmem:[%s3523_s1 + $0x4d0] ss:$8 sps:$4 sm:$0xff]   ;;  %v1967_v6 = vcombine.low %v14_v46, %v14_v46 }
  0x13   :  { %1635 = vmatpush1.bf16.msra.mxu1 %v2297_v18  ;;  %v2341_v51 = vld [vmem:[%s3523_s1 + $0xc4] ss:$8 sps:$4 sm:$0xff]   ;;  %v1976_v53 = vcombine.high %v18_v50, %v18_v50  ;;  %v2345_v54 = vld [vmem:[%s3523_s1 + $0xc0] ss:$8 sps:$4 sm:$0xff]   ;;  %v2359_v0 = vld [vmem:[%s3523_s1 + $0xf4] ss:$8 sps:$4 sm:$0xff]   ;;  %v1975_v7 = vcombine.low %v18_v50, %v18_v50 }
  0x14   :  { %1799 = vmatpush1.bf16.msra.mxu0 %v2298_v19  ;;  %1636 = vmatprep.subr.bf16.mxu1 %v2299_v20  ;;  %v2343_v52 = vld [vmem:[%s3523_s1 + $0x4c4] ss:$8 sps:$4 sm:$0xff]   ;;  %v2346_v55 = vld [vmem:[%s3523_s1 + $0x4c0] ss:$8 sps:$4 sm:$0xff]   ;;  %v2361_v1 = vld [vmem:[%s3523_s1 + $0x4f4] ss:$8 sps:$4 sm:$0xff]  }
  0x15   :  { %1800 = vmatprep.subr.bf16.mxu0 %v2301_v21  ;;  %1658 = vmatprep.mubr.bf16.mxu1 %v1968_v48  ;;  %v2353_v60 = vld [vmem:[%s3523_s1 + $0xe4] ss:$8 sps:$4 sm:$0xff]   ;;  %v2357_v62 = vld [vmem:[%s3523_s1 + $0xe0] ss:$8 sps:$4 sm:$0xff]   ;;  %v2363_v2 = vld [vmem:[%s3523_s1 + $0xf0] ss:$8 sps:$4 sm:$0xff]  }
  0x16   :  { %1822 = vmatprep.mubr.bf16.mxu0 %v1976_v53  ;;  %v2355_v61 = vld [vmem:[%s3523_s1 + $0x4e4] ss:$8 sps:$4 sm:$0xff]   ;;  %v2358_v63 = vld [vmem:[%s3523_s1 + $0x4e0] ss:$8 sps:$4 sm:$0xff]   ;;  %v2364_v3 = vld [vmem:[%s3523_s1 + $0x4f0] ss:$8 sps:$4 sm:$0xff]  }
  0x17   :  { %1637 = vmatpush1.bf16.msra.mxu1 %v2303_v22  ;;  %v2369_v4 = vld [vmem:[%s3523_s1 + $0x104] ss:$8 sps:$4 sm:$0xff]   ;;  %v2367_v8 = vld [vmem:[%s3523_s1 + $0x100] ss:$8 sps:$4 sm:$0xff]   ;;  %v2377_v10 = vld [vmem:[%s3523_s1 + $0x114] ss:$8 sps:$4 sm:$0xff]  }
  0x18   :  { %1801 = vmatpush1.bf16.msra.mxu0 %v2304_v23  ;;  %1638 = vmatprep.subr.bf16.mxu1 %v2305_v24  ;;  %v2374_v5 = vld [vmem:[%s3523_s1 + $0x504] ss:$8 sps:$4 sm:$0xff]   ;;  %v2372_v9 = vld [vmem:[%s3523_s1 + $0x500] ss:$8 sps:$4 sm:$0xff]   ;;  %v2380_v11 = vld [vmem:[%s3523_s1 + $0x514] ss:$8 sps:$4 sm:$0xff]  }
  0x19   :  { %1802 = vmatprep.subr.bf16.mxu0 %v2307_v25  ;;  %v2375_v12 = vld [vmem:[%s3523_s1 + $0x110] ss:$8 sps:$4 sm:$0xff]   ;;  %v2383_v14 = vld [vmem:[%s3523_s1 + $0x124] ss:$8 sps:$4 sm:$0xff]   ;;  %v2381_v16 = vld [vmem:[%s3523_s1 + $0x120] ss:$8 sps:$4 sm:$0xff]  }
  0x1a   :  { %v2378_v13 = vld [vmem:[%s3523_s1 + $0x510] ss:$8 sps:$4 sm:$0xff]   ;;  %v2386_v15 = vld [vmem:[%s3523_s1 + $0x524] ss:$8 sps:$4 sm:$0xff]   ;;  %v2384_v17 = vld [vmem:[%s3523_s1 + $0x520] ss:$8 sps:$4 sm:$0xff]  }
  0x1b   :  { %1639 = vmatpush1.bf16.msra.mxu1 %v2309_v26  ;;  %v2389_v18 = vld [vmem:[%s3523_s1 + $0x134] ss:$8 sps:$4 sm:$0xff]   ;;  %v2387_v20 = vld [vmem:[%s3523_s1 + $0x130] ss:$8 sps:$4 sm:$0xff]   ;;  %v2395_v22 = vld [vmem:[%s3523_s1 + $0x144] ss:$8 sps:$4 sm:$0xff]  }
  0x1c   :  { %1803 = vmatpush1.bf16.msra.mxu0 %v2310_v27  ;;  %1640 = vmatprep.subr.bf16.mxu1 %v2311_v28  ;;  %v2392_v19 = vld [vmem:[%s3523_s1 + $0x534] ss:$8 sps:$4 sm:$0xff]   ;;  %v2390_v21 = vld [vmem:[%s3523_s1 + $0x530] ss:$8 sps:$4 sm:$0xff]   ;;  %v2398_v23 = vld [vmem:[%s3523_s1 + $0x544] ss:$8 sps:$4 sm:$0xff]  }
  0x1d   :  { %1804 = vmatprep.subr.bf16.mxu0 %v2313_v29  ;;  %v2393_v24 = vld [vmem:[%s3523_s1 + $0x140] ss:$8 sps:$4 sm:$0xff]   ;;  %v2401_v26 = vld [vmem:[%s3523_s1 + $0x154] ss:$8 sps:$4 sm:$0xff]   ;;  %v2399_v28 = vld [vmem:[%s3523_s1 + $0x150] ss:$8 sps:$4 sm:$0xff]  }
  0x1e   :  { %v2396_v25 = vld [vmem:[%s3523_s1 + $0x540] ss:$8 sps:$4 sm:$0xff]   ;;  %v2404_v27 = vld [vmem:[%s3523_s1 + $0x554] ss:$8 sps:$4 sm:$0xff]   ;;  %v2402_v29 = vld [vmem:[%s3523_s1 + $0x550] ss:$8 sps:$4 sm:$0xff]  }
  0x1f   :  { %1641 = vmatpush1.bf16.msra.mxu1 %v2315_v30  ;;  %v2407_v30 = vld [vmem:[%s3523_s1 + $0x164] ss:$8 sps:$4 sm:$0xff]   ;;  %v2425_v46 = vld [vmem:[%s3523_s1 + $0x194] ss:$8 sps:$4 sm:$0xff]   ;;  %v2423_v48 = vld [vmem:[%s3523_s1 + $0x190] ss:$8 sps:$4 sm:$0xff]  }
  0x20   :  { %1805 = vmatpush1.bf16.msra.mxu0 %v2316_v31  ;;  %1642 = vmatprep.subr.bf16.mxu1 %v2317_v32  ;;  %v2410_v31 = vld [vmem:[%s3523_s1 + $0x564] ss:$8 sps:$4 sm:$0xff]   ;;  %v2432_v53 = vld [vmem:[%s3523_s1 + $0x5a0] ss:$8 sps:$4 sm:$0xff]  }
  0x21   :  { %1806 = vmatprep.subr.bf16.mxu0 %v2319_v33  ;;  %v2968_v32 = vld [vmem:[%s3524_s0 + $0x8] sm:$0xff] }
  0x22   :  { %v2405_v33 = vld [vmem:[%s3523_s1 + $0x160] ss:$8 sps:$4 sm:$0xff]   ;;  %v2431_v50 = vld [vmem:[%s3523_s1 + $0x1a4] ss:$8 sps:$4 sm:$0xff]  }
  0x23   :  { %1643 = vmatpush1.bf16.msra.mxu1 %v2321_v34  ;;  %v2408_v34 = vld [vmem:[%s3523_s1 + $0x560] ss:$8 sps:$4 sm:$0xff]  }
  0x24   :  { %1807 = vmatpush1.bf16.msra.mxu0 %v2322_v35  ;;  %1644 = vmatprep.subr.bf16.mxu1 %v2323_v36  ;;  %v1970_v35 = vcombine.high %v2968_v32, %v2968_v32  ;;  %v2981_v36 = vld [vmem:[%s3524_s0 + $0x28] sm:$0xff] }
  0x25   :  { %1808 = vmatprep.subr.bf16.mxu0 %v2325_v37  ;;  %v2413_v37 = vld [vmem:[%s3523_s1 + $0x174] ss:$8 sps:$4 sm:$0xff]  }
  0x27   :  { %1645 = vmatpush1.bf16.msra.mxu1 %v2327_v38  ;;  %v1978_v38 = vcombine.high %v2981_v36, %v2981_v36 }
  0x28   :  { %1809 = vmatpush1.bf16.msra.mxu0 %v2328_v39  ;;  %1646 = vmatprep.subr.bf16.mxu1 %v2329_v40  ;;  %v2416_v39 = vld [vmem:[%s3523_s1 + $0x574] ss:$8 sps:$4 sm:$0xff]   ;;  %v2411_v40 = vld [vmem:[%s3523_s1 + $0x170] ss:$8 sps:$4 sm:$0xff]  }
  0x29   :  { %1810 = vmatprep.subr.bf16.mxu0 %v2331_v41  ;;  %v2414_v41 = vld [vmem:[%s3523_s1 + $0x570] ss:$8 sps:$4 sm:$0xff]  }
  0x2b   :  { %1647 = vmatpush1.bf16.msra.mxu1 %v2333_v42  ;;  %v2419_v42 = vld [vmem:[%s3523_s1 + $0x184] ss:$8 sps:$4 sm:$0xff]  }
  0x2c   :  { %1811 = vmatpush1.bf16.msra.mxu0 %v2334_v43  ;;  %1648 = vmatprep.subr.bf16.mxu1 %v2335_v44  ;;  %v2422_v43 = vld [vmem:[%s3523_s1 + $0x584] ss:$8 sps:$4 sm:$0xff]   ;;  %v2417_v44 = vld [vmem:[%s3523_s1 + $0x180] ss:$8 sps:$4 sm:$0xff]  }
  0x2d   :  { %1812 = vmatprep.subr.bf16.mxu0 %v2337_v45  ;;  %v2420_v45 = vld [vmem:[%s3523_s1 + $0x580] ss:$8 sps:$4 sm:$0xff]  }
  0x2f   :  { %1649 = vmatpush1.bf16.msra.mxu1 %v2339_v47  ;;  %v2428_v47 = vld [vmem:[%s3523_s1 + $0x594] ss:$8 sps:$4 sm:$0xff]  }
  0x30   :  { %1813 = vmatpush1.bf16.msra.mxu0 %v2340_v49  ;;  %1650 = vmatprep.subr.bf16.mxu1 %v2341_v51  ;;  %v2426_v49 = vld [vmem:[%s3523_s1 + $0x590] ss:$8 sps:$4 sm:$0xff]   ;;  %v2434_v51 = vld [vmem:[%s3523_s1 + $0x5a4] ss:$8 sps:$4 sm:$0xff]  }
  0x31   :  { %1814 = vmatprep.subr.bf16.mxu0 %v2343_v52  ;;  %v2429_v52 = vld [vmem:[%s3523_s1 + $0x1a0] ss:$8 sps:$4 sm:$0xff]  }
  0x33   :  { %1651 = vmatpush1.bf16.msra.mxu1 %v2345_v54  ;;  %v2437_v54 = vld [vmem:[%s3523_s1 + $0x1b4] ss:$8 sps:$4 sm:$0xff]  }
  0x34   :  { %1815 = vmatpush1.bf16.msra.mxu0 %v2346_v55  ;;  %1652 = vmatprep.subr.bf16.mxu1 %v2347_v56  ;;  %v2440_v55 = vld [vmem:[%s3523_s1 + $0x5b4] ss:$8 sps:$4 sm:$0xff]   ;;  %v2435_v56 = vld [vmem:[%s3523_s1 + $0x1b0] ss:$8 sps:$4 sm:$0xff]  }
  0x35   :  { %1816 = vmatprep.subr.bf16.mxu0 %v2349_v57  ;;  %v2438_v57 = vld [vmem:[%s3523_s1 + $0x5b0] ss:$8 sps:$4 sm:$0xff]  }
  0x37   :  { %1653 = vmatpush1.bf16.msra.mxu1 %v2351_v58  ;;  %v2443_v58 = vld [vmem:[%s3523_s1 + $0x1c4] ss:$8 sps:$4 sm:$0xff]  }
  0x38   :  { %1817 = vmatpush1.bf16.msra.mxu0 %v2352_v59  ;;  %1654 = vmatprep.subr.bf16.mxu1 %v2353_v60  ;;  %v2446_v59 = vld [vmem:[%s3523_s1 + $0x5c4] ss:$8 sps:$4 sm:$0xff]   ;;  %v2441_v60 = vld [vmem:[%s3523_s1 + $0x1c0] ss:$8 sps:$4 sm:$0xff]  }
  0x39   :  { %1818 = vmatprep.subr.bf16.mxu0 %v2355_v61  ;;  %v2444_v61 = vld [vmem:[%s3523_s1 + $0x5c0] ss:$8 sps:$4 sm:$0xff]  }
  0x3b   :  { %1655 = vmatpush1.bf16.msra.mxu1 %v2357_v62  ;;  %v2449_v62 = vld [vmem:[%s3523_s1 + $0x1d4] ss:$8 sps:$4 sm:$0xff]  }
  0x3c   :  { %1819 = vmatpush1.bf16.msra.mxu0 %v2358_v63  ;;  %1656 = vmatprep.subr.bf16.mxu1 %v2359_v0  ;;  %v2452_v63 = vld [vmem:[%s3523_s1 + $0x5d4] ss:$8 sps:$4 sm:$0xff]   ;;  %v2447_v0 = vld [vmem:[%s3523_s1 + $0x1d0] ss:$8 sps:$4 sm:$0xff]  }
  0x3d   :  { %1820 = vmatprep.subr.bf16.mxu0 %v2361_v1  ;;  %v2450_v1 = vld [vmem:[%s3523_s1 + $0x5d0] ss:$8 sps:$4 sm:$0xff]  }
  0x3f   :  { %1657 = vmatpush1.bf16.msra.mxu1 %v2363_v2  ;;  %v2455_v2 = vld [vmem:[%s3523_s1 + $0x1e4] ss:$8 sps:$4 sm:$0xff]  }
  0x40   :  { %1821 = vmatpush1.bf16.msra.mxu0 %v2364_v3  ;;  %1667 = vmatprep.subr.bf16.mxu1 %v2369_v4  ;;  %v2458_v3 = vld [vmem:[%s3523_s1 + $0x5e4] ss:$8 sps:$4 sm:$0xff]   ;;  %v2453_v4 = vld [vmem:[%s3523_s1 + $0x1e0] ss:$8 sps:$4 sm:$0xff]  }
  0x41   :  { %1831 = vmatprep.subr.bf16.mxu0 %v2374_v5  ;;  %v2456_v5 = vld [vmem:[%s3523_s1 + $0x5e0] ss:$8 sps:$4 sm:$0xff]  }
  0x42   :  { %1659 = vmatmul.mubr.bf16.vlgmr.msra.gmra.mrb[0].mxu1 %v1967_v6  ;;  %v2461_v6 = vld [vmem:[%s3523_s1 + $0x1f4] ss:$8 sps:$4 sm:$0xff]  }
  0x43   :  { %1823 = vmatmul.mubr.bf16.vlgmr.msra.gmra.mrb[0].mxu0 %v1975_v7  ;;  %1668 = vmatpush1.bf16.msra.mxu1 %v2367_v8  ;;  %v2464_v7 = vld [vmem:[%s3523_s1 + $0x5f4] ss:$8 sps:$4 sm:$0xff]   ;;  %v2459_v8 = vld [vmem:[%s3523_s1 + $0x1f0] ss:$8 sps:$4 sm:$0xff]  }
  0x44   :  { %1832 = vmatpush1.bf16.msra.mxu0 %v2372_v9  ;;  %1669 = vmatprep.subr.bf16.mxu1 %v2377_v10  ;;  %v2462_v9 = vld [vmem:[%s3523_s1 + $0x5f0] ss:$8 sps:$4 sm:$0xff]   ;;  %v2469_v10 = vld [vmem:[%s3523_s1 + $0x204] ss:$8 sps:$4 sm:$0xff]  }
  0x45   :  { %1833 = vmatprep.subr.bf16.mxu0 %v2380_v11  ;;  %1699 = vmatprep.mubr.bf16.mxu1 %v1970_v35  ;;  %v2474_v11 = vld [vmem:[%s3523_s1 + $0x604] ss:$8 sps:$4 sm:$0xff]   ;;  %v2496_v35 = vld [vmem:[%s3523_s1 + $0x640] ss:$8 sps:$4 sm:$0xff]  }
  0x46   :  { %1863 = vmatprep.mubr.bf16.mxu0 %v1978_v38  ;;  %v2499_v38 = vld [vmem:[%s3523_s1 + $0x250] ss:$8 sps:$4 sm:$0xff]  }
  0x47   :  { %1670 = vmatpush1.bf16.msra.mxu1 %v2375_v12  ;;  %v1969_v12 = vcombine.low %v2968_v32, %v2968_v32  ;;  %v2495_v32 = vld [vmem:[%s3523_s1 + $0x244] ss:$8 sps:$4 sm:$0xff]  }
  0x48   :  { %1834 = vmatpush1.bf16.msra.mxu0 %v2378_v13  ;;  %1671 = vmatprep.subr.bf16.mxu1 %v2383_v14  ;;  %v2467_v13 = vld [vmem:[%s3523_s1 + $0x200] ss:$8 sps:$4 sm:$0xff]   ;;  %v1977_v14 = vcombine.low %v2981_v36, %v2981_v36  ;;  %v2501_v36 = vld [vmem:[%s3523_s1 + $0x254] ss:$8 sps:$4 sm:$0xff]  }
  0x49   :  { %1835 = vmatprep.subr.bf16.mxu0 %v2386_v15  ;;  %v2472_v15 = vld [vmem:[%s3523_s1 + $0x600] ss:$8 sps:$4 sm:$0xff]  }
  0x4b   :  { %1672 = vmatpush1.bf16.msra.mxu1 %v2381_v16  ;;  %v2477_v16 = vld [vmem:[%s3523_s1 + $0x214] ss:$8 sps:$4 sm:$0xff]  }
  0x4c   :  { %1836 = vmatpush1.bf16.msra.mxu0 %v2384_v17  ;;  %1673 = vmatprep.subr.bf16.mxu1 %v2389_v18  ;;  %v2480_v17 = vld [vmem:[%s3523_s1 + $0x614] ss:$8 sps:$4 sm:$0xff]  }
  0x4d   :  { %1837 = vmatprep.subr.bf16.mxu0 %v2392_v19  ;;  %v3118_v18 = vld [vmem:[%s3524_s0 + $0x10] sm:$0xff] }
  0x4e   :  { %v1972_v19 = vcombine.high %v3118_v18, %v3118_v18 }
  0x4f   :  { %1674 = vmatpush1.bf16.msra.mxu1 %v2387_v20  ;;  %v3125_v20 = vld [vmem:[%s3524_s0 + $0x30] sm:$0xff] }
  0x50   :  { %1838 = vmatpush1.bf16.msra.mxu0 %v2390_v21  ;;  %1675 = vmatprep.subr.bf16.mxu1 %v2395_v22  ;;  %v2475_v21 = vld [vmem:[%s3523_s1 + $0x210] ss:$8 sps:$4 sm:$0xff]  }
  0x51   :  { %1839 = vmatprep.subr.bf16.mxu0 %v2398_v23  ;;  %v2478_v22 = vld [vmem:[%s3523_s1 + $0x610] ss:$8 sps:$4 sm:$0xff]   ;;  %v1980_v23 = vcombine.high %v3125_v20, %v3125_v20 }
  0x53   :  { %1676 = vmatpush1.bf16.msra.mxu1 %v2393_v24  ;;  %v2483_v24 = vld [vmem:[%s3523_s1 + $0x224] ss:$8 sps:$4 sm:$0xff]  }
  0x54   :  { %1840 = vmatpush1.bf16.msra.mxu0 %v2396_v25  ;;  %1677 = vmatprep.subr.bf16.mxu1 %v2401_v26  ;;  %v2486_v25 = vld [vmem:[%s3523_s1 + $0x624] ss:$8 sps:$4 sm:$0xff]   ;;  %v2481_v26 = vld [vmem:[%s3523_s1 + $0x220] ss:$8 sps:$4 sm:$0xff]  }
  0x55   :  { %1841 = vmatprep.subr.bf16.mxu0 %v2404_v27  ;;  %v2484_v27 = vld [vmem:[%s3523_s1 + $0x620] ss:$8 sps:$4 sm:$0xff]  }
  0x57   :  { %1678 = vmatpush1.bf16.msra.mxu1 %v2399_v28  ;;  %v2489_v28 = vld [vmem:[%s3523_s1 + $0x234] ss:$8 sps:$4 sm:$0xff]  }
  0x58   :  { %1842 = vmatpush1.bf16.msra.mxu0 %v2402_v29  ;;  %1679 = vmatprep.subr.bf16.mxu1 %v2407_v30  ;;  %v2492_v29 = vld [vmem:[%s3523_s1 + $0x634] ss:$8 sps:$4 sm:$0xff]   ;;  %v2487_v30 = vld [vmem:[%s3523_s1 + $0x230] ss:$8 sps:$4 sm:$0xff]  }
  0x59   :  { %1843 = vmatprep.subr.bf16.mxu0 %v2410_v31  ;;  %v2490_v31 = vld [vmem:[%s3523_s1 + $0x630] ss:$8 sps:$4 sm:$0xff]  }
  0x5b   :  { %1680 = vmatpush1.bf16.msra.mxu1 %v2405_v33  ;;  %v2498_v33 = vld [vmem:[%s3523_s1 + $0x644] ss:$8 sps:$4 sm:$0xff]  }
  0x5c   :  { %1844 = vmatpush1.bf16.msra.mxu0 %v2408_v34  ;;  %1681 = vmatprep.subr.bf16.mxu1 %v2413_v37  ;;  %v2493_v34 = vld [vmem:[%s3523_s1 + $0x240] ss:$8 sps:$4 sm:$0xff]   ;;  %v2504_v37 = vld [vmem:[%s3523_s1 + $0x654] ss:$8 sps:$4 sm:$0xff]  }
  0x5d   :  { %1845 = vmatprep.subr.bf16.mxu0 %v2416_v39  ;;  %v2502_v39 = vld [vmem:[%s3523_s1 + $0x650] ss:$8 sps:$4 sm:$0xff]  }
  0x5f   :  { %1682 = vmatpush1.bf16.msra.mxu1 %v2411_v40  ;;  %v2507_v40 = vld [vmem:[%s3523_s1 + $0x264] ss:$8 sps:$4 sm:$0xff]  }
  0x60   :  { %1846 = vmatpush1.bf16.msra.mxu0 %v2414_v41  ;;  %1683 = vmatprep.subr.bf16.mxu1 %v2419_v42  ;;  %v2510_v41 = vld [vmem:[%s3523_s1 + $0x664] ss:$8 sps:$4 sm:$0xff]   ;;  %v2505_v42 = vld [vmem:[%s3523_s1 + $0x260] ss:$8 sps:$4 sm:$0xff]  }
  0x61   :  { %1847 = vmatprep.subr.bf16.mxu0 %v2422_v43  ;;  %v2508_v43 = vld [vmem:[%s3523_s1 + $0x660] ss:$8 sps:$4 sm:$0xff]  }
  0x63   :  { %1684 = vmatpush1.bf16.msra.mxu1 %v2417_v44  ;;  %v2513_v44 = vld [vmem:[%s3523_s1 + $0x274] ss:$8 sps:$4 sm:$0xff]  }
  0x64   :  { %1848 = vmatpush1.bf16.msra.mxu0 %v2420_v45  ;;  %1685 = vmatprep.subr.bf16.mxu1 %v2425_v46  ;;  %v2516_v45 = vld [vmem:[%s3523_s1 + $0x674] ss:$8 sps:$4 sm:$0xff]   ;;  %v2511_v46 = vld [vmem:[%s3523_s1 + $0x270] ss:$8 sps:$4 sm:$0xff]  }
  0x65   :  { %1849 = vmatprep.subr.bf16.mxu0 %v2428_v47  ;;  %v2514_v47 = vld [vmem:[%s3523_s1 + $0x670] ss:$8 sps:$4 sm:$0xff]  }
  0x67   :  { %1686 = vmatpush1.bf16.msra.mxu1 %v2423_v48  ;;  %v2519_v48 = vld [vmem:[%s3523_s1 + $0x284] ss:$8 sps:$4 sm:$0xff]  }
  0x68   :  { %1850 = vmatpush1.bf16.msra.mxu0 %v2426_v49  ;;  %1687 = vmatprep.subr.bf16.mxu1 %v2431_v50  ;;  %v2522_v49 = vld [vmem:[%s3523_s1 + $0x684] ss:$8 sps:$4 sm:$0xff]   ;;  %v2517_v50 = vld [vmem:[%s3523_s1 + $0x280] ss:$8 sps:$4 sm:$0xff]  }
  0x69   :  { %1851 = vmatprep.subr.bf16.mxu0 %v2434_v51  ;;  %v2520_v51 = vld [vmem:[%s3523_s1 + $0x680] ss:$8 sps:$4 sm:$0xff]  }
  0x6b   :  { %1688 = vmatpush1.bf16.msra.mxu1 %v2429_v52  ;;  %v2525_v52 = vld [vmem:[%s3523_s1 + $0x294] ss:$8 sps:$4 sm:$0xff]  }
  0x6c   :  { %1852 = vmatpush1.bf16.msra.mxu0 %v2432_v53  ;;  %1689 = vmatprep.subr.bf16.mxu1 %v2437_v54  ;;  %v2528_v53 = vld [vmem:[%s3523_s1 + $0x694] ss:$8 sps:$4 sm:$0xff]   ;;  %v2523_v54 = vld [vmem:[%s3523_s1 + $0x290] ss:$8 sps:$4 sm:$0xff]  }
  0x6d   :  { %1853 = vmatprep.subr.bf16.mxu0 %v2440_v55  ;;  %v2526_v55 = vld [vmem:[%s3523_s1 + $0x690] ss:$8 sps:$4 sm:$0xff]  }
  0x6f   :  { %1690 = vmatpush1.bf16.msra.mxu1 %v2435_v56  ;;  %v2531_v56 = vld [vmem:[%s3523_s1 + $0x2a4] ss:$8 sps:$4 sm:$0xff]  }
  0x70   :  { %1854 = vmatpush1.bf16.msra.mxu0 %v2438_v57  ;;  %1691 = vmatprep.subr.bf16.mxu1 %v2443_v58  ;;  %v2534_v57 = vld [vmem:[%s3523_s1 + $0x6a4] ss:$8 sps:$4 sm:$0xff]   ;;  %v2529_v58 = vld [vmem:[%s3523_s1 + $0x2a0] ss:$8 sps:$4 sm:$0xff]  }
  0x71   :  { %1855 = vmatprep.subr.bf16.mxu0 %v2446_v59  ;;  %v2532_v59 = vld [vmem:[%s3523_s1 + $0x6a0] ss:$8 sps:$4 sm:$0xff]  }
  0x73   :  { %1692 = vmatpush1.bf16.msra.mxu1 %v2441_v60  ;;  %v2537_v60 = vld [vmem:[%s3523_s1 + $0x2b4] ss:$8 sps:$4 sm:$0xff]  }
  0x74   :  { %1856 = vmatpush1.bf16.msra.mxu0 %v2444_v61  ;;  %1693 = vmatprep.subr.bf16.mxu1 %v2449_v62  ;;  %v2540_v61 = vld [vmem:[%s3523_s1 + $0x6b4] ss:$8 sps:$4 sm:$0xff]   ;;  %v2535_v62 = vld [vmem:[%s3523_s1 + $0x2b0] ss:$8 sps:$4 sm:$0xff]  }
  0x75   :  { %1857 = vmatprep.subr.bf16.mxu0 %v2452_v63  ;;  %v2538_v63 = vld [vmem:[%s3523_s1 + $0x6b0] ss:$8 sps:$4 sm:$0xff]  }
  0x77   :  { %1694 = vmatpush1.bf16.msra.mxu1 %v2447_v0  ;;  %v2543_v0 = vld [vmem:[%s3523_s1 + $0x2c4] ss:$8 sps:$4 sm:$0xff]  }
  0x78   :  { %1858 = vmatpush1.bf16.msra.mxu0 %v2450_v1  ;;  %1695 = vmatprep.subr.bf16.mxu1 %v2455_v2  ;;  %v2546_v1 = vld [vmem:[%s3523_s1 + $0x6c4] ss:$8 sps:$4 sm:$0xff]   ;;  %v2541_v2 = vld [vmem:[%s3523_s1 + $0x2c0] ss:$8 sps:$4 sm:$0xff]  }
  0x79   :  { %1859 = vmatprep.subr.bf16.mxu0 %v2458_v3  ;;  %v2544_v3 = vld [vmem:[%s3523_s1 + $0x6c0] ss:$8 sps:$4 sm:$0xff]  }
  0x7b   :  { %1696 = vmatpush1.bf16.msra.mxu1 %v2453_v4  ;;  %v2549_v4 = vld [vmem:[%s3523_s1 + $0x2d4] ss:$8 sps:$4 sm:$0xff]  }
  0x7c   :  { %1860 = vmatpush1.bf16.msra.mxu0 %v2456_v5  ;;  %1697 = vmatprep.subr.bf16.mxu1 %v2461_v6  ;;  %v2552_v5 = vld [vmem:[%s3523_s1 + $0x6d4] ss:$8 sps:$4 sm:$0xff]   ;;  %v2547_v6 = vld [vmem:[%s3523_s1 + $0x2d0] ss:$8 sps:$4 sm:$0xff]  }
  0x7d   :  { %1861 = vmatprep.subr.bf16.mxu0 %v2464_v7  ;;  %v2550_v7 = vld [vmem:[%s3523_s1 + $0x6d0] ss:$8 sps:$4 sm:$0xff]  }
  0x7f   :  { %1698 = vmatpush1.bf16.msra.mxu1 %v2459_v8  ;;  %v2555_v8 = vld [vmem:[%s3523_s1 + $0x2e4] ss:$8 sps:$4 sm:$0xff]  }
  0x80   :  { %1862 = vmatpush1.bf16.msra.mxu0 %v2462_v9  ;;  %1708 = vmatprep.subr.bf16.mxu1 %v2469_v10  ;;  %v2558_v9 = vld [vmem:[%s3523_s1 + $0x6e4] ss:$8 sps:$4 sm:$0xff]   ;;  %v2553_v10 = vld [vmem:[%s3523_s1 + $0x2e0] ss:$8 sps:$4 sm:$0xff]  }
  0x81   :  { %1872 = vmatprep.subr.bf16.mxu0 %v2474_v11  ;;  %v2556_v11 = vld [vmem:[%s3523_s1 + $0x6e0] ss:$8 sps:$4 sm:$0xff]  }
  0x82   :  { %1700 = vmatmul.mubr.bf16.vlgmr.msra.gmra.mrb[0].mxu1 %v1969_v12  ;;  %v2561_v12 = vld [vmem:[%s3523_s1 + $0x2f4] ss:$8 sps:$4 sm:$0xff]  }
  0x83   :  { %1864 = vmatmul.mubr.bf16.vlgmr.msra.gmra.mrb[0].mxu0 %v1977_v14  ;;  %1709 = vmatpush1.bf16.msra.mxu1 %v2467_v13  ;;  %v2564_v13 = vld [vmem:[%s3523_s1 + $0x6f4] ss:$8 sps:$4 sm:$0xff]   ;;  %v2559_v14 = vld [vmem:[%s3523_s1 + $0x2f0] ss:$8 sps:$4 sm:$0xff]  }
  0x84   :  { %1873 = vmatpush1.bf16.msra.mxu0 %v2472_v15  ;;  %1710 = vmatprep.subr.bf16.mxu1 %v2477_v16  ;;  %v2562_v15 = vld [vmem:[%s3523_s1 + $0x6f0] ss:$8 sps:$4 sm:$0xff]   ;;  %v2569_v16 = vld [vmem:[%s3523_s1 + $0x304] ss:$8 sps:$4 sm:$0xff]  }
  0x85   :  { %1874 = vmatprep.subr.bf16.mxu0 %v2480_v17  ;;  %1740 = vmatprep.mubr.bf16.mxu1 %v1972_v19  ;;  %v2574_v17 = vld [vmem:[%s3523_s1 + $0x704] ss:$8 sps:$4 sm:$0xff]   ;;  %v1971_v19 = vcombine.low %v3118_v18, %v3118_v18  ;;  %v2572_v18 = vld [vmem:[%s3523_s1 + $0x700] ss:$8 sps:$4 sm:$0xff]  }
  0x86   :  { %1904 = vmatprep.mubr.bf16.mxu0 %v1980_v23  ;;  %v3321_v23 = vld [vmem:[%s3524_s0 + $0x38] sm:$0xff] }
  0x87   :  { %1711 = vmatpush1.bf16.msra.mxu1 %v2475_v21  ;;  %v1979_v21 = vcombine.low %v3125_v20, %v3125_v20  ;;  %v2577_v20 = vld [vmem:[%s3523_s1 + $0x314] ss:$8 sps:$4 sm:$0xff]  }
  0x88   :  { %1875 = vmatpush1.bf16.msra.mxu0 %v2478_v22  ;;  %1712 = vmatprep.subr.bf16.mxu1 %v2483_v24  ;;  %v3316_v22 = vld [vmem:[%s3524_s0 + $0x18] sm:$0xff]  ;;  %v2567_v24 = vld [vmem:[%s3523_s1 + $0x300] ss:$8 sps:$4 sm:$0xff]  }
  0x89   :  { %1876 = vmatprep.subr.bf16.mxu0 %v2486_v25  ;;  %v2580_v25 = vld [vmem:[%s3523_s1 + $0x714] ss:$8 sps:$4 sm:$0xff]  }
  0x8b   :  { %1713 = vmatpush1.bf16.msra.mxu1 %v2481_v26  ;;  %v1974_v26 = vcombine.high %v3316_v22, %v3316_v22 }
  0x8c   :  { %1877 = vmatpush1.bf16.msra.mxu0 %v2484_v27  ;;  %1714 = vmatprep.subr.bf16.mxu1 %v2489_v28  ;;  %v1982_v27 = vcombine.high %v3321_v23, %v3321_v23  ;;  %v2575_v28 = vld [vmem:[%s3523_s1 + $0x310] ss:$8 sps:$4 sm:$0xff]  }
  0x8d   :  { %1878 = vmatprep.subr.bf16.mxu0 %v2492_v29  ;;  %v2578_v29 = vld [vmem:[%s3523_s1 + $0x710] ss:$8 sps:$4 sm:$0xff]  }
  0x8f   :  { %1715 = vmatpush1.bf16.msra.mxu1 %v2487_v30  ;;  %v2583_v30 = vld [vmem:[%s3523_s1 + $0x324] ss:$8 sps:$4 sm:$0xff]  }
  0x90   :  { %1879 = vmatpush1.bf16.msra.mxu0 %v2490_v31  ;;  %1716 = vmatprep.subr.bf16.mxu1 %v2495_v32  ;;  %v2586_v31 = vld [vmem:[%s3523_s1 + $0x724] ss:$8 sps:$4 sm:$0xff]   ;;  %v2581_v32 = vld [vmem:[%s3523_s1 + $0x320] ss:$8 sps:$4 sm:$0xff]  }
  0x91   :  { %1880 = vmatprep.subr.bf16.mxu0 %v2498_v33  ;;  %v2584_v33 = vld [vmem:[%s3523_s1 + $0x720] ss:$8 sps:$4 sm:$0xff]  }
  0x93   :  { %1717 = vmatpush1.bf16.msra.mxu1 %v2493_v34  ;;  %v2589_v34 = vld [vmem:[%s3523_s1 + $0x334] ss:$8 sps:$4 sm:$0xff]  }
  0x94   :  { %1881 = vmatpush1.bf16.msra.mxu0 %v2496_v35  ;;  %1718 = vmatprep.subr.bf16.mxu1 %v2501_v36  ;;  %v2592_v35 = vld [vmem:[%s3523_s1 + $0x734] ss:$8 sps:$4 sm:$0xff]   ;;  %v2587_v36 = vld [vmem:[%s3523_s1 + $0x330] ss:$8 sps:$4 sm:$0xff]  }
  0x95   :  { %1882 = vmatprep.subr.bf16.mxu0 %v2504_v37  ;;  %v2590_v37 = vld [vmem:[%s3523_s1 + $0x730] ss:$8 sps:$4 sm:$0xff]  }
  0x97   :  { %1719 = vmatpush1.bf16.msra.mxu1 %v2499_v38  ;;  %v2595_v38 = vld [vmem:[%s3523_s1 + $0x344] ss:$8 sps:$4 sm:$0xff]  }
  0x98   :  { %1883 = vmatpush1.bf16.msra.mxu0 %v2502_v39  ;;  %1720 = vmatprep.subr.bf16.mxu1 %v2507_v40  ;;  %v2598_v39 = vld [vmem:[%s3523_s1 + $0x744] ss:$8 sps:$4 sm:$0xff]   ;;  %v2593_v40 = vld [vmem:[%s3523_s1 + $0x340] ss:$8 sps:$4 sm:$0xff]  }
  0x99   :  { %1884 = vmatprep.subr.bf16.mxu0 %v2510_v41  ;;  %v2596_v41 = vld [vmem:[%s3523_s1 + $0x740] ss:$8 sps:$4 sm:$0xff]  }
  0x9b   :  { %1721 = vmatpush1.bf16.msra.mxu1 %v2505_v42  ;;  %v2601_v42 = vld [vmem:[%s3523_s1 + $0x354] ss:$8 sps:$4 sm:$0xff]  }
  0x9c   :  { %1885 = vmatpush1.bf16.msra.mxu0 %v2508_v43  ;;  %1722 = vmatprep.subr.bf16.mxu1 %v2513_v44  ;;  %v2604_v43 = vld [vmem:[%s3523_s1 + $0x754] ss:$8 sps:$4 sm:$0xff]   ;;  %v2599_v44 = vld [vmem:[%s3523_s1 + $0x350] ss:$8 sps:$4 sm:$0xff]  }
  0x9d   :  { %1886 = vmatprep.subr.bf16.mxu0 %v2516_v45  ;;  %v2602_v45 = vld [vmem:[%s3523_s1 + $0x750] ss:$8 sps:$4 sm:$0xff]  }
  0x9f   :  { %1723 = vmatpush1.bf16.msra.mxu1 %v2511_v46  ;;  %v2607_v46 = vld [vmem:[%s3523_s1 + $0x364] ss:$8 sps:$4 sm:$0xff]  }
  0xa0   :  { %1887 = vmatpush1.bf16.msra.mxu0 %v2514_v47  ;;  %1724 = vmatprep.subr.bf16.mxu1 %v2519_v48  ;;  %v2610_v47 = vld [vmem:[%s3523_s1 + $0x764] ss:$8 sps:$4 sm:$0xff]   ;;  %v2605_v48 = vld [vmem:[%s3523_s1 + $0x360] ss:$8 sps:$4 sm:$0xff]  }
  0xa1   :  { %1888 = vmatprep.subr.bf16.mxu0 %v2522_v49  ;;  %v2608_v49 = vld [vmem:[%s3523_s1 + $0x760] ss:$8 sps:$4 sm:$0xff]  }
  0xa3   :  { %1725 = vmatpush1.bf16.msra.mxu1 %v2517_v50  ;;  %v2613_v50 = vld [vmem:[%s3523_s1 + $0x374] ss:$8 sps:$4 sm:$0xff]  }
  0xa4   :  { %1889 = vmatpush1.bf16.msra.mxu0 %v2520_v51  ;;  %1726 = vmatprep.subr.bf16.mxu1 %v2525_v52  ;;  %v2616_v51 = vld [vmem:[%s3523_s1 + $0x774] ss:$8 sps:$4 sm:$0xff]   ;;  %v2611_v52 = vld [vmem:[%s3523_s1 + $0x370] ss:$8 sps:$4 sm:$0xff]  }
  0xa5   :  { %1890 = vmatprep.subr.bf16.mxu0 %v2528_v53  ;;  %v2614_v53 = vld [vmem:[%s3523_s1 + $0x770] ss:$8 sps:$4 sm:$0xff]  }
  0xa7   :  { %1727 = vmatpush1.bf16.msra.mxu1 %v2523_v54  ;;  %v2619_v54 = vld [vmem:[%s3523_s1 + $0x384] ss:$8 sps:$4 sm:$0xff]  }
  0xa8   :  { %1891 = vmatpush1.bf16.msra.mxu0 %v2526_v55  ;;  %1728 = vmatprep.subr.bf16.mxu1 %v2531_v56  ;;  %v2622_v55 = vld [vmem:[%s3523_s1 + $0x784] ss:$8 sps:$4 sm:$0xff]   ;;  %v2617_v56 = vld [vmem:[%s3523_s1 + $0x380] ss:$8 sps:$4 sm:$0xff]  }
  0xa9   :  { %1892 = vmatprep.subr.bf16.mxu0 %v2534_v57  ;;  %v2620_v57 = vld [vmem:[%s3523_s1 + $0x780] ss:$8 sps:$4 sm:$0xff]  }
  0xab   :  { %1729 = vmatpush1.bf16.msra.mxu1 %v2529_v58  ;;  %v2625_v58 = vld [vmem:[%s3523_s1 + $0x394] ss:$8 sps:$4 sm:$0xff]  }
  0xac   :  { %1893 = vmatpush1.bf16.msra.mxu0 %v2532_v59  ;;  %1730 = vmatprep.subr.bf16.mxu1 %v2537_v60  ;;  %v2628_v59 = vld [vmem:[%s3523_s1 + $0x794] ss:$8 sps:$4 sm:$0xff]   ;;  %v2623_v60 = vld [vmem:[%s3523_s1 + $0x390] ss:$8 sps:$4 sm:$0xff]  }
  0xad   :  { %1894 = vmatprep.subr.bf16.mxu0 %v2540_v61  ;;  %v2626_v61 = vld [vmem:[%s3523_s1 + $0x790] ss:$8 sps:$4 sm:$0xff]  }
  0xaf   :  { %1731 = vmatpush1.bf16.msra.mxu1 %v2535_v62  ;;  %v2631_v62 = vld [vmem:[%s3523_s1 + $0x3a4] ss:$8 sps:$4 sm:$0xff]  }
  0xb0   :  { %1895 = vmatpush1.bf16.msra.mxu0 %v2538_v63  ;;  %1732 = vmatprep.subr.bf16.mxu1 %v2543_v0  ;;  %v2634_v63 = vld [vmem:[%s3523_s1 + $0x7a4] ss:$8 sps:$4 sm:$0xff]   ;;  %v2629_v0 = vld [vmem:[%s3523_s1 + $0x3a0] ss:$8 sps:$4 sm:$0xff]  }
  0xb1   :  { %1896 = vmatprep.subr.bf16.mxu0 %v2546_v1  ;;  %v2632_v1 = vld [vmem:[%s3523_s1 + $0x7a0] ss:$8 sps:$4 sm:$0xff]  }
  0xb3   :  { %1733 = vmatpush1.bf16.msra.mxu1 %v2541_v2  ;;  %v2637_v2 = vld [vmem:[%s3523_s1 + $0x3b4] ss:$8 sps:$4 sm:$0xff]  }
  0xb4   :  { %1897 = vmatpush1.bf16.msra.mxu0 %v2544_v3  ;;  %1734 = vmatprep.subr.bf16.mxu1 %v2549_v4  ;;  %v2640_v3 = vld [vmem:[%s3523_s1 + $0x7b4] ss:$8 sps:$4 sm:$0xff]   ;;  %v2635_v4 = vld [vmem:[%s3523_s1 + $0x3b0] ss:$8 sps:$4 sm:$0xff]  }
  0xb5   :  { %1898 = vmatprep.subr.bf16.mxu0 %v2552_v5  ;;  %v2638_v5 = vld [vmem:[%s3523_s1 + $0x7b0] ss:$8 sps:$4 sm:$0xff]  }
  0xb7   :  { %1735 = vmatpush1.bf16.msra.mxu1 %v2547_v6  ;;  %v2643_v6 = vld [vmem:[%s3523_s1 + $0x3c4] ss:$8 sps:$4 sm:$0xff]  }
  0xb8   :  { %1899 = vmatpush1.bf16.msra.mxu0 %v2550_v7  ;;  %1736 = vmatprep.subr.bf16.mxu1 %v2555_v8  ;;  %v2646_v7 = vld [vmem:[%s3523_s1 + $0x7c4] ss:$8 sps:$4 sm:$0xff]   ;;  %v2641_v8 = vld [vmem:[%s3523_s1 + $0x3c0] ss:$8 sps:$4 sm:$0xff]  }
  0xb9   :  { %1900 = vmatprep.subr.bf16.mxu0 %v2558_v9  ;;  %v2644_v9 = vld [vmem:[%s3523_s1 + $0x7c0] ss:$8 sps:$4 sm:$0xff]  }
  0xbb   :  { %1737 = vmatpush1.bf16.msra.mxu1 %v2553_v10  ;;  %v2649_v10 = vld [vmem:[%s3523_s1 + $0x3d4] ss:$8 sps:$4 sm:$0xff]  }
  0xbc   :  { %1901 = vmatpush1.bf16.msra.mxu0 %v2556_v11  ;;  %1738 = vmatprep.subr.bf16.mxu1 %v2561_v12  ;;  %v2652_v11 = vld [vmem:[%s3523_s1 + $0x7d4] ss:$8 sps:$4 sm:$0xff]   ;;  %v2647_v12 = vld [vmem:[%s3523_s1 + $0x3d0] ss:$8 sps:$4 sm:$0xff]  }
  0xbd   :  { %1902 = vmatprep.subr.bf16.mxu0 %v2564_v13  ;;  %v2650_v13 = vld [vmem:[%s3523_s1 + $0x7d0] ss:$8 sps:$4 sm:$0xff]  }
  0xbf   :  { %1739 = vmatpush1.bf16.msra.mxu1 %v2559_v14  ;;  %v2655_v14 = vld [vmem:[%s3523_s1 + $0x3e4] ss:$8 sps:$4 sm:$0xff]  }
  0xc0   :  { %1903 = vmatpush1.bf16.msra.mxu0 %v2562_v15  ;;  %1749 = vmatprep.subr.bf16.mxu1 %v2569_v16  ;;  %v2658_v15 = vld [vmem:[%s3523_s1 + $0x7e4] ss:$8 sps:$4 sm:$0xff]   ;;  %v2653_v16 = vld [vmem:[%s3523_s1 + $0x3e0] ss:$8 sps:$4 sm:$0xff]  }
  0xc1   :  { %1913 = vmatprep.subr.bf16.mxu0 %v2574_v17  ;;  %v2656_v17 = vld [vmem:[%s3523_s1 + $0x7e0] ss:$8 sps:$4 sm:$0xff]  }
  0xc2   :  { %1741 = vmatmul.mubr.bf16.vlgmr.msra.gmra.mrb[0].mxu1 %v1971_v19  ;;  %v2661_v19 = vld [vmem:[%s3523_s1 + $0x3f4] ss:$8 sps:$4 sm:$0xff]  }
  0xc3   :  { %1905 = vmatmul.mubr.bf16.vlgmr.msra.gmra.mrb[0].mxu0 %v1979_v21  ;;  %1750 = vmatpush1.bf16.msra.mxu1 %v2567_v24  ;;  %v2664_v21 = vld [vmem:[%s3523_s1 + $0x7f4] ss:$8 sps:$4 sm:$0xff]   ;;  %v2659_v24 = vld [vmem:[%s3523_s1 + $0x3f0] ss:$8 sps:$4 sm:$0xff]  }
  0xc4   :  { %1914 = vmatpush1.bf16.msra.mxu0 %v2572_v18  ;;  %1751 = vmatprep.subr.bf16.mxu1 %v2577_v20  ;;  %v2662_v18 = vld [vmem:[%s3523_s1 + $0x7f0] ss:$8 sps:$4 sm:$0xff]   ;;  %v1973_v20 = vcombine.low %v3316_v22, %v3316_v22 }
  0xc5   :  { %1915 = vmatprep.subr.bf16.mxu0 %v2580_v25  ;;  %1781 = vmatprep.mubr.bf16.mxu1 %v1974_v26  ;;  %v1981_v25 = vcombine.low %v3321_v23, %v3321_v23  ;;  %v280_v26 = vlaneseq }
  0xc6   :  { %1945 = vmatprep.mubr.bf16.mxu0 %v1982_v27 }
  0xc7   :  { %1752 = vmatpush1.bf16.msra.mxu1 %v2575_v28  ;;  %v281_v27 = vshrl.u32 %v280_v26, 7 }
  0xc8   :  { %1916 = vmatpush1.bf16.msra.mxu0 %v2578_v29  ;;  %1753 = vmatprep.subr.bf16.mxu1 %v2583_v30  ;;  %v278_v29 = vld [vmem:[%s3525_s2] sm:$0x3] }
  0xc9   :  { %1917 = vmatprep.subr.bf16.mxu0 %v2586_v31  ;;  %v282_v28 = vsub.s32 0, %v281_v27  ;;  %v286_v30 = vsub.s32 1, %v281_v27 }
  0xcb   :  { %1754 = vmatpush1.bf16.msra.mxu1 %v2581_v32  ;;  %v283_v31 = vrot.slane %v278_v29, %v282_v28  ;;  %v287_v32 = vrot.slane %v278_v29, %v286_v30 }
  0xcc   :  { %1918 = vmatpush1.bf16.msra.mxu0 %v2584_v33  ;;  %1755 = vmatprep.subr.bf16.mxu1 %v2589_v34 }
  0xcd   :  { %1919 = vmatprep.subr.bf16.mxu0 %v2592_v35 }
  0xcf   :  { %1756 = vmatpush1.bf16.msra.mxu1 %v2587_v36 }
  0xd0   :  { %1920 = vmatpush1.bf16.msra.mxu0 %v2590_v37  ;;  %1757 = vmatprep.subr.bf16.mxu1 %v2595_v38 }
  0xd1   :  { %1921 = vmatprep.subr.bf16.mxu0 %v2598_v39 }
  0xd3   :  { %1758 = vmatpush1.bf16.msra.mxu1 %v2593_v40 }
  0xd4   :  { %1922 = vmatpush1.bf16.msra.mxu0 %v2596_v41  ;;  %1759 = vmatprep.subr.bf16.mxu1 %v2601_v42 }
  0xd5   :  { %1923 = vmatprep.subr.bf16.mxu0 %v2604_v43 }
  0xd7   :  { %1760 = vmatpush1.bf16.msra.mxu1 %v2599_v44 }
  0xd8   :  { %1924 = vmatpush1.bf16.msra.mxu0 %v2602_v45  ;;  %1761 = vmatprep.subr.bf16.mxu1 %v2607_v46 }
  0xd9   :  { %1925 = vmatprep.subr.bf16.mxu0 %v2610_v47 }
  0xdb   :  { %1762 = vmatpush1.bf16.msra.mxu1 %v2605_v48 }
  0xdc   :  { %1926 = vmatpush1.bf16.msra.mxu0 %v2608_v49  ;;  %1763 = vmatprep.subr.bf16.mxu1 %v2613_v50 }
  0xdd   :  { %1927 = vmatprep.subr.bf16.mxu0 %v2616_v51 }
  0xdf   :  { %1764 = vmatpush1.bf16.msra.mxu1 %v2611_v52 }
  0xe0   :  { %1928 = vmatpush1.bf16.msra.mxu0 %v2614_v53  ;;  %1765 = vmatprep.subr.bf16.mxu1 %v2619_v54 }
  0xe1   :  { %1929 = vmatprep.subr.bf16.mxu0 %v2622_v55 }
  0xe3   :  { %1766 = vmatpush1.bf16.msra.mxu1 %v2617_v56 }
  0xe4   :  { %1930 = vmatpush1.bf16.msra.mxu0 %v2620_v57  ;;  %1767 = vmatprep.subr.bf16.mxu1 %v2625_v58 }
  0xe5   :  { %1931 = vmatprep.subr.bf16.mxu0 %v2628_v59 }
  0xe7   :  { %1768 = vmatpush1.bf16.msra.mxu1 %v2623_v60 }
  0xe8   :  { %1932 = vmatpush1.bf16.msra.mxu0 %v2626_v61  ;;  %1769 = vmatprep.subr.bf16.mxu1 %v2631_v62 }
  0xe9   :  { %1933 = vmatprep.subr.bf16.mxu0 %v2634_v63 }
  0xeb   :  { %1770 = vmatpush1.bf16.msra.mxu1 %v2629_v0 }
  0xec   :  { %1934 = vmatpush1.bf16.msra.mxu0 %v2632_v1  ;;  %1771 = vmatprep.subr.bf16.mxu1 %v2637_v2 }
  0xed   :  { %1935 = vmatprep.subr.bf16.mxu0 %v2640_v3 }
  0xef   :  { %1772 = vmatpush1.bf16.msra.mxu1 %v2635_v4 }
  0xf0   :  { %1936 = vmatpush1.bf16.msra.mxu0 %v2638_v5  ;;  %1773 = vmatprep.subr.bf16.mxu1 %v2643_v6 }
  0xf1   :  { %1937 = vmatprep.subr.bf16.mxu0 %v2646_v7 }
  0xf3   :  { %1774 = vmatpush1.bf16.msra.mxu1 %v2641_v8 }
  0xf4   :  { %1938 = vmatpush1.bf16.msra.mxu0 %v2644_v9  ;;  %1775 = vmatprep.subr.bf16.mxu1 %v2649_v10 }
  0xf5   :  { %1939 = vmatprep.subr.bf16.mxu0 %v2652_v11 }
  0xf7   :  { %1776 = vmatpush1.bf16.msra.mxu1 %v2647_v12 }
  0xf8   :  { %1940 = vmatpush1.bf16.msra.mxu0 %v2650_v13  ;;  %1777 = vmatprep.subr.bf16.mxu1 %v2655_v14 }
  0xf9   :  { %1941 = vmatprep.subr.bf16.mxu0 %v2658_v15 }
  0xfb   :  { %1778 = vmatpush1.bf16.msra.mxu1 %v2653_v16 }
  0xfc   :  { %1942 = vmatpush1.bf16.msra.mxu0 %v2656_v17  ;;  %1779 = vmatprep.subr.bf16.mxu1 %v2661_v19 }
  0xfd   :  { %1943 = vmatprep.subr.bf16.mxu0 %v2664_v21 }
  0xff   :  { %1780 = vmatpush1.bf16.msra.mxu1 %v2659_v24 }
 0x100   :  { %1944 = vmatpush1.bf16.msra.mxu0 %v2662_v18 }
 0x102   :  { %1782 = vmatmul.mubr.bf16.vlgmr.msra.gmra.mrb[0].mxu1 %v1973_v20 }
 0x103   :  { %1946 = vmatmul.mubr.bf16.vlgmr.msra.gmra.mrb[0].mxu0 %v1981_v25 }
 0x1d5   :  { %v1783_v33 = vpop.f32.mrb[0].mxu1 }
 0x1d6   :  { %v1947_v34 = vpop.f32.mrb[0].mxu0  ;;  %v2241_v22 = vadd.f32 %v1783_v33, %v283_v31  ;;  %v1785_v35 = vpop.f32.mrb[1].mxu1 }
 0x1d7   :  { %v1949_v36 = vpop.f32.mrb[1].mxu0  ;;  %v2243_v23 = vadd.f32 %v1785_v35, %v287_v32  ;;  %v1787_v37 = vpop.f32.mrb[2].mxu1 }
 0x1d8   :  { %v1951_v38 = vpop.f32.mrb[2].mxu0  ;;  %v2242_v39 = vadd.f32 %v2241_v22, %v1947_v34  ;;  %v1788_v40 = vpop.f32.mrb[3].mxu1 }
 0x1d9   :  { %v1952_v41 = vpop.f32.mrb[3].mxu0  ;;  %v2244_v42 = vadd.f32 %v2243_v23, %v1949_v36 }
 0x1db   :  { %v2240_v43 = vpack.c.bf16 %v2244_v42, %v2242_v39 }
 0x1dd   :  { %1962 = vst [vmem:[%s3526_s3] sm:$0xff] %v2240_v43 }

// kernel: discriminator_forward.11
= control target key start
LH: loop header
LB: loop body
LE: loop exit
PB: predicated region body
PF: predicated region fallthrough
CT: control target
= control target key end

     0   :  { %s4614_s1 = inlined_call_operand.vmem [shape: bf16[4096,128], index: 1, kind: input, shape index: {}]   ;;  %s4615_s0 = inlined_call_operand.vmem [shape: bf16[8,4096], index: 0, kind: input, shape index: {}]   ;;  %s4616_s2 = inlined_call_operand.vmem [shape: f32[1,128], index: 2, kind: input, shape index: {}]   ;;  %s4617_s3 = inlined_call_operand.vmem [shape: f32[8,128], index: 3, kind: output, shape index: {}]  }
   0x1   :  { %v3484_v0 = vld [vmem:[%s4614_s1 + $0x40] sm:$0xff]   ;;  %v3488_v4 = vld [vmem:[%s4614_s1 + $0x48] sm:$0xff]   ;;  %v3492_v8 = vld [vmem:[%s4614_s1 + $0x50] sm:$0xff]  }
   0x2   :  { %v3485_v1 = vld [vmem:[%s4614_s1 + $0xc0] sm:$0xff]   ;;  %3132 = vmatprep.subr.bf16.mxu0 %v3484_v0  ;;  %v3489_v5 = vld [vmem:[%s4614_s1 + $0xc8] sm:$0xff]   ;;  %v3493_v9 = vld [vmem:[%s4614_s1 + $0xd0] sm:$0xff]  }
   0x3   :  { %v3486_v2 = vld [vmem:[%s4614_s1] sm:$0xff]   ;;  %3154 = vmatprep.subr.bf16.mxu1 %v3485_v1  ;;  %v3490_v6 = vld [vmem:[%s4614_s1 + $0x8] sm:$0xff]   ;;  %v3494_v10 = vld [vmem:[%s4614_s1 + $0x10] sm:$0xff]  }
   0x4   :  { %v3487_v3 = vld [vmem:[%s4614_s1 + $0x80] sm:$0xff]   ;;  %3133 = vmatpush3.bf16.msra.mxu0 %v3486_v2  ;;  %v3491_v7 = vld [vmem:[%s4614_s1 + $0x88] sm:$0xff]   ;;  %v3495_v11 = vld [vmem:[%s4614_s1 + $0x90] sm:$0xff]  }
   0x5   :  { %3155 = vmatpush3.bf16.msra.mxu1 %v3487_v3  ;;  %3134 = vmatprep.subr.bf16.mxu0 %v3488_v4  ;;  %v3496_v12 = vld [vmem:[%s4614_s1 + $0x58] sm:$0xff]   ;;  %v3500_v16 = vld [vmem:[%s4614_s1 + $0x60] sm:$0xff]   ;;  %v3504_v20 = vld [vmem:[%s4614_s1 + $0x68] sm:$0xff]  }
   0x6   :  { %3156 = vmatprep.subr.bf16.mxu1 %v3489_v5  ;;  %v3497_v13 = vld [vmem:[%s4614_s1 + $0xd8] sm:$0xff]   ;;  %v3501_v17 = vld [vmem:[%s4614_s1 + $0xe0] sm:$0xff]   ;;  %v3505_v21 = vld [vmem:[%s4614_s1 + $0xe8] sm:$0xff]  }
   0x7   :  { %v3498_v14 = vld [vmem:[%s4614_s1 + $0x18] sm:$0xff]   ;;  %v3502_v18 = vld [vmem:[%s4614_s1 + $0x20] sm:$0xff]   ;;  %v3506_v22 = vld [vmem:[%s4614_s1 + $0x28] sm:$0xff]  }
   0x8   :  { %3135 = vmatpush3.bf16.msra.mxu0 %v3490_v6  ;;  %v3499_v15 = vld [vmem:[%s4614_s1 + $0x98] sm:$0xff]   ;;  %v3503_v19 = vld [vmem:[%s4614_s1 + $0xa0] sm:$0xff]   ;;  %v3507_v23 = vld [vmem:[%s4614_s1 + $0xa8] sm:$0xff]  }
   0x9   :  { %3157 = vmatpush3.bf16.msra.mxu1 %v3491_v7  ;;  %3136 = vmatprep.subr.bf16.mxu0 %v3492_v8  ;;  %v3508_v24 = vld [vmem:[%s4614_s1 + $0x70] sm:$0xff]   ;;  %v3512_v28 = vld [vmem:[%s4614_s1 + $0x78] sm:$0xff]   ;;  %v15_v32 = vld [vmem:[%s4615_s0] sm:$0xff] }
   0xa   :  { %3158 = vmatprep.subr.bf16.mxu1 %v3493_v9  ;;  %v3509_v25 = vld [vmem:[%s4614_s1 + $0xf0] sm:$0xff]   ;;  %v3513_v29 = vld [vmem:[%s4614_s1 + $0xf8] sm:$0xff]   ;;  %v16_v33 = vld [vmem:[%s4615_s0 + $0x8] sm:$0xff]  ;;  %v2844_v34 = vcombine.low %v15_v32, %v15_v32  ;;  %v2845_v35 = vcombine.high %v15_v32, %v15_v32 }
   0xb   :  { %v3510_v26 = vld [vmem:[%s4614_s1 + $0x30] sm:$0xff]   ;;  %v3514_v30 = vld [vmem:[%s4614_s1 + $0x38] sm:$0xff]   ;;  %v2846_v36 = vcombine.low %v16_v33, %v16_v33  ;;  %v2847_v37 = vcombine.high %v16_v33, %v16_v33  ;;  %v3520_v38 = vld [vmem:[%s4614_s1 + $0x140] sm:$0xff]  }
   0xc   :  { %3137 = vmatpush3.bf16.msra.mxu0 %v3494_v10  ;;  %v3511_v27 = vld [vmem:[%s4614_s1 + $0xb0] sm:$0xff]   ;;  %v3515_v31 = vld [vmem:[%s4614_s1 + $0xb8] sm:$0xff]   ;;  %v3521_v39 = vld [vmem:[%s4614_s1 + $0x1c0] sm:$0xff]   ;;  %2230 = vmatprep.mubr.bf16.mxu0 %v2845_v35 }
   0xd   :  { %3159 = vmatpush3.bf16.msra.mxu1 %v3495_v11  ;;  %3138 = vmatprep.subr.bf16.mxu0 %v3496_v12  ;;  %v3522_v40 = vld [vmem:[%s4614_s1 + $0x100] sm:$0xff]   ;;  %v3524_v42 = vld [vmem:[%s4614_s1 + $0x148] sm:$0xff]   ;;  %v3528_v46 = vld [vmem:[%s4614_s1 + $0x150] sm:$0xff]  }
   0xe   :  { %3160 = vmatprep.subr.bf16.mxu1 %v3497_v13  ;;  %2270 = vmatprep.mubr.bf16.mxu1 %v2847_v37  ;;  %v3523_v41 = vld [vmem:[%s4614_s1 + $0x180] sm:$0xff]   ;;  %v3525_v43 = vld [vmem:[%s4614_s1 + $0x1c8] sm:$0xff]   ;;  %v3529_v47 = vld [vmem:[%s4614_s1 + $0x1d0] sm:$0xff]  }
   0xf   :  { %v3526_v44 = vld [vmem:[%s4614_s1 + $0x108] sm:$0xff]   ;;  %v3530_v48 = vld [vmem:[%s4614_s1 + $0x110] sm:$0xff]   ;;  %v3532_v50 = vld [vmem:[%s4614_s1 + $0x158] sm:$0xff]  }
  0x10   :  { %3139 = vmatpush3.bf16.msra.mxu0 %v3498_v14  ;;  %v3527_v45 = vld [vmem:[%s4614_s1 + $0x188] sm:$0xff]   ;;  %v3531_v49 = vld [vmem:[%s4614_s1 + $0x190] sm:$0xff]   ;;  %v3533_v51 = vld [vmem:[%s4614_s1 + $0x1d8] sm:$0xff]  }
  0x11   :  { %3161 = vmatpush3.bf16.msra.mxu1 %v3499_v15  ;;  %3140 = vmatprep.subr.bf16.mxu0 %v3500_v16  ;;  %v3534_v52 = vld [vmem:[%s4614_s1 + $0x118] sm:$0xff]   ;;  %v3536_v54 = vld [vmem:[%s4614_s1 + $0x160] sm:$0xff]   ;;  %v3540_v58 = vld [vmem:[%s4614_s1 + $0x168] sm:$0xff]  }
  0x12   :  { %3162 = vmatprep.subr.bf16.mxu1 %v3501_v17  ;;  %v3535_v53 = vld [vmem:[%s4614_s1 + $0x198] sm:$0xff]   ;;  %v3537_v55 = vld [vmem:[%s4614_s1 + $0x1e0] sm:$0xff]   ;;  %v3541_v59 = vld [vmem:[%s4614_s1 + $0x1e8] sm:$0xff]  }
  0x13   :  { %v3538_v56 = vld [vmem:[%s4614_s1 + $0x120] sm:$0xff]   ;;  %v3542_v60 = vld [vmem:[%s4614_s1 + $0x128] sm:$0xff]   ;;  %v3544_v62 = vld [vmem:[%s4614_s1 + $0x170] sm:$0xff]  }
  0x14   :  { %3141 = vmatpush3.bf16.msra.mxu0 %v3502_v18  ;;  %v3539_v57 = vld [vmem:[%s4614_s1 + $0x1a0] sm:$0xff]   ;;  %v3543_v61 = vld [vmem:[%s4614_s1 + $0x1a8] sm:$0xff]   ;;  %v3545_v63 = vld [vmem:[%s4614_s1 + $0x1f0] sm:$0xff]  }
  0x15   :  { %3163 = vmatpush3.bf16.msra.mxu1 %v3503_v19  ;;  %3142 = vmatprep.subr.bf16.mxu0 %v3504_v20  ;;  %v3546_v0 = vld [vmem:[%s4614_s1 + $0x130] sm:$0xff]   ;;  %v3548_v2 = vld [vmem:[%s4614_s1 + $0x178] sm:$0xff]   ;;  %v3556_v12 = vld [vmem:[%s4614_s1 + $0x240] sm:$0xff]  }
  0x16   :  { %3164 = vmatprep.subr.bf16.mxu1 %v3505_v21  ;;  %v3547_v1 = vld [vmem:[%s4614_s1 + $0x1b0] sm:$0xff]   ;;  %v3549_v3 = vld [vmem:[%s4614_s1 + $0x1f8] sm:$0xff]   ;;  %v3557_v13 = vld [vmem:[%s4614_s1 + $0x2c0] sm:$0xff]  }
  0x17   :  { %v3550_v4 = vld [vmem:[%s4614_s1 + $0x138] sm:$0xff]   ;;  %v17_v6 = vld [vmem:[%s4615_s0 + $0x10] sm:$0xff]  ;;  %v3558_v14 = vld [vmem:[%s4614_s1 + $0x200] sm:$0xff]  }
  0x18   :  { %3143 = vmatpush3.bf16.msra.mxu0 %v3506_v22  ;;  %v3551_v5 = vld [vmem:[%s4614_s1 + $0x1b8] sm:$0xff]   ;;  %v2848_v7 = vcombine.low %v17_v6, %v17_v6  ;;  %v2849_v8 = vcombine.high %v17_v6, %v17_v6  ;;  %v3559_v15 = vld [vmem:[%s4614_s1 + $0x280] sm:$0xff]   ;;  %v3560_v16 = vld [vmem:[%s4614_s1 + $0x248] sm:$0xff]  }
  0x19   :  { %3165 = vmatpush3.bf16.msra.mxu1 %v3507_v23  ;;  %3144 = vmatprep.subr.bf16.mxu0 %v3508_v24  ;;  %v18_v9 = vld [vmem:[%s4615_s0 + $0x18] sm:$0xff]  ;;  %v3561_v17 = vld [vmem:[%s4614_s1 + $0x2c8] sm:$0xff]   ;;  %v3564_v20 = vld [vmem:[%s4614_s1 + $0x250] sm:$0xff]  }
  0x1a   :  { %3166 = vmatprep.subr.bf16.mxu1 %v3509_v25  ;;  %v2850_v10 = vcombine.low %v18_v9, %v18_v9  ;;  %v2851_v11 = vcombine.high %v18_v9, %v18_v9  ;;  %v3562_v18 = vld [vmem:[%s4614_s1 + $0x208] sm:$0xff]   ;;  %v3565_v21 = vld [vmem:[%s4614_s1 + $0x2d0] sm:$0xff]   ;;  %v3568_v24 = vld [vmem:[%s4614_s1 + $0x258] sm:$0xff]  }
  0x1b   :  { %v3563_v19 = vld [vmem:[%s4614_s1 + $0x288] sm:$0xff]   ;;  %v3566_v22 = vld [vmem:[%s4614_s1 + $0x210] sm:$0xff]   ;;  %v3569_v25 = vld [vmem:[%s4614_s1 + $0x2d8] sm:$0xff]  }
  0x1c   :  { %3145 = vmatpush3.bf16.msra.mxu0 %v3510_v26  ;;  %v3567_v23 = vld [vmem:[%s4614_s1 + $0x290] sm:$0xff]   ;;  %v3570_v26 = vld [vmem:[%s4614_s1 + $0x218] sm:$0xff]   ;;  %v3576_v32 = vld [vmem:[%s4614_s1 + $0x268] sm:$0xff]  }
  0x1d   :  { %3167 = vmatpush3.bf16.msra.mxu1 %v3511_v27  ;;  %3146 = vmatprep.subr.bf16.mxu0 %v3512_v28  ;;  %v3571_v27 = vld [vmem:[%s4614_s1 + $0x298] sm:$0xff]   ;;  %v3572_v28 = vld [vmem:[%s4614_s1 + $0x260] sm:$0xff]   ;;  %v3577_v33 = vld [vmem:[%s4614_s1 + $0x2e8] sm:$0xff]  }
  0x1e   :  { %3168 = vmatprep.subr.bf16.mxu1 %v3513_v29  ;;  %v3573_v29 = vld [vmem:[%s4614_s1 + $0x2e0] sm:$0xff]   ;;  %v3579_v35 = vld [vmem:[%s4614_s1 + $0x2a8] sm:$0xff]   ;;  %v3581_v37 = vld [vmem:[%s4614_s1 + $0x2f0] sm:$0xff]  }
  0x1f   :  { %v3612_v6 = vld [vmem:[%s4614_s1 + $0x368] sm:$0xff]  }
  0x20   :  { %3147 = vmatpush3.bf16.msra.mxu0 %v3514_v30  ;;  %v3574_v30 = vld [vmem:[%s4614_s1 + $0x220] sm:$0xff]   ;;  %v3615_v9 = vld [vmem:[%s4614_s1 + $0x3a8] sm:$0xff]  }
  0x21   :  { %3169 = vmatpush3.bf16.msra.mxu1 %v3515_v31  ;;  %3176 = vmatprep.subr.bf16.mxu0 %v3520_v38  ;;  %v3575_v31 = vld [vmem:[%s4614_s1 + $0x2a0] sm:$0xff]   ;;  %v3582_v38 = vld [vmem:[%s4614_s1 + $0x230] sm:$0xff]  }
  0x22   :  { %3198 = vmatprep.subr.bf16.mxu1 %v3521_v39  ;;  %v3583_v39 = vld [vmem:[%s4614_s1 + $0x2b0] sm:$0xff]  }
  0x23   :  { %2231 = vmatmul.mubr.bf16.vlgmr.msra.gmra.mrb[0].mxu0 %v2844_v34  ;;  %v3578_v34 = vld [vmem:[%s4614_s1 + $0x228] sm:$0xff]  }
  0x24   :  { %2271 = vmatmul.mubr.bf16.vlgmr.msra.gmra.mrb[0].mxu1 %v2846_v36  ;;  %3177 = vmatpush3.bf16.msra.mxu0 %v3522_v40  ;;  %v3580_v36 = vld [vmem:[%s4614_s1 + $0x270] sm:$0xff]   ;;  %v3584_v40 = vld [vmem:[%s4614_s1 + $0x278] sm:$0xff]  }
  0x25   :  { %3199 = vmatpush3.bf16.msra.mxu1 %v3523_v41  ;;  %3178 = vmatprep.subr.bf16.mxu0 %v3524_v42  ;;  %v3585_v41 = vld [vmem:[%s4614_s1 + $0x2f8] sm:$0xff]  }
  0x26   :  { %3200 = vmatprep.subr.bf16.mxu1 %v3525_v43  ;;  %2310 = vmatprep.mubr.bf16.mxu0 %v2849_v8  ;;  %v3586_v42 = vld [vmem:[%s4614_s1 + $0x238] sm:$0xff]   ;;  %v3614_v8 = vld [vmem:[%s4614_s1 + $0x328] sm:$0xff]  }
  0x27   :  { %2350 = vmatprep.mubr.bf16.mxu1 %v2851_v11  ;;  %v3587_v43 = vld [vmem:[%s4614_s1 + $0x2b8] sm:$0xff]   ;;  %v3617_v11 = vld [vmem:[%s4614_s1 + $0x3f0] sm:$0xff]  }
  0x28   :  { %3179 = vmatpush3.bf16.msra.mxu0 %v3526_v44  ;;  %v19_v44 = vld [vmem:[%s4615_s0 + $0x20] sm:$0xff] }
  0x29   :  { %3201 = vmatpush3.bf16.msra.mxu1 %v3527_v45  ;;  %3180 = vmatprep.subr.bf16.mxu0 %v3528_v46  ;;  %v20_v45 = vld [vmem:[%s4615_s0 + $0x28] sm:$0xff]  ;;  %v2852_v46 = vcombine.low %v19_v44, %v19_v44 }
  0x2a   :  { %3202 = vmatprep.subr.bf16.mxu1 %v3529_v47  ;;  %v2853_v47 = vcombine.high %v19_v44, %v19_v44  ;;  %v3648_v44 = vld [vmem:[%s4614_s1 + $0x468] sm:$0xff]  }
  0x2c   :  { %3181 = vmatpush3.bf16.msra.mxu0 %v3530_v48  ;;  %v2854_v48 = vcombine.low %v20_v45, %v20_v45 }
  0x2d   :  { %3203 = vmatpush3.bf16.msra.mxu1 %v3531_v49  ;;  %3182 = vmatprep.subr.bf16.mxu0 %v3532_v50  ;;  %v2855_v49 = vcombine.high %v20_v45, %v20_v45  ;;  %v3592_v50 = vld [vmem:[%s4614_s1 + $0x340] sm:$0xff]   ;;  %v3649_v45 = vld [vmem:[%s4614_s1 + $0x4e8] sm:$0xff]  }
  0x2e   :  { %3204 = vmatprep.subr.bf16.mxu1 %v3533_v51  ;;  %v3593_v51 = vld [vmem:[%s4614_s1 + $0x3c0] sm:$0xff]  }
  0x30   :  { %3183 = vmatpush3.bf16.msra.mxu0 %v3534_v52  ;;  %v3594_v52 = vld [vmem:[%s4614_s1 + $0x300] sm:$0xff]  }
  0x31   :  { %3205 = vmatpush3.bf16.msra.mxu1 %v3535_v53  ;;  %3184 = vmatprep.subr.bf16.mxu0 %v3536_v54  ;;  %v3595_v53 = vld [vmem:[%s4614_s1 + $0x380] sm:$0xff]   ;;  %v3596_v54 = vld [vmem:[%s4614_s1 + $0x348] sm:$0xff]  }
  0x32   :  { %3206 = vmatprep.subr.bf16.mxu1 %v3537_v55  ;;  %v3597_v55 = vld [vmem:[%s4614_s1 + $0x3c8] sm:$0xff]  }
  0x34   :  { %3185 = vmatpush3.bf16.msra.mxu0 %v3538_v56  ;;  %v3598_v56 = vld [vmem:[%s4614_s1 + $0x308] sm:$0xff]  }
  0x35   :  { %3207 = vmatpush3.bf16.msra.mxu1 %v3539_v57  ;;  %3186 = vmatprep.subr.bf16.mxu0 %v3540_v58  ;;  %v3599_v57 = vld [vmem:[%s4614_s1 + $0x388] sm:$0xff]   ;;  %v3600_v58 = vld [vmem:[%s4614_s1 + $0x350] sm:$0xff]  }
  0x36   :  { %3208 = vmatprep.subr.bf16.mxu1 %v3541_v59  ;;  %v3601_v59 = vld [vmem:[%s4614_s1 + $0x3d0] sm:$0xff]  }
  0x38   :  { %3187 = vmatpush3.bf16.msra.mxu0 %v3542_v60  ;;  %v3602_v60 = vld [vmem:[%s4614_s1 + $0x310] sm:$0xff]  }
  0x39   :  { %3209 = vmatpush3.bf16.msra.mxu1 %v3543_v61  ;;  %3188 = vmatprep.subr.bf16.mxu0 %v3544_v62  ;;  %v3603_v61 = vld [vmem:[%s4614_s1 + $0x390] sm:$0xff]   ;;  %v3604_v62 = vld [vmem:[%s4614_s1 + $0x358] sm:$0xff]  }
  0x3a   :  { %3210 = vmatprep.subr.bf16.mxu1 %v3545_v63  ;;  %v3605_v63 = vld [vmem:[%s4614_s1 + $0x3d8] sm:$0xff]  }
  0x3c   :  { %3189 = vmatpush3.bf16.msra.mxu0 %v3546_v0  ;;  %v3606_v0 = vld [vmem:[%s4614_s1 + $0x318] sm:$0xff]  }
  0x3d   :  { %3211 = vmatpush3.bf16.msra.mxu1 %v3547_v1  ;;  %3190 = vmatprep.subr.bf16.mxu0 %v3548_v2  ;;  %v3607_v1 = vld [vmem:[%s4614_s1 + $0x398] sm:$0xff]   ;;  %v3608_v2 = vld [vmem:[%s4614_s1 + $0x360] sm:$0xff]  }
  0x3e   :  { %3212 = vmatprep.subr.bf16.mxu1 %v3549_v3  ;;  %v3609_v3 = vld [vmem:[%s4614_s1 + $0x3e0] sm:$0xff]  }
  0x40   :  { %3191 = vmatpush3.bf16.msra.mxu0 %v3550_v4  ;;  %v3610_v4 = vld [vmem:[%s4614_s1 + $0x320] sm:$0xff]  }
  0x41   :  { %3213 = vmatpush3.bf16.msra.mxu1 %v3551_v5  ;;  %3220 = vmatprep.subr.bf16.mxu0 %v3556_v12  ;;  %v3611_v5 = vld [vmem:[%s4614_s1 + $0x3a0] sm:$0xff]   ;;  %v3618_v12 = vld [vmem:[%s4614_s1 + $0x330] sm:$0xff]  }
  0x42   :  { %3242 = vmatprep.subr.bf16.mxu1 %v3557_v13  ;;  %v3619_v13 = vld [vmem:[%s4614_s1 + $0x3b0] sm:$0xff]  }
  0x43   :  { %2311 = vmatmul.mubr.bf16.vlgmr.msra.gmra.mrb[4].mxu0 %v2848_v7  ;;  %v3613_v7 = vld [vmem:[%s4614_s1 + $0x3e8] sm:$0xff]  }
  0x44   :  { %2351 = vmatmul.mubr.bf16.vlgmr.msra.gmra.mrb[4].mxu1 %v2850_v10  ;;  %3221 = vmatpush3.bf16.msra.mxu0 %v3558_v14  ;;  %v3616_v10 = vld [vmem:[%s4614_s1 + $0x370] sm:$0xff]   ;;  %v3620_v14 = vld [vmem:[%s4614_s1 + $0x378] sm:$0xff]  }
  0x45   :  { %3243 = vmatpush3.bf16.msra.mxu1 %v3559_v15  ;;  %3222 = vmatprep.subr.bf16.mxu0 %v3560_v16  ;;  %v3621_v15 = vld [vmem:[%s4614_s1 + $0x3f8] sm:$0xff]  }
  0x46   :  { %3244 = vmatprep.subr.bf16.mxu1 %v3561_v17  ;;  %2390 = vmatprep.mubr.bf16.mxu0 %v2853_v47  ;;  %v3622_v16 = vld [vmem:[%s4614_s1 + $0x338] sm:$0xff]   ;;  %v3651_v47 = vld [vmem:[%s4614_s1 + $0x4a8] sm:$0xff]  }
  0x47   :  { %2430 = vmatprep.mubr.bf16.mxu1 %v2855_v49  ;;  %v3623_v17 = vld [vmem:[%s4614_s1 + $0x3b8] sm:$0xff]   ;;  %v3653_v49 = vld [vmem:[%s4614_s1 + $0x4f0] sm:$0xff]  }
  0x48   :  { %3223 = vmatpush3.bf16.msra.mxu0 %v3562_v18  ;;  %v21_v18 = vld [vmem:[%s4615_s0 + $0x30] sm:$0xff] }
  0x49   :  { %3245 = vmatpush3.bf16.msra.mxu1 %v3563_v19  ;;  %3224 = vmatprep.subr.bf16.mxu0 %v3564_v20  ;;  %v22_v19 = vld [vmem:[%s4615_s0 + $0x38] sm:$0xff]  ;;  %v2856_v20 = vcombine.low %v21_v18, %v21_v18 }
  0x4a   :  { %3246 = vmatprep.subr.bf16.mxu1 %v3565_v21  ;;  %v2857_v21 = vcombine.high %v21_v18, %v21_v18  ;;  %v3684_v18 = vld [vmem:[%s4614_s1 + $0x568] sm:$0xff]  }
  0x4c   :  { %3225 = vmatpush3.bf16.msra.mxu0 %v3566_v22  ;;  %v2858_v22 = vcombine.low %v22_v19, %v22_v19 }
  0x4d   :  { %3247 = vmatpush3.bf16.msra.mxu1 %v3567_v23  ;;  %3226 = vmatprep.subr.bf16.mxu0 %v3568_v24  ;;  %v3628_v23 = vld [vmem:[%s4614_s1 + $0x440] sm:$0xff]   ;;  %v2859_v24 = vcombine.high %v22_v19, %v22_v19  ;;  %v3685_v19 = vld [vmem:[%s4614_s1 + $0x5e8] sm:$0xff]  }
  0x4e   :  { %3248 = vmatprep.subr.bf16.mxu1 %v3569_v25  ;;  %v3629_v25 = vld [vmem:[%s4614_s1 + $0x4c0] sm:$0xff]  }
  0x50   :  { %3227 = vmatpush3.bf16.msra.mxu0 %v3570_v26  ;;  %v3630_v26 = vld [vmem:[%s4614_s1 + $0x400] sm:$0xff]  }
  0x51   :  { %3249 = vmatpush3.bf16.msra.mxu1 %v3571_v27  ;;  %3228 = vmatprep.subr.bf16.mxu0 %v3572_v28  ;;  %v3631_v27 = vld [vmem:[%s4614_s1 + $0x480] sm:$0xff]   ;;  %v3632_v28 = vld [vmem:[%s4614_s1 + $0x448] sm:$0xff]  }
  0x52   :  { %3250 = vmatprep.subr.bf16.mxu1 %v3573_v29  ;;  %v3633_v29 = vld [vmem:[%s4614_s1 + $0x4c8] sm:$0xff]  }
  0x54   :  { %3229 = vmatpush3.bf16.msra.mxu0 %v3574_v30  ;;  %v3634_v30 = vld [vmem:[%s4614_s1 + $0x408] sm:$0xff]  }
  0x55   :  { %3251 = vmatpush3.bf16.msra.mxu1 %v3575_v31  ;;  %3230 = vmatprep.subr.bf16.mxu0 %v3576_v32  ;;  %v3635_v31 = vld [vmem:[%s4614_s1 + $0x488] sm:$0xff]   ;;  %v3636_v32 = vld [vmem:[%s4614_s1 + $0x450] sm:$0xff]  }
  0x56   :  { %3252 = vmatprep.subr.bf16.mxu1 %v3577_v33  ;;  %v3637_v33 = vld [vmem:[%s4614_s1 + $0x4d0] sm:$0xff]  }
  0x58   :  { %3231 = vmatpush3.bf16.msra.mxu0 %v3578_v34  ;;  %v3638_v34 = vld [vmem:[%s4614_s1 + $0x410] sm:$0xff]  }
  0x59   :  { %3253 = vmatpush3.bf16.msra.mxu1 %v3579_v35  ;;  %3232 = vmatprep.subr.bf16.mxu0 %v3580_v36  ;;  %v3639_v35 = vld [vmem:[%s4614_s1 + $0x490] sm:$0xff]   ;;  %v3640_v36 = vld [vmem:[%s4614_s1 + $0x458] sm:$0xff]  }
  0x5a   :  { %3254 = vmatprep.subr.bf16.mxu1 %v3581_v37  ;;  %v3641_v37 = vld [vmem:[%s4614_s1 + $0x4d8] sm:$0xff]  }
  0x5c   :  { %3233 = vmatpush3.bf16.msra.mxu0 %v3582_v38  ;;  %v3642_v38 = vld [vmem:[%s4614_s1 + $0x418] sm:$0xff]  }
  0x5d   :  { %3255 = vmatpush3.bf16.msra.mxu1 %v3583_v39  ;;  %3234 = vmatprep.subr.bf16.mxu0 %v3584_v40  ;;  %v3643_v39 = vld [vmem:[%s4614_s1 + $0x498] sm:$0xff]   ;;  %v3644_v40 = vld [vmem:[%s4614_s1 + $0x460] sm:$0xff]  }
  0x5e   :  { %3256 = vmatprep.subr.bf16.mxu1 %v3585_v41  ;;  %v3645_v41 = vld [vmem:[%s4614_s1 + $0x4e0] sm:$0xff]  }
  0x60   :  { %3235 = vmatpush3.bf16.msra.mxu0 %v3586_v42  ;;  %v3646_v42 = vld [vmem:[%s4614_s1 + $0x420] sm:$0xff]  }
  0x61   :  { %3257 = vmatpush3.bf16.msra.mxu1 %v3587_v43  ;;  %3264 = vmatprep.subr.bf16.mxu0 %v3592_v50  ;;  %v3647_v43 = vld [vmem:[%s4614_s1 + $0x4a0] sm:$0xff]   ;;  %v3654_v50 = vld [vmem:[%s4614_s1 + $0x430] sm:$0xff]  }
  0x62   :  { %3286 = vmatprep.subr.bf16.mxu1 %v3593_v51  ;;  %v3655_v51 = vld [vmem:[%s4614_s1 + $0x4b0] sm:$0xff]  }
  0x63   :  { %2391 = vmatmul.mubr.bf16.vlgmr.msra.gmra.mrb[8].mxu0 %v2852_v46  ;;  %v3650_v46 = vld [vmem:[%s4614_s1 + $0x428] sm:$0xff]  }
  0x64   :  { %2431 = vmatmul.mubr.bf16.vlgmr.msra.gmra.mrb[8].mxu1 %v2854_v48  ;;  %3265 = vmatpush3.bf16.msra.mxu0 %v3594_v52  ;;  %v3652_v48 = vld [vmem:[%s4614_s1 + $0x470] sm:$0xff]   ;;  %v3656_v52 = vld [vmem:[%s4614_s1 + $0x478] sm:$0xff]  }
  0x65   :  { %3287 = vmatpush3.bf16.msra.mxu1 %v3595_v53  ;;  %3266 = vmatprep.subr.bf16.mxu0 %v3596_v54  ;;  %v3657_v53 = vld [vmem:[%s4614_s1 + $0x4f8] sm:$0xff]  }
  0x66   :  { %3288 = vmatprep.subr.bf16.mxu1 %v3597_v55  ;;  %2470 = vmatprep.mubr.bf16.mxu0 %v2857_v21  ;;  %v3658_v54 = vld [vmem:[%s4614_s1 + $0x438] sm:$0xff]   ;;  %v3687_v21 = vld [vmem:[%s4614_s1 + $0x5a8] sm:$0xff]  }
  0x67   :  { %2510 = vmatprep.mubr.bf16.mxu1 %v2859_v24  ;;  %v3659_v55 = vld [vmem:[%s4614_s1 + $0x4b8] sm:$0xff]   ;;  %v3690_v24 = vld [vmem:[%s4614_s1 + $0x530] sm:$0xff]  }
  0x68   :  { %3267 = vmatpush3.bf16.msra.mxu0 %v3598_v56  ;;  %v23_v56 = vld [vmem:[%s4615_s0 + $0x40] sm:$0xff] }
  0x69   :  { %3289 = vmatpush3.bf16.msra.mxu1 %v3599_v57  ;;  %3268 = vmatprep.subr.bf16.mxu0 %v3600_v58  ;;  %v2860_v57 = vcombine.low %v23_v56, %v23_v56  ;;  %v2861_v58 = vcombine.high %v23_v56, %v23_v56  ;;  %v3720_v56 = vld [vmem:[%s4614_s1 + $0x668] sm:$0xff]  }
  0x6a   :  { %3290 = vmatprep.subr.bf16.mxu1 %v3601_v59  ;;  %v24_v59 = vld [vmem:[%s4615_s0 + $0x48] sm:$0xff] }
  0x6c   :  { %3269 = vmatpush3.bf16.msra.mxu0 %v3602_v60  ;;  %v2862_v60 = vcombine.low %v24_v59, %v24_v59 }
  0x6d   :  { %3291 = vmatpush3.bf16.msra.mxu1 %v3603_v61  ;;  %3270 = vmatprep.subr.bf16.mxu0 %v3604_v62  ;;  %v2863_v61 = vcombine.high %v24_v59, %v24_v59  ;;  %v3664_v62 = vld [vmem:[%s4614_s1 + $0x540] sm:$0xff]   ;;  %v3723_v59 = vld [vmem:[%s4614_s1 + $0x6a8] sm:$0xff]  }
  0x6e   :  { %3292 = vmatprep.subr.bf16.mxu1 %v3605_v63  ;;  %v3665_v63 = vld [vmem:[%s4614_s1 + $0x5c0] sm:$0xff]  }
  0x70   :  { %3271 = vmatpush3.bf16.msra.mxu0 %v3606_v0  ;;  %v3666_v0 = vld [vmem:[%s4614_s1 + $0x500] sm:$0xff]  }
  0x71   :  { %3293 = vmatpush3.bf16.msra.mxu1 %v3607_v1  ;;  %3272 = vmatprep.subr.bf16.mxu0 %v3608_v2  ;;  %v3667_v1 = vld [vmem:[%s4614_s1 + $0x580] sm:$0xff]   ;;  %v3668_v2 = vld [vmem:[%s4614_s1 + $0x548] sm:$0xff]  }
  0x72   :  { %3294 = vmatprep.subr.bf16.mxu1 %v3609_v3  ;;  %v3669_v3 = vld [vmem:[%s4614_s1 + $0x5c8] sm:$0xff]  }
  0x74   :  { %3273 = vmatpush3.bf16.msra.mxu0 %v3610_v4  ;;  %v3670_v4 = vld [vmem:[%s4614_s1 + $0x508] sm:$0xff]  }
  0x75   :  { %3295 = vmatpush3.bf16.msra.mxu1 %v3611_v5  ;;  %3274 = vmatprep.subr.bf16.mxu0 %v3612_v6  ;;  %v3671_v5 = vld [vmem:[%s4614_s1 + $0x588] sm:$0xff]   ;;  %v3672_v6 = vld [vmem:[%s4614_s1 + $0x550] sm:$0xff]  }
  0x76   :  { %3296 = vmatprep.subr.bf16.mxu1 %v3613_v7  ;;  %v3673_v7 = vld [vmem:[%s4614_s1 + $0x5d0] sm:$0xff]  }
  0x78   :  { %3275 = vmatpush3.bf16.msra.mxu0 %v3614_v8  ;;  %v3674_v8 = vld [vmem:[%s4614_s1 + $0x510] sm:$0xff]  }
  0x79   :  { %3297 = vmatpush3.bf16.msra.mxu1 %v3615_v9  ;;  %3276 = vmatprep.subr.bf16.mxu0 %v3616_v10  ;;  %v3675_v9 = vld [vmem:[%s4614_s1 + $0x590] sm:$0xff]   ;;  %v3676_v10 = vld [vmem:[%s4614_s1 + $0x558] sm:$0xff]  }
  0x7a   :  { %3298 = vmatprep.subr.bf16.mxu1 %v3617_v11  ;;  %v3677_v11 = vld [vmem:[%s4614_s1 + $0x5d8] sm:$0xff]  }
  0x7c   :  { %3277 = vmatpush3.bf16.msra.mxu0 %v3618_v12  ;;  %v3678_v12 = vld [vmem:[%s4614_s1 + $0x518] sm:$0xff]  }
  0x7d   :  { %3299 = vmatpush3.bf16.msra.mxu1 %v3619_v13  ;;  %3278 = vmatprep.subr.bf16.mxu0 %v3620_v14  ;;  %v3679_v13 = vld [vmem:[%s4614_s1 + $0x598] sm:$0xff]   ;;  %v3680_v14 = vld [vmem:[%s4614_s1 + $0x560] sm:$0xff]  }
  0x7e   :  { %3300 = vmatprep.subr.bf16.mxu1 %v3621_v15  ;;  %v3681_v15 = vld [vmem:[%s4614_s1 + $0x5e0] sm:$0xff]  }
  0x80   :  { %3279 = vmatpush3.bf16.msra.mxu0 %v3622_v16  ;;  %v3682_v16 = vld [vmem:[%s4614_s1 + $0x520] sm:$0xff]  }
  0x81   :  { %3301 = vmatpush3.bf16.msra.mxu1 %v3623_v17  ;;  %3308 = vmatprep.subr.bf16.mxu0 %v3628_v23  ;;  %v3683_v17 = vld [vmem:[%s4614_s1 + $0x5a0] sm:$0xff]   ;;  %v3689_v23 = vld [vmem:[%s4614_s1 + $0x5f0] sm:$0xff]  }
  0x82   :  { %3330 = vmatprep.subr.bf16.mxu1 %v3629_v25  ;;  %v3691_v25 = vld [vmem:[%s4614_s1 + $0x5b0] sm:$0xff]  }
  0x83   :  { %2471 = vmatmul.mubr.bf16.vlgmr.msra.gmra.mrb[12].mxu0 %v2856_v20  ;;  %v3686_v20 = vld [vmem:[%s4614_s1 + $0x528] sm:$0xff]  }
  0x84   :  { %2511 = vmatmul.mubr.bf16.vlgmr.msra.gmra.mrb[12].mxu1 %v2858_v22  ;;  %3309 = vmatpush3.bf16.msra.mxu0 %v3630_v26  ;;  %v3688_v22 = vld [vmem:[%s4614_s1 + $0x570] sm:$0xff]   ;;  %v3692_v26 = vld [vmem:[%s4614_s1 + $0x578] sm:$0xff]  }
  0x85   :  { %3331 = vmatpush3.bf16.msra.mxu1 %v3631_v27  ;;  %3310 = vmatprep.subr.bf16.mxu0 %v3632_v28  ;;  %v3693_v27 = vld [vmem:[%s4614_s1 + $0x5f8] sm:$0xff]  }
  0x86   :  { %3332 = vmatprep.subr.bf16.mxu1 %v3633_v29  ;;  %2550 = vmatprep.mubr.bf16.mxu0 %v2861_v58  ;;  %v3694_v28 = vld [vmem:[%s4614_s1 + $0x538] sm:$0xff]   ;;  %v3722_v58 = vld [vmem:[%s4614_s1 + $0x628] sm:$0xff]  }
  0x87   :  { %2590 = vmatprep.mubr.bf16.mxu1 %v2863_v61  ;;  %v3695_v29 = vld [vmem:[%s4614_s1 + $0x5b8] sm:$0xff]   ;;  %v3725_v61 = vld [vmem:[%s4614_s1 + $0x6f0] sm:$0xff]  }
  0x88   :  { %3311 = vmatpush3.bf16.msra.mxu0 %v3634_v30  ;;  %v25_v30 = vld [vmem:[%s4615_s0 + $0x50] sm:$0xff] }
  0x89   :  { %3333 = vmatpush3.bf16.msra.mxu1 %v3635_v31  ;;  %3312 = vmatprep.subr.bf16.mxu0 %v3636_v32  ;;  %v26_v31 = vld [vmem:[%s4615_s0 + $0x58] sm:$0xff]  ;;  %v2864_v32 = vcombine.low %v25_v30, %v25_v30 }
  0x8a   :  { %3334 = vmatprep.subr.bf16.mxu1 %v3637_v33  ;;  %v2865_v33 = vcombine.high %v25_v30, %v25_v30  ;;  %v3755_v30 = vld [vmem:[%s4614_s1 + $0x7a0] sm:$0xff]  }
  0x8c   :  { %3313 = vmatpush3.bf16.msra.mxu0 %v3638_v34  ;;  %v2866_v34 = vcombine.low %v26_v31, %v26_v31 }
  0x8d   :  { %3335 = vmatpush3.bf16.msra.mxu1 %v3639_v35  ;;  %3314 = vmatprep.subr.bf16.mxu0 %v3640_v36  ;;  %v2867_v35 = vcombine.high %v26_v31, %v26_v31  ;;  %v3700_v36 = vld [vmem:[%s4614_s1 + $0x640] sm:$0xff]  }
  0x8e   :  { %3336 = vmatprep.subr.bf16.mxu1 %v3641_v37  ;;  %v3701_v37 = vld [vmem:[%s4614_s1 + $0x6c0] sm:$0xff]  }
  0x90   :  { %3315 = vmatpush3.bf16.msra.mxu0 %v3642_v38  ;;  %v3702_v38 = vld [vmem:[%s4614_s1 + $0x600] sm:$0xff]  }
  0x91   :  { %3337 = vmatpush3.bf16.msra.mxu1 %v3643_v39  ;;  %3316 = vmatprep.subr.bf16.mxu0 %v3644_v40  ;;  %v3703_v39 = vld [vmem:[%s4614_s1 + $0x680] sm:$0xff]   ;;  %v3704_v40 = vld [vmem:[%s4614_s1 + $0x648] sm:$0xff]  }
  0x92   :  { %3338 = vmatprep.subr.bf16.mxu1 %v3645_v41  ;;  %v3705_v41 = vld [vmem:[%s4614_s1 + $0x6c8] sm:$0xff]  }
  0x94   :  { %3317 = vmatpush3.bf16.msra.mxu0 %v3646_v42  ;;  %v3706_v42 = vld [vmem:[%s4614_s1 + $0x608] sm:$0xff]  }
  0x95   :  { %3339 = vmatpush3.bf16.msra.mxu1 %v3647_v43  ;;  %3318 = vmatprep.subr.bf16.mxu0 %v3648_v44  ;;  %v3707_v43 = vld [vmem:[%s4614_s1 + $0x688] sm:$0xff]   ;;  %v3708_v44 = vld [vmem:[%s4614_s1 + $0x650] sm:$0xff]  }
  0x96   :  { %3340 = vmatprep.subr.bf16.mxu1 %v3649_v45  ;;  %v3709_v45 = vld [vmem:[%s4614_s1 + $0x6d0] sm:$0xff]  }
  0x98   :  { %3319 = vmatpush3.bf16.msra.mxu0 %v3650_v46  ;;  %v3710_v46 = vld [vmem:[%s4614_s1 + $0x610] sm:$0xff]  }
  0x99   :  { %3341 = vmatpush3.bf16.msra.mxu1 %v3651_v47  ;;  %3320 = vmatprep.subr.bf16.mxu0 %v3652_v48  ;;  %v3711_v47 = vld [vmem:[%s4614_s1 + $0x690] sm:$0xff]   ;;  %v3712_v48 = vld [vmem:[%s4614_s1 + $0x658] sm:$0xff]  }
  0x9a   :  { %3342 = vmatprep.subr.bf16.mxu1 %v3653_v49  ;;  %v3713_v49 = vld [vmem:[%s4614_s1 + $0x6d8] sm:$0xff]  }
  0x9c   :  { %3321 = vmatpush3.bf16.msra.mxu0 %v3654_v50  ;;  %v3714_v50 = vld [vmem:[%s4614_s1 + $0x618] sm:$0xff]  }
  0x9d   :  { %3343 = vmatpush3.bf16.msra.mxu1 %v3655_v51  ;;  %3322 = vmatprep.subr.bf16.mxu0 %v3656_v52  ;;  %v3715_v51 = vld [vmem:[%s4614_s1 + $0x698] sm:$0xff]   ;;  %v3716_v52 = vld [vmem:[%s4614_s1 + $0x660] sm:$0xff]  }
  0x9e   :  { %3344 = vmatprep.subr.bf16.mxu1 %v3657_v53  ;;  %v3717_v53 = vld [vmem:[%s4614_s1 + $0x6e0] sm:$0xff]  }
  0xa0   :  { %3323 = vmatpush3.bf16.msra.mxu0 %v3658_v54  ;;  %v3718_v54 = vld [vmem:[%s4614_s1 + $0x620] sm:$0xff]  }
  0xa1   :  { %3345 = vmatpush3.bf16.msra.mxu1 %v3659_v55  ;;  %3352 = vmatprep.subr.bf16.mxu0 %v3664_v62  ;;  %v3719_v55 = vld [vmem:[%s4614_s1 + $0x6a0] sm:$0xff]   ;;  %v3726_v62 = vld [vmem:[%s4614_s1 + $0x630] sm:$0xff]  }
  0xa2   :  { %3374 = vmatprep.subr.bf16.mxu1 %v3665_v63  ;;  %v3727_v63 = vld [vmem:[%s4614_s1 + $0x6b0] sm:$0xff]  }
  0xa3   :  { %2551 = vmatmul.mubr.bf16.vlgmr.msra.gmra.mrb[16].mxu0 %v2860_v57  ;;  %v3721_v57 = vld [vmem:[%s4614_s1 + $0x6e8] sm:$0xff]  }
  0xa4   :  { %2591 = vmatmul.mubr.bf16.vlgmr.msra.gmra.mrb[16].mxu1 %v2862_v60  ;;  %3353 = vmatpush3.bf16.msra.mxu0 %v3666_v0  ;;  %v3724_v60 = vld [vmem:[%s4614_s1 + $0x670] sm:$0xff]   ;;  %v3728_v0 = vld [vmem:[%s4614_s1 + $0x678] sm:$0xff]  }
  0xa5   :  { %3375 = vmatpush3.bf16.msra.mxu1 %v3667_v1  ;;  %3354 = vmatprep.subr.bf16.mxu0 %v3668_v2  ;;  %v3729_v1 = vld [vmem:[%s4614_s1 + $0x6f8] sm:$0xff]  }
  0xa6   :  { %3376 = vmatprep.subr.bf16.mxu1 %v3669_v3  ;;  %2630 = vmatprep.mubr.bf16.mxu0 %v2865_v33  ;;  %v3730_v2 = vld [vmem:[%s4614_s1 + $0x638] sm:$0xff]  }
  0xa7   :  { %2670 = vmatprep.mubr.bf16.mxu1 %v2867_v35  ;;  %v3731_v3 = vld [vmem:[%s4614_s1 + $0x6b8] sm:$0xff]  }
  0xa8   :  { %3355 = vmatpush3.bf16.msra.mxu0 %v3670_v4  ;;  %v27_v4 = vld [vmem:[%s4615_s0 + $0x60] sm:$0xff] }
  0xa9   :  { %3377 = vmatpush3.bf16.msra.mxu1 %v3671_v5  ;;  %3356 = vmatprep.subr.bf16.mxu0 %v3672_v6  ;;  %v28_v5 = vld [vmem:[%s4615_s0 + $0x68] sm:$0xff]  ;;  %v2868_v6 = vcombine.low %v27_v4, %v27_v4 }
  0xaa   :  { %3378 = vmatprep.subr.bf16.mxu1 %v3673_v7  ;;  %v2869_v7 = vcombine.high %v27_v4, %v27_v4 }
  0xac   :  { %3357 = vmatpush3.bf16.msra.mxu0 %v3674_v8  ;;  %v2870_v8 = vcombine.low %v28_v5, %v28_v5 }
  0xad   :  { %3379 = vmatpush3.bf16.msra.mxu1 %v3675_v9  ;;  %3358 = vmatprep.subr.bf16.mxu0 %v3676_v10  ;;  %v3736_v9 = vld [vmem:[%s4614_s1 + $0x740] sm:$0xff]   ;;  %v2871_v10 = vcombine.high %v28_v5, %v28_v5 }
  0xae   :  { %3380 = vmatprep.subr.bf16.mxu1 %v3677_v11  ;;  %v3737_v11 = vld [vmem:[%s4614_s1 + $0x7c0] sm:$0xff]  }
  0xb0   :  { %3359 = vmatpush3.bf16.msra.mxu0 %v3678_v12  ;;  %v3738_v12 = vld [vmem:[%s4614_s1 + $0x700] sm:$0xff]  }
  0xb1   :  { %3381 = vmatpush3.bf16.msra.mxu1 %v3679_v13  ;;  %3360 = vmatprep.subr.bf16.mxu0 %v3680_v14  ;;  %v3739_v13 = vld [vmem:[%s4614_s1 + $0x780] sm:$0xff]   ;;  %v3740_v14 = vld [vmem:[%s4614_s1 + $0x748] sm:$0xff]  }
  0xb2   :  { %3382 = vmatprep.subr.bf16.mxu1 %v3681_v15  ;;  %v3741_v15 = vld [vmem:[%s4614_s1 + $0x7c8] sm:$0xff]  }
  0xb4   :  { %3361 = vmatpush3.bf16.msra.mxu0 %v3682_v16  ;;  %v3742_v16 = vld [vmem:[%s4614_s1 + $0x708] sm:$0xff]  }
  0xb5   :  { %3383 = vmatpush3.bf16.msra.mxu1 %v3683_v17  ;;  %3362 = vmatprep.subr.bf16.mxu0 %v3684_v18  ;;  %v3743_v17 = vld [vmem:[%s4614_s1 + $0x788] sm:$0xff]   ;;  %v3744_v18 = vld [vmem:[%s4614_s1 + $0x750] sm:$0xff]  }
  0xb6   :  { %3384 = vmatprep.subr.bf16.mxu1 %v3685_v19  ;;  %v3745_v19 = vld [vmem:[%s4614_s1 + $0x7d0] sm:$0xff]  }
  0xb8   :  { %3363 = vmatpush3.bf16.msra.mxu0 %v3686_v20  ;;  %v3746_v20 = vld [vmem:[%s4614_s1 + $0x710] sm:$0xff]  }
  0xb9   :  { %3385 = vmatpush3.bf16.msra.mxu1 %v3687_v21  ;;  %3364 = vmatprep.subr.bf16.mxu0 %v3688_v22  ;;  %v3747_v21 = vld [vmem:[%s4614_s1 + $0x790] sm:$0xff]   ;;  %v3748_v22 = vld [vmem:[%s4614_s1 + $0x758] sm:$0xff]  }
  0xba   :  { %3386 = vmatprep.subr.bf16.mxu1 %v3689_v23  ;;  %v3749_v23 = vld [vmem:[%s4614_s1 + $0x7d8] sm:$0xff]  }
  0xbc   :  { %3365 = vmatpush3.bf16.msra.mxu0 %v3690_v24  ;;  %v3750_v24 = vld [vmem:[%s4614_s1 + $0x718] sm:$0xff]  }
  0xbd   :  { %3387 = vmatpush3.bf16.msra.mxu1 %v3691_v25  ;;  %3366 = vmatprep.subr.bf16.mxu0 %v3692_v26  ;;  %v3751_v25 = vld [vmem:[%s4614_s1 + $0x798] sm:$0xff]   ;;  %v3752_v26 = vld [vmem:[%s4614_s1 + $0x760] sm:$0xff]  }
  0xbe   :  { %3388 = vmatprep.subr.bf16.mxu1 %v3693_v27  ;;  %v3753_v27 = vld [vmem:[%s4614_s1 + $0x7e0] sm:$0xff]  }
  0xc0   :  { %3367 = vmatpush3.bf16.msra.mxu0 %v3694_v28  ;;  %v3754_v28 = vld [vmem:[%s4614_s1 + $0x720] sm:$0xff]  }
  0xc1   :  { %3389 = vmatpush3.bf16.msra.mxu1 %v3695_v29  ;;  %3396 = vmatprep.subr.bf16.mxu0 %v3700_v36 }
  0xc2   :  { %3418 = vmatprep.subr.bf16.mxu1 %v3701_v37  ;;  %v3756_v37 = vld [vmem:[%s4614_s1 + $0x768] sm:$0xff]  }
  0xc3   :  { %2631 = vmatmul.mubr.bf16.vlgmr.msra.gmra.mrb[20].mxu0 %v2864_v32  ;;  %v2843_v32 = vld [vmem:[%s4616_s2] ss:$0 sm:$0xff] }
  0xc4   :  { %2671 = vmatmul.mubr.bf16.vlgmr.msra.gmra.mrb[20].mxu1 %v2866_v34  ;;  %3397 = vmatpush3.bf16.msra.mxu0 %v3702_v38 }
  0xc5   :  { %3419 = vmatpush3.bf16.msra.mxu1 %v3703_v39  ;;  %3398 = vmatprep.subr.bf16.mxu0 %v3704_v40  ;;  %v3757_v39 = vld [vmem:[%s4614_s1 + $0x7e8] sm:$0xff]  }
  0xc6   :  { %3420 = vmatprep.subr.bf16.mxu1 %v3705_v41  ;;  %2710 = vmatprep.mubr.bf16.mxu0 %v2869_v7 }
  0xc7   :  { %2750 = vmatprep.mubr.bf16.mxu1 %v2871_v10 }
  0xc8   :  { %3399 = vmatpush3.bf16.msra.mxu0 %v3706_v42  ;;  %v3758_v42 = vld [vmem:[%s4614_s1 + $0x728] sm:$0xff]  }
  0xc9   :  { %3421 = vmatpush3.bf16.msra.mxu1 %v3707_v43  ;;  %3400 = vmatprep.subr.bf16.mxu0 %v3708_v44  ;;  %v3759_v44 = vld [vmem:[%s4614_s1 + $0x7a8] sm:$0xff]  }
  0xca   :  { %3422 = vmatprep.subr.bf16.mxu1 %v3709_v45 }
  0xcc   :  { %3401 = vmatpush3.bf16.msra.mxu0 %v3710_v46 }
  0xcd   :  { %3423 = vmatpush3.bf16.msra.mxu1 %v3711_v47  ;;  %3402 = vmatprep.subr.bf16.mxu0 %v3712_v48  ;;  %v3760_v47 = vld [vmem:[%s4614_s1 + $0x770] sm:$0xff]  }
  0xce   :  { %3424 = vmatprep.subr.bf16.mxu1 %v3713_v49  ;;  %v3761_v48 = vld [vmem:[%s4614_s1 + $0x7f0] sm:$0xff]  }
  0xcf   :  { %v3762_v49 = vld [vmem:[%s4614_s1 + $0x730] sm:$0xff]  }
  0xd0   :  { %3403 = vmatpush3.bf16.msra.mxu0 %v3714_v50  ;;  %v3763_v50 = vld [vmem:[%s4614_s1 + $0x7b0] sm:$0xff]  }
  0xd1   :  { %3425 = vmatpush3.bf16.msra.mxu1 %v3715_v51  ;;  %3404 = vmatprep.subr.bf16.mxu0 %v3716_v52  ;;  %v3764_v51 = vld [vmem:[%s4614_s1 + $0x778] sm:$0xff]  }
  0xd2   :  { %3426 = vmatprep.subr.bf16.mxu1 %v3717_v53  ;;  %v3765_v52 = vld [vmem:[%s4614_s1 + $0x7f8] sm:$0xff]  }
  0xd3   :  { %v3766_v53 = vld [vmem:[%s4614_s1 + $0x738] sm:$0xff]  }
  0xd4   :  { %3405 = vmatpush3.bf16.msra.mxu0 %v3718_v54  ;;  %v3767_v54 = vld [vmem:[%s4614_s1 + $0x7b8] sm:$0xff]  }
  0xd5   :  { %3427 = vmatpush3.bf16.msra.mxu1 %v3719_v55  ;;  %3406 = vmatprep.subr.bf16.mxu0 %v3720_v56  ;;  %v29_v55 = vld [vmem:[%s4615_s0 + $0x70] sm:$0xff]  ;;  %v30_v56 = vld [vmem:[%s4615_s0 + $0x78] sm:$0xff] }
  0xd6   :  { %3428 = vmatprep.subr.bf16.mxu1 %v3721_v57  ;;  %v2872_v57 = vcombine.low %v29_v55, %v29_v55 }
  0xd8   :  { %3407 = vmatpush3.bf16.msra.mxu0 %v3722_v58  ;;  %v2873_v58 = vcombine.high %v29_v55, %v29_v55 }
  0xd9   :  { %3429 = vmatpush3.bf16.msra.mxu1 %v3723_v59  ;;  %3408 = vmatprep.subr.bf16.mxu0 %v3724_v60  ;;  %v2874_v59 = vcombine.low %v30_v56, %v30_v56  ;;  %v2875_v60 = vcombine.high %v30_v56, %v30_v56 }
  0xda   :  { %3430 = vmatprep.subr.bf16.mxu1 %v3725_v61 }
  0xdc   :  { %3409 = vmatpush3.bf16.msra.mxu0 %v3726_v62 }
  0xdd   :  { %3431 = vmatpush3.bf16.msra.mxu1 %v3727_v63  ;;  %3410 = vmatprep.subr.bf16.mxu0 %v3728_v0 }
  0xde   :  { %3432 = vmatprep.subr.bf16.mxu1 %v3729_v1 }
  0xe0   :  { %3411 = vmatpush3.bf16.msra.mxu0 %v3730_v2 }
  0xe1   :  { %3433 = vmatpush3.bf16.msra.mxu1 %v3731_v3  ;;  %3440 = vmatprep.subr.bf16.mxu0 %v3736_v9 }
  0xe2   :  { %3462 = vmatprep.subr.bf16.mxu1 %v3737_v11 }
  0xe3   :  { %2711 = vmatmul.mubr.bf16.vlgmr.msra.gmra.mrb[24].mxu0 %v2868_v6 }
  0xe4   :  { %2751 = vmatmul.mubr.bf16.vlgmr.msra.gmra.mrb[24].mxu1 %v2870_v8  ;;  %3441 = vmatpush3.bf16.msra.mxu0 %v3738_v12 }
  0xe5   :  { %3463 = vmatpush3.bf16.msra.mxu1 %v3739_v13  ;;  %3442 = vmatprep.subr.bf16.mxu0 %v3740_v14 }
  0xe6   :  { %3464 = vmatprep.subr.bf16.mxu1 %v3741_v15  ;;  %2790 = vmatprep.mubr.bf16.mxu0 %v2873_v58 }
  0xe7   :  { %2830 = vmatprep.mubr.bf16.mxu1 %v2875_v60 }
  0xe8   :  { %3443 = vmatpush3.bf16.msra.mxu0 %v3742_v16 }
  0xe9   :  { %3465 = vmatpush3.bf16.msra.mxu1 %v3743_v17  ;;  %3444 = vmatprep.subr.bf16.mxu0 %v3744_v18 }
  0xea   :  { %3466 = vmatprep.subr.bf16.mxu1 %v3745_v19 }
  0xec   :  { %3445 = vmatpush3.bf16.msra.mxu0 %v3746_v20 }
  0xed   :  { %3467 = vmatpush3.bf16.msra.mxu1 %v3747_v21  ;;  %3446 = vmatprep.subr.bf16.mxu0 %v3748_v22 }
  0xee   :  { %3468 = vmatprep.subr.bf16.mxu1 %v3749_v23 }
  0xf0   :  { %3447 = vmatpush3.bf16.msra.mxu0 %v3750_v24 }
  0xf1   :  { %3469 = vmatpush3.bf16.msra.mxu1 %v3751_v25  ;;  %3448 = vmatprep.subr.bf16.mxu0 %v3752_v26 }
  0xf2   :  { %3470 = vmatprep.subr.bf16.mxu1 %v3753_v27 }
  0xf4   :  { %3449 = vmatpush3.bf16.msra.mxu0 %v3754_v28 }
  0xf5   :  { %3471 = vmatpush3.bf16.msra.mxu1 %v3755_v30  ;;  %3450 = vmatprep.subr.bf16.mxu0 %v3756_v37 }
  0xf6   :  { %v3148_v29 = vpop.f32.mrb[0].mxu0  ;;  %3472 = vmatprep.subr.bf16.mxu1 %v3757_v39 }
  0xf7   :  { %v3170_v31 = vpop.f32.mrb[0].mxu1  ;;  %v3149_v33 = vpop.f32.mrb[1].mxu0 }
  0xf8   :  { %v3171_v34 = vpop.f32.mrb[1].mxu1  ;;  %v3150_v35 = vadd.f32 %v3149_v33, %v3148_v29  ;;  %v3151_v38 = vpop.f32.mrb[2].mxu0  ;;  %3451 = vmatpush3.bf16.msra.mxu0 %v3758_v42 }
  0xf9   :  { %v3172_v36 = vadd.f32 %v3171_v34, %v3170_v31  ;;  %v3173_v40 = vpop.f32.mrb[2].mxu1  ;;  %v3152_v43 = vpop.f32.mrb[3].mxu0  ;;  %3473 = vmatpush3.bf16.msra.mxu1 %v3759_v44  ;;  %3452 = vmatprep.subr.bf16.mxu0 %v3760_v47 }
  0xfa   :  { %v2233_v41 = vadd.f32 %v3150_v35, %v2843_v32  ;;  %v3174_v45 = vpop.f32.mrb[3].mxu1  ;;  %3474 = vmatprep.subr.bf16.mxu1 %v3761_v48 }
  0xfc   :  { %v2273_v46 = vadd.f32 %v3172_v36, %v2233_v41  ;;  %3453 = vmatpush3.bf16.msra.mxu0 %v3762_v49 }
  0xfd   :  { %3475 = vmatpush3.bf16.msra.mxu1 %v3763_v50  ;;  %3454 = vmatprep.subr.bf16.mxu0 %v3764_v51 }
  0xfe   :  { %3476 = vmatprep.subr.bf16.mxu1 %v3765_v52 }
 0x100   :  { %3455 = vmatpush3.bf16.msra.mxu0 %v3766_v53 }
 0x101   :  { %3477 = vmatpush3.bf16.msra.mxu1 %v3767_v54 }
 0x103   :  { %2791 = vmatmul.mubr.bf16.vlgmr.msra.gmra.mrb[28].mxu0 %v2872_v57 }
 0x104   :  { %2831 = vmatmul.mubr.bf16.vlgmr.msra.gmra.mrb[28].mxu1 %v2874_v59 }
 0x116   :  { %v3192_v61 = vpop.f32.mrb[4].mxu0 }
 0x117   :  { %v3214_v62 = vpop.f32.mrb[4].mxu1  ;;  %v3193_v63 = vpop.f32.mrb[5].mxu0 }
 0x118   :  { %v3215_v0 = vpop.f32.mrb[5].mxu1  ;;  %v3194_v1 = vadd.f32 %v3193_v63, %v3192_v61  ;;  %v3195_v3 = vpop.f32.mrb[6].mxu0 }
 0x119   :  { %v3216_v2 = vadd.f32 %v3215_v0, %v3214_v62  ;;  %v3217_v4 = vpop.f32.mrb[6].mxu1  ;;  %v3196_v5 = vpop.f32.mrb[7].mxu0 }
 0x11a   :  { %v3218_v6 = vpop.f32.mrb[7].mxu1  ;;  %v2313_v7 = vadd.f32 %v3194_v1, %v2273_v46 }
 0x11c   :  { %v2353_v8 = vadd.f32 %v3216_v2, %v2313_v7 }
 0x136   :  { %v3236_v9 = vpop.f32.mrb[8].mxu0 }
 0x137   :  { %v3258_v10 = vpop.f32.mrb[8].mxu1  ;;  %v3237_v11 = vpop.f32.mrb[9].mxu0 }
 0x138   :  { %v3238_v12 = vadd.f32 %v3237_v11, %v3236_v9  ;;  %v3259_v13 = vpop.f32.mrb[9].mxu1  ;;  %v3239_v14 = vpop.f32.mrb[10].mxu0 }
 0x139   :  { %v3260_v15 = vadd.f32 %v3259_v13, %v3258_v10  ;;  %v3261_v16 = vpop.f32.mrb[10].mxu1  ;;  %v3240_v17 = vpop.f32.mrb[11].mxu0 }
 0x13a   :  { %v2393_v18 = vadd.f32 %v3238_v12, %v2353_v8  ;;  %v3262_v19 = vpop.f32.mrb[11].mxu1 }
 0x13c   :  { %v2433_v20 = vadd.f32 %v3260_v15, %v2393_v18 }
 0x156   :  { %v3280_v21 = vpop.f32.mrb[12].mxu0 }
 0x157   :  { %v3302_v22 = vpop.f32.mrb[12].mxu1  ;;  %v3281_v23 = vpop.f32.mrb[13].mxu0 }
 0x158   :  { %v3282_v24 = vadd.f32 %v3281_v23, %v3280_v21  ;;  %v3303_v25 = vpop.f32.mrb[13].mxu1  ;;  %v3283_v26 = vpop.f32.mrb[14].mxu0 }
 0x159   :  { %v3304_v27 = vadd.f32 %v3303_v25, %v3302_v22  ;;  %v3305_v28 = vpop.f32.mrb[14].mxu1  ;;  %v3284_v29 = vpop.f32.mrb[15].mxu0 }
 0x15a   :  { %v2473_v30 = vadd.f32 %v3282_v24, %v2433_v20  ;;  %v3306_v31 = vpop.f32.mrb[15].mxu1 }
 0x15c   :  { %v2513_v32 = vadd.f32 %v3304_v27, %v2473_v30 }
 0x176   :  { %v3324_v33 = vpop.f32.mrb[16].mxu0 }
 0x177   :  { %v3346_v34 = vpop.f32.mrb[16].mxu1  ;;  %v3325_v35 = vpop.f32.mrb[17].mxu0 }
 0x178   :  { %v3347_v36 = vpop.f32.mrb[17].mxu1  ;;  %v3326_v37 = vadd.f32 %v3325_v35, %v3324_v33  ;;  %v3327_v39 = vpop.f32.mrb[18].mxu0 }
 0x179   :  { %v3348_v38 = vadd.f32 %v3347_v36, %v3346_v34  ;;  %v3349_v40 = vpop.f32.mrb[18].mxu1  ;;  %v3328_v41 = vpop.f32.mrb[19].mxu0 }
 0x17a   :  { %v3350_v42 = vpop.f32.mrb[19].mxu1  ;;  %v2553_v43 = vadd.f32 %v3326_v37, %v2513_v32 }
 0x17c   :  { %v2593_v44 = vadd.f32 %v3348_v38, %v2553_v43 }
 0x196   :  { %v3368_v45 = vpop.f32.mrb[20].mxu0 }
 0x197   :  { %v3390_v46 = vpop.f32.mrb[20].mxu1  ;;  %v3369_v47 = vpop.f32.mrb[21].mxu0 }
 0x198   :  { %v3370_v48 = vadd.f32 %v3369_v47, %v3368_v45  ;;  %v3391_v49 = vpop.f32.mrb[21].mxu1  ;;  %v3371_v50 = vpop.f32.mrb[22].mxu0 }
 0x199   :  { %v3392_v51 = vadd.f32 %v3391_v49, %v3390_v46  ;;  %v3393_v52 = vpop.f32.mrb[22].mxu1  ;;  %v3372_v53 = vpop.f32.mrb[23].mxu0 }
 0x19a   :  { %v2633_v54 = vadd.f32 %v3370_v48, %v2593_v44  ;;  %v3394_v55 = vpop.f32.mrb[23].mxu1 }
 0x19c   :  { %v2673_v56 = vadd.f32 %v3392_v51, %v2633_v54 }
 0x1b6   :  { %v3412_v57 = vpop.f32.mrb[24].mxu0 }
 0x1b7   :  { %v3434_v58 = vpop.f32.mrb[24].mxu1  ;;  %v3413_v59 = vpop.f32.mrb[25].mxu0 }
 0x1b8   :  { %v3414_v60 = vadd.f32 %v3413_v59, %v3412_v57  ;;  %v3435_v61 = vpop.f32.mrb[25].mxu1  ;;  %v3415_v62 = vpop.f32.mrb[26].mxu0 }
 0x1b9   :  { %v3436_v63 = vadd.f32 %v3435_v61, %v3434_v58  ;;  %v3437_v0 = vpop.f32.mrb[26].mxu1  ;;  %v3416_v1 = vpop.f32.mrb[27].mxu0 }
 0x1ba   :  { %v2713_v2 = vadd.f32 %v3414_v60, %v2673_v56  ;;  %v3438_v3 = vpop.f32.mrb[27].mxu1 }
 0x1bc   :  { %v2753_v4 = vadd.f32 %v3436_v63, %v2713_v2 }
 0x1d6   :  { %v3456_v5 = vpop.f32.mrb[28].mxu0 }
 0x1d7   :  { %v3478_v6 = vpop.f32.mrb[28].mxu1  ;;  %v3457_v7 = vpop.f32.mrb[29].mxu0 }
 0x1d8   :  { %v3458_v8 = vadd.f32 %v3457_v7, %v3456_v5  ;;  %v3479_v9 = vpop.f32.mrb[29].mxu1  ;;  %v3459_v10 = vpop.f32.mrb[30].mxu0 }
 0x1d9   :  { %v3480_v11 = vadd.f32 %v3479_v9, %v3478_v6  ;;  %v3481_v12 = vpop.f32.mrb[30].mxu1  ;;  %v3460_v13 = vpop.f32.mrb[31].mxu0 }
 0x1da   :  { %v2793_v14 = vadd.f32 %v3458_v8, %v2753_v4  ;;  %v3482_v15 = vpop.f32.mrb[31].mxu1 }
 0x1dc   :  { %v2833_v16 = vadd.f32 %v3480_v11, %v2793_v14 }
 0x1de   :  { %2838 = vst [vmem:[%s4617_s3] sm:$0xff] %v2833_v16 }

</bundles_post_ra>
